<compile_context>
chip_gen: v6e
topology: v6e:2x2x1
jax: 0.10.0
libtpu: 0.0.40
codegen_flags: <defaults>
</compile_context>

<pallas_src>
import functools
from collections import namedtuple

import jax
import jax.numpy as jnp
from jax.experimental import pallas as pl
from jax.experimental.pallas import tpu as pltpu


# Scaled-down widths.
C1, C2 = 16, 32      # VGG conv1/conv2 block widths (scaled from 64/128)
CLS_H = 256          # VGG classifier hidden (scaled from 4096)
FC_H = 64            # fully_connected_layers hidden (scaled from 1024)
CIN_PAD = 8          # conv1 input channels padded 3 -> 8 (aligned im2col rows)
POOL2 = 8            # final MaxPool2d(kernel_size=8, stride=8)

Geom = namedtuple("Geom", "H W Wp1 L1 S1 H2 W2 Wp2 L2 S2 PH PW NQ")


def _geom(H, W):
    assert H % 16 == 0 and W % 16 == 0, (H, W)
    Wp1 = W + 2
    L1 = H * Wp1                     # conv-output window length (stage 1)
    S1 = (H + 2) * Wp1 + 2           # padded-flat buffer length (stage 1)
    H2, W2 = H // 2, W // 2
    Wp2 = W2 + 2
    L2 = H2 * Wp2
    S2 = (H2 + 2) * Wp2 + 2
    PH, PW = H2 // POOL2, W2 // POOL2
    return Geom(H, W, Wp1, L1, S1, H2, W2, Wp2, L2, S2, PH, PW, PH * PW)


# ----------------------------------------------------------------------------
# In-kernel helpers
# ----------------------------------------------------------------------------
def _conv3x3(src_ref, cin, w_ref, b_ref, mask_ref, wp, length, cast_windows):
    """3x3 conv (padding=1) + bias + ReLU as ONE im2col matmul.

    src_ref holds the input feature map in padded-flat layout (cin, >=S).  The
    9 shifted windows (static lane-offset reads) are concatenated along K and
    contracted against w_ref (Cout, 9*cin) in a single MXU pass.  Returns a
    (Cout, length) f32 value with exact zeros at pad-column positions.
    """
    wins = []
    for di in range(3):
        for dj in range(3):
            win = src_ref[pl.ds(0, cin), pl.ds(di * wp + dj, length)]
            if cast_windows:
                win = win.astype(jnp.bfloat16)
            wins.append(win)
    col = jnp.concatenate(wins, axis=0).astype(jnp.bfloat16)    # (9*cin, length)
    out = jnp.dot(w_ref[...], col, preferred_element_type=jnp.float32)
    out = jnp.maximum(out + b_ref[...], 0.0)
    return out * mask_ref[...]


# ----------------------------------------------------------------------------
# Fused kernel: features + ECA + pools + classifier[:-1] + FC head
# ----------------------------------------------------------------------------
def _vgg_kernel(x_ref, w1, b1, w2, b2, w3, b3, w4, b4,
                m1, m2, sel, eca, qm, w1q, c1b,
                c2w, c2b, f1w, f1b, f2w, f2b, f3w, f3b,
                o_ref, q1, q2, *, H, W):
    g = _geom(H, W)
    p01 = g.Wp1 + 1
    p02 = g.Wp2 + 1

    # Zero only the 1-pixel borders / tails of the padded-flat scratch buffers
    # (~10 KB of stores per image); the interiors are fully overwritten below.
    q1[:, pl.ds(0, p01)] = jnp.zeros((C1, p01), jnp.float32)
    q1[:, pl.ds(p01 + g.L1, g.S1 - p01 - g.L1)] = jnp.zeros(
        (C1, g.S1 - p01 - g.L1), jnp.float32)
    q2[:, pl.ds(0, p02)] = jnp.zeros((C2, p02), jnp.float32)
    q2[:, pl.ds(p02 + g.L2, g.S2 - p02 - g.L2)] = jnp.zeros(
        (C2, g.S2 - p02 - g.L2), jnp.float32)

    # ---- features[0:4]: conv3x3+ReLU, conv3x3+ReLU at (H, W) ----
    a1 = _conv3x3(x_ref, CIN_PAD, w1, b1, m1, g.Wp1, g.L1, cast_windows=False)
    q1[:, pl.ds(p01, g.L1)] = a1
    a2 = _conv3x3(q1, C1, w2, b2, m1, g.Wp1, g.L1, cast_windows=True)
    q1[:, pl.ds(p01, g.L1)] = a2

    # ---- features[4]: MaxPool2d(2, 2), fused ----
    # Max over every 2x2 window (4 shifted window reads), then a 0/1 selection
    # matmul that both downsamples by 2 and lays the result out directly in
    # the stage-2 padded-flat layout (pure MXU work, no gathers/relayouts).
    m01 = q1[:, pl.ds(p01 + 1, g.L1)]
    m10 = q1[:, pl.ds(p01 + g.Wp1, g.L1)]
    m11 = q1[:, pl.ds(p01 + g.Wp1 + 1, g.L1)]
    mx = jnp.maximum(jnp.maximum(a2, m01), jnp.maximum(m10, m11))
    pooled = jnp.dot(mx.astype(jnp.bfloat16), sel[...],
                     preferred_element_type=jnp.float32)        # (C1, L2)
    q2[pl.ds(0, C1), pl.ds(p02, g.L2)] = pooled

    # ---- features[5:9]: conv3x3+ReLU, conv3x3+ReLU at (H/2, W/2) ----
    a3 = _conv3x3(q2, C1, w3, b3, m2, g.Wp2, g.L2, cast_windows=True)
    q2[:, pl.ds(p02, g.L2)] = a3
    a4 = _conv3x3(q2, C2, w4, b4, m2, g.Wp2, g.L2, cast_windows=True)

    # ---- ECA attention: GAP -> 1D channel conv (k=3, no bias, as a banded
    #      matrix) -> sigmoid -> per-channel scale ----
    gap = jnp.sum(a4, axis=1, keepdims=True) * (1.0 / (g.H2 * g.W2))   # (C2,1)
    attn = jax.nn.sigmoid(jnp.dot(eca[...], gap,
                                  preferred_element_type=jnp.float32))  # (C2,1)
    a5 = a4 * attn

    # ---- MaxPool2d(8, 8) + flatten + classifier[0] Linear, fused ----
    # Each pooled output is a masked full-lane max; flatten + first Linear is
    # applied in channel-sublane form (broadcast multiply + cross-sublane sum)
    # so no narrow transpose/reshape or narrow HBM store is ever needed.
    t = jnp.zeros((C2, CLS_H), jnp.float32)
    for q in range(g.NQ):
        rq = jnp.max(a5 * qm[pl.ds(q, 1), :], axis=1, keepdims=True)   # (C2,1)
        t = t + rq * w1q[q]
    h = jnp.maximum(jnp.sum(t, axis=0, keepdims=True) + c1b[...], 0.0)  # (1,CLS_H)

    # TODO(synk): Dropout layers are identity (inference mode).
    def lin(v, wr, br):
        return jnp.dot(v.astype(jnp.bfloat16), wr[...],
                       preferred_element_type=jnp.float32) + br[...]

    h = jnp.maximum(lin(h, c2w, c2b), 0.0)          # classifier Linear+ReLU
    h = jnp.maximum(lin(h, f1w, f1b), 0.0)          # fc Linear+ReLU
    h = jnp.maximum(lin(h, f2w, f2b), 0.0)          # fc Linear+ReLU
    o_ref[...] = jax.nn.sigmoid(lin(h, f3w, f3b))   # fc Linear+Sigmoid -> (1,1)


# ----------------------------------------------------------------------------
# Host wrapper
# ----------------------------------------------------------------------------
def vgg_forward(params, x_nchw):
    N, cin_img, H, W = x_nchw.shape
    g = _geom(H, W)

    # Lane-dense input prep: channel pad (3 -> 8), spatial zero pad, row-major
    # flatten to the padded-flat layout (folds the NCHW transpose into layout).
    xp = jnp.pad(x_nchw.astype(jnp.float32),
                 ((0, 0), (0, CIN_PAD - cin_img), (1, 1), (1, 1)))
    xf = xp.reshape(N, CIN_PAD, (H + 2) * (W + 2))
    xf = jnp.pad(xf, ((0, 0), (0, 0), (0, g.S1 - (H + 2) * (W + 2))))

    consts = (params["w1"], params["b1"], params["w2"], params["b2"],
              params["w3"], params["b3"], params["w4"], params["b4"],
              params["mask1"], params["mask2"], params["sel"], params["eca"],
              params["qmask"], params["w1q"], params["c1b"],
              params["c2w"], params["c2b"], params["f1w"], params["f1b"],
              params["f2w"], params["f2b"], params["f3w"], params["f3b"])

    def _const_spec(a):
        return pl.BlockSpec(a.shape, lambda n, _nd=a.ndim: (0,) * _nd)

    kern = functools.partial(_vgg_kernel, H=H, W=W)
    out = pl.pallas_call(
        kern,
        out_shape=jax.ShapeDtypeStruct((N, 1, 1), jnp.float32),
        grid=(N,),
        in_specs=[pl.BlockSpec((None, CIN_PAD, g.S1), lambda n: (n, 0, 0))]
                 + [_const_spec(a) for a in consts],
        out_specs=pl.BlockSpec((None, 1, 1), lambda n: (n, 0, 0)),
        scratch_shapes=[pltpu.VMEM((C1, g.S1), jnp.float32),   # stage-1 map
                        pltpu.VMEM((C2, g.S2), jnp.float32)],  # stage-2 map
        compiler_params=pltpu.CompilerParams(
            dimension_semantics=("parallel",),
            vmem_limit_bytes=32 * 1024 * 1024),
    )(xf, *consts)
    return out.reshape(N, 1)


# ----------------------------------------------------------------------------
# Parameters (deterministic, scaled-down widths, kernel-ready layouts)
# ----------------------------------------------------------------------------
def init_params(key, H, W):
    g = _geom(H, W)
    ks = jax.random.split(key, 10)

    def winit(k, shape, fan_in):
        return jax.random.normal(k, shape, jnp.float32) / jnp.sqrt(float(fan_in))

    def conv_w(k, cout, cin, cin_pad):
        # PyTorch layout (Cout, Cin, 3, 3) -> (Cout, 9*Cin_pad), column index
        # (di*3 + dj)*Cin_pad + ci, matching the in-kernel im2col row order.
        w = winit(k, (cout, cin, 3, 3), cin * 9)
        if cin_pad > cin:
            w = jnp.pad(w, ((0, 0), (0, cin_pad - cin), (0, 0), (0, 0)))
        return jnp.transpose(w, (0, 2, 3, 1)).reshape(cout, 9 * cin_pad
                                                      ).astype(jnp.bfloat16)

    p = {}
    p["w1"] = conv_w(ks[0], C1, 3, CIN_PAD)
    p["b1"] = jnp.zeros((C1, 1), jnp.float32)
    p["w2"] = conv_w(ks[1], C1, C1, C1)
    p["b2"] = jnp.zeros((C1, 1), jnp.float32)
    p["w3"] = conv_w(ks[2], C2, C1, C1)
    p["b3"] = jnp.zeros((C2, 1), jnp.float32)
    p["w4"] = conv_w(ks[3], C2, C2, C2)
    p["b4"] = jnp.zeros((C2, 1), jnp.float32)

    # ECA conv1d (k=3, pad=1, no bias) over channels as a banded (C2, C2)
    # matrix: attn_pre[i] = sum_d taps[d] * gap[i + d - 1] (zero-padded edges).
    taps = winit(ks[4], (3,), 3.0)
    r = jnp.arange(C2)[:, None]
    c = jnp.arange(C2)[None, :]
    p["eca"] = (taps[0] * (c == r - 1) + taps[1] * (c == r)
                + taps[2] * (c == r + 1)).astype(jnp.float32)

    # Pad-column masks for padded-flat conv outputs (1 = real pixel).
    i1 = jnp.arange(g.L1)
    p["mask1"] = (i1 % g.Wp1 < g.W).astype(jnp.float32)[None, :]
    i2 = jnp.arange(g.L2)
    h2 = i2 // g.Wp2
    w2 = i2 % g.Wp2
    valid2 = w2 < g.W2
    p["mask2"] = valid2.astype(jnp.float32)[None, :]

    # 0/1 selection matrix: gathers the 2x2-window maxes (stage-1 flat layout)
    # straight into the stage-2 padded-flat layout (downsample-by-2).
    src = 2 * h2 * g.Wp1 + 2 * w2
    p["sel"] = ((i1[:, None] == src[None, :]) & valid2[None, :]
                ).astype(jnp.bfloat16)

    # Quadrant masks for the final MaxPool2d(8, 8) (one per pooled position).
    qh = h2 // POOL2
    qw = w2 // POOL2
    qrows = [(valid2 & (qh == q // g.PW) & (qw == q % g.PW)).astype(jnp.float32)
             for q in range(g.NQ)]
    p["qmask"] = jnp.stack(qrows, axis=0)                       # (NQ, L2)

    # classifier[0]: Linear(C2*PH*PW, CLS_H). torch.flatten on NCHW orders the
    # inputs as (c, ph, pw) = c*NQ + q; slice its rows per pooled position so
    # the kernel can apply it in channel-sublane form with no transpose.
    cls_in = C2 * g.NQ
    w1_full = winit(ks[5], (cls_in, CLS_H), cls_in)
    p["w1q"] = jnp.stack([w1_full[q::g.NQ, :] for q in range(g.NQ)],
                         axis=0).astype(jnp.bfloat16)           # (NQ, C2, CLS_H)
    p["c1b"] = jnp.zeros((1, CLS_H), jnp.float32)

    p["c2w"] = winit(ks[6], (CLS_H, CLS_H), CLS_H).astype(jnp.bfloat16)
    p["c2b"] = jnp.zeros((1, CLS_H), jnp.float32)
    p["f1w"] = winit(ks[7], (CLS_H, FC_H), CLS_H).astype(jnp.bfloat16)
    p["f1b"] = jnp.zeros((1, FC_H), jnp.float32)
    p["f2w"] = winit(ks[8], (FC_H, FC_H), FC_H).astype(jnp.bfloat16)
    p["f2b"] = jnp.zeros((1, FC_H), jnp.float32)
    p["f3w"] = winit(ks[9], (FC_H, 1), FC_H).astype(jnp.bfloat16)
    p["f3b"] = jnp.zeros((1, 1), jnp.float32)
    return p


if __name__ == "__main__":
    key = jax.random.PRNGKey(0)
    k_params, k_x = jax.random.split(key)

    # Small input consistent with the module: NCHW, 3-channel image.
    N, H, W = 2, 32, 32
    x = jax.random.normal(k_x, (N, 3, H, W), jnp.float32)
    params = init_params(k_params, H, W)

    forward = jax.jit(vgg_forward)
    y = jax.block_until_ready(forward(params, x))

    assert y.shape == (N, 1), y.shape
    assert bool(jnp.all(jnp.isfinite(y)))
    assert bool(jnp.all((y >= 0.0) & (y <= 1.0)))   # sigmoid output range
    print("KERNEL_OK")
</pallas_src>

<mosaic_0001>
module attributes {stable_mosaic.version = 11 : i64} {
  func.func @_vgg_kernel(%arg0: i32, %arg1: memref<1x8x1158xf32, #tpu.memory_space<vmem>>, %arg2: memref<16x72xbf16, #tpu.memory_space<vmem>>, %arg3: memref<16x1xf32, #tpu.memory_space<vmem>>, %arg4: memref<16x144xbf16, #tpu.memory_space<vmem>>, %arg5: memref<16x1xf32, #tpu.memory_space<vmem>>, %arg6: memref<32x144xbf16, #tpu.memory_space<vmem>>, %arg7: memref<32x1xf32, #tpu.memory_space<vmem>>, %arg8: memref<32x288xbf16, #tpu.memory_space<vmem>>, %arg9: memref<32x1xf32, #tpu.memory_space<vmem>>, %arg10: memref<1x1088xf32, #tpu.memory_space<vmem>>, %arg11: memref<1x288xf32, #tpu.memory_space<vmem>>, %arg12: memref<1088x288xbf16, #tpu.memory_space<vmem>>, %arg13: memref<32x32xf32, #tpu.memory_space<vmem>>, %arg14: memref<4x288xf32, #tpu.memory_space<vmem>>, %arg15: memref<4x32x256xbf16, #tpu.memory_space<vmem>>, %arg16: memref<1x256xf32, #tpu.memory_space<vmem>>, %arg17: memref<256x256xbf16, #tpu.memory_space<vmem>>, %arg18: memref<1x256xf32, #tpu.memory_space<vmem>>, %arg19: memref<256x64xbf16, #tpu.memory_space<vmem>>, %arg20: memref<1x64xf32, #tpu.memory_space<vmem>>, %arg21: memref<64x64xbf16, #tpu.memory_space<vmem>>, %arg22: memref<1x64xf32, #tpu.memory_space<vmem>>, %arg23: memref<64x1xbf16, #tpu.memory_space<vmem>>, %arg24: memref<1x1xf32, #tpu.memory_space<vmem>>, %arg25: memref<1x1x1xf32, #tpu.memory_space<vmem>>, %arg26: memref<16x1158xf32, #tpu.memory_space<vmem>>, %arg27: memref<32x326xf32, #tpu.memory_space<vmem>>) attributes {dimension_semantics = [#tpu.dimension_semantics<parallel>], iteration_bounds = array<i64: 2>, scalar_prefetch = 0 : i64, scratch_operands = 2 : i64, tpu.core_type = #tpu.core_type<tc>, window_params = [{transform_indices = @transform_0, window_bounds = array<i64: 1, 8, 1158>}, {pipeline_mode = #tpu.pipeline_mode<synchronous>, transform_indices = @transform_1, window_bounds = array<i64: 16, 72>}, {pipeline_mode = #tpu.pipeline_mode<synchronous>, transform_indices = @transform_2, window_bounds = array<i64: 16, 1>}, {pipeline_mode = #tpu.pipeline_mode<synchronous>, transform_indices = @transform_3, window_bounds = array<i64: 16, 144>}, {pipeline_mode = #tpu.pipeline_mode<synchronous>, transform_indices = @transform_4, window_bounds = array<i64: 16, 1>}, {pipeline_mode = #tpu.pipeline_mode<synchronous>, transform_indices = @transform_5, window_bounds = array<i64: 32, 144>}, {pipeline_mode = #tpu.pipeline_mode<synchronous>, transform_indices = @transform_6, window_bounds = array<i64: 32, 1>}, {pipeline_mode = #tpu.pipeline_mode<synchronous>, transform_indices = @transform_7, window_bounds = array<i64: 32, 288>}, {pipeline_mode = #tpu.pipeline_mode<synchronous>, transform_indices = @transform_8, window_bounds = array<i64: 32, 1>}, {pipeline_mode = #tpu.pipeline_mode<synchronous>, transform_indices = @transform_9, window_bounds = array<i64: 1, 1088>}, {pipeline_mode = #tpu.pipeline_mode<synchronous>, transform_indices = @transform_10, window_bounds = array<i64: 1, 288>}, {pipeline_mode = #tpu.pipeline_mode<synchronous>, transform_indices = @transform_11, window_bounds = array<i64: 1088, 288>}, {pipeline_mode = #tpu.pipeline_mode<synchronous>, transform_indices = @transform_12, window_bounds = array<i64: 32, 32>}, {pipeline_mode = #tpu.pipeline_mode<synchronous>, transform_indices = @transform_13, window_bounds = array<i64: 4, 288>}, {pipeline_mode = #tpu.pipeline_mode<synchronous>, transform_indices = @transform_14, window_bounds = array<i64: 4, 32, 256>}, {pipeline_mode = #tpu.pipeline_mode<synchronous>, transform_indices = @transform_15, window_bounds = array<i64: 1, 256>}, {pipeline_mode = #tpu.pipeline_mode<synchronous>, transform_indices = @transform_16, window_bounds = array<i64: 256, 256>}, {pipeline_mode = #tpu.pipeline_mode<synchronous>, transform_indices = @transform_17, window_bounds = array<i64: 1, 256>}, {pipeline_mode = #tpu.pipeline_mode<synchronous>, transform_indices = @transform_18, window_bounds = array<i64: 256, 64>}, {pipeline_mode = #tpu.pipeline_mode<synchronous>, transform_indices = @transform_19, window_bounds = array<i64: 1, 64>}, {pipeline_mode = #tpu.pipeline_mode<synchronous>, transform_indices = @transform_20, window_bounds = array<i64: 64, 64>}, {pipeline_mode = #tpu.pipeline_mode<synchronous>, transform_indices = @transform_21, window_bounds = array<i64: 1, 64>}, {pipeline_mode = #tpu.pipeline_mode<synchronous>, transform_indices = @transform_22, window_bounds = array<i64: 64, 1>}, {pipeline_mode = #tpu.pipeline_mode<synchronous>, transform_indices = @transform_23, window_bounds = array<i64: 1, 1>}, {transform_indices = @transform_24, window_bounds = array<i64: 1, 1, 1>}]} {
    %cst = arith.constant 0.000000e+00 : f32
    %0 = vector.broadcast %cst : f32 to vector<16x35xf32>
    %c0 = arith.constant 0 : index
    %c0_0 = arith.constant 0 : index
    %1 = vector.load %arg26[%c0, %c0_0] : memref<16x1158xf32, #tpu.memory_space<vmem>>, vector<16x35xf32>
    tpu.vector_store %arg26[%c0, %c0_0], %0 {strides = array<i32>} : memref<16x1158xf32, #tpu.memory_space<vmem>>, vector<16x35xf32>,
    %cst_1 = arith.constant 0.000000e+00 : f32
    %2 = vector.broadcast %cst_1 : f32 to vector<16x35xf32>
    %c0_2 = arith.constant 0 : index
    %c1123 = arith.constant 1123 : index
    %3 = vector.load %arg26[%c0_2, %c1123] : memref<16x1158xf32, #tpu.memory_space<vmem>>, vector<16x35xf32>
    tpu.vector_store %arg26[%c0_2, %c1123], %2 {strides = array<i32>} : memref<16x1158xf32, #tpu.memory_space<vmem>>, vector<16x35xf32>,
    %cst_3 = arith.constant 0.000000e+00 : f32
    %4 = vector.broadcast %cst_3 : f32 to vector<32x19xf32>
    %c0_4 = arith.constant 0 : index
    %c0_5 = arith.constant 0 : index
    %5 = vector.load %arg27[%c0_4, %c0_5] : memref<32x326xf32, #tpu.memory_space<vmem>>, vector<32x19xf32>
    tpu.vector_store %arg27[%c0_4, %c0_5], %4 {strides = array<i32>} : memref<32x326xf32, #tpu.memory_space<vmem>>, vector<32x19xf32>,
    %cst_6 = arith.constant 0.000000e+00 : f32
    %6 = vector.broadcast %cst_6 : f32 to vector<32x19xf32>
    %c0_7 = arith.constant 0 : index
    %c307 = arith.constant 307 : index
    %7 = vector.load %arg27[%c0_7, %c307] : memref<32x326xf32, #tpu.memory_space<vmem>>, vector<32x19xf32>
    tpu.vector_store %arg27[%c0_7, %c307], %6 {strides = array<i32>} : memref<32x326xf32, #tpu.memory_space<vmem>>, vector<32x19xf32>,
    %c0_8 = arith.constant 0 : index
    %c0_9 = arith.constant 0 : index
    %c0_10 = arith.constant 0 : index
    %8 = vector.load %arg1[%c0_8, %c0_9, %c0_10] : memref<1x8x1158xf32, #tpu.memory_space<vmem>>, vector<1x8x1088xf32>
    %9 = vector.shape_cast %8 : vector<1x8x1088xf32> to vector<8x1088xf32>
    %c0_11 = arith.constant 0 : index
    %c0_12 = arith.constant 0 : index
    %c1 = arith.constant 1 : index
    %10 = vector.load %arg1[%c0_11, %c0_12, %c1] : memref<1x8x1158xf32, #tpu.memory_space<vmem>>, vector<1x8x1088xf32>
    %11 = vector.shape_cast %10 : vector<1x8x1088xf32> to vector<8x1088xf32>
    %c0_13 = arith.constant 0 : index
    %c0_14 = arith.constant 0 : index
    %c2 = arith.constant 2 : index
    %12 = vector.load %arg1[%c0_13, %c0_14, %c2] : memref<1x8x1158xf32, #tpu.memory_space<vmem>>, vector<1x8x1088xf32>
    %13 = vector.shape_cast %12 : vector<1x8x1088xf32> to vector<8x1088xf32>
    %c0_15 = arith.constant 0 : index
    %c0_16 = arith.constant 0 : index
    %c34 = arith.constant 34 : index
    %14 = vector.load %arg1[%c0_15, %c0_16, %c34] : memref<1x8x1158xf32, #tpu.memory_space<vmem>>, vector<1x8x1088xf32>
    %15 = vector.shape_cast %14 : vector<1x8x1088xf32> to vector<8x1088xf32>
    %c0_17 = arith.constant 0 : index
    %c0_18 = arith.constant 0 : index
    %c35 = arith.constant 35 : index
    %16 = vector.load %arg1[%c0_17, %c0_18, %c35] : memref<1x8x1158xf32, #tpu.memory_space<vmem>>, vector<1x8x1088xf32>
    %17 = vector.shape_cast %16 : vector<1x8x1088xf32> to vector<8x1088xf32>
    %c0_19 = arith.constant 0 : index
    %c0_20 = arith.constant 0 : index
    %c36 = arith.constant 36 : index
    %18 = vector.load %arg1[%c0_19, %c0_20, %c36] : memref<1x8x1158xf32, #tpu.memory_space<vmem>>, vector<1x8x1088xf32>
    %19 = vector.shape_cast %18 : vector<1x8x1088xf32> to vector<8x1088xf32>
    %c0_21 = arith.constant 0 : index
    %c0_22 = arith.constant 0 : index
    %c68 = arith.constant 68 : index
    %20 = vector.load %arg1[%c0_21, %c0_22, %c68] : memref<1x8x1158xf32, #tpu.memory_space<vmem>>, vector<1x8x1088xf32>
    %21 = vector.shape_cast %20 : vector<1x8x1088xf32> to vector<8x1088xf32>
    %c0_23 = arith.constant 0 : index
    %c0_24 = arith.constant 0 : index
    %c69 = arith.constant 69 : index
    %22 = vector.load %arg1[%c0_23, %c0_24, %c69] : memref<1x8x1158xf32, #tpu.memory_space<vmem>>, vector<1x8x1088xf32>
    %23 = vector.shape_cast %22 : vector<1x8x1088xf32> to vector<8x1088xf32>
    %c0_25 = arith.constant 0 : index
    %c0_26 = arith.constant 0 : index
    %c70 = arith.constant 70 : index
    %24 = vector.load %arg1[%c0_25, %c0_26, %c70] : memref<1x8x1158xf32, #tpu.memory_space<vmem>>, vector<1x8x1088xf32>
    %25 = vector.shape_cast %24 : vector<1x8x1088xf32> to vector<8x1088xf32>
    %26 = tpu.concatenate %9, %11, %13, %15, %17, %19, %21, %23, %25 in 0 : vector<8x1088xf32>, vector<8x1088xf32>, vector<8x1088xf32>, vector<8x1088xf32>, vector<8x1088xf32>, vector<8x1088xf32>, vector<8x1088xf32>, vector<8x1088xf32>, vector<8x1088xf32> -> vector<72x1088xf32>
    %27 = arith.truncf %26 : vector<72x1088xf32> to vector<72x1088xbf16>
    %c0_27 = arith.constant 0 : index
    %c0_28 = arith.constant 0 : index
    %28 = vector.load %arg2[%c0_27, %c0_28] : memref<16x72xbf16, #tpu.memory_space<vmem>>, vector<16x72xbf16>
    %cst_29 = arith.constant dense<0.000000e+00> : vector<16x1088xf32>
    %29 = tpu.matmul %28, %27, %cst_29 {dimension_numbers = #tpu.dot_dimension_numbers<[1], [0], [0], [1], [0, 0, 1, 1], [], []>} : vector<16x72xbf16>, vector<72x1088xbf16>, vector<16x1088xf32> -> vector<16x1088xf32>
    %c0_30 = arith.constant 0 : index
    %c0_31 = arith.constant 0 : index
    %30 = vector.load %arg3[%c0_30, %c0_31] : memref<16x1xf32, #tpu.memory_space<vmem>>, vector<16x1xf32>
    %31 = vector.broadcast %30 : vector<16x1xf32> to vector<16x1088xf32>
    %32 = arith.addf %29, %31 : vector<16x1088xf32>
    %cst_32 = arith.constant 0.000000e+00 : f32
    %33 = vector.broadcast %cst_32 : f32 to vector<16x1088xf32>
    %34 = arith.maximumf %32, %33 : vector<16x1088xf32>
    %c0_33 = arith.constant 0 : index
    %c0_34 = arith.constant 0 : index
    %35 = vector.load %arg10[%c0_33, %c0_34] : memref<1x1088xf32, #tpu.memory_space<vmem>>, vector<1x1088xf32>
    %36 = vector.broadcast %35 : vector<1x1088xf32> to vector<16x1088xf32>
    %37 = arith.mulf %34, %36 : vector<16x1088xf32>
    %c0_35 = arith.constant 0 : index
    %c35_36 = arith.constant 35 : index
    %38 = vector.load %arg26[%c0_35, %c35_36] : memref<16x1158xf32, #tpu.memory_space<vmem>>, vector<16x1088xf32>
    tpu.vector_store %arg26[%c0_35, %c35_36], %37 {strides = array<i32>} : memref<16x1158xf32, #tpu.memory_space<vmem>>, vector<16x1088xf32>,
    %c0_37 = arith.constant 0 : index
    %c0_38 = arith.constant 0 : index
    %39 = vector.load %arg26[%c0_37, %c0_38] : memref<16x1158xf32, #tpu.memory_space<vmem>>, vector<16x1088xf32>
    %40 = arith.truncf %39 : vector<16x1088xf32> to vector<16x1088xbf16>
    %c0_39 = arith.constant 0 : index
    %c1_40 = arith.constant 1 : index
    %41 = vector.load %arg26[%c0_39, %c1_40] : memref<16x1158xf32, #tpu.memory_space<vmem>>, vector<16x1088xf32>
    %42 = arith.truncf %41 : vector<16x1088xf32> to vector<16x1088xbf16>
    %c0_41 = arith.constant 0 : index
    %c2_42 = arith.constant 2 : index
    %43 = vector.load %arg26[%c0_41, %c2_42] : memref<16x1158xf32, #tpu.memory_space<vmem>>, vector<16x1088xf32>
    %44 = arith.truncf %43 : vector<16x1088xf32> to vector<16x1088xbf16>
    %c0_43 = arith.constant 0 : index
    %c34_44 = arith.constant 34 : index
    %45 = vector.load %arg26[%c0_43, %c34_44] : memref<16x1158xf32, #tpu.memory_space<vmem>>, vector<16x1088xf32>
    %46 = arith.truncf %45 : vector<16x1088xf32> to vector<16x1088xbf16>
    %c0_45 = arith.constant 0 : index
    %c35_46 = arith.constant 35 : index
    %47 = vector.load %arg26[%c0_45, %c35_46] : memref<16x1158xf32, #tpu.memory_space<vmem>>, vector<16x1088xf32>
    %48 = arith.truncf %47 : vector<16x1088xf32> to vector<16x1088xbf16>
    %c0_47 = arith.constant 0 : index
    %c36_48 = arith.constant 36 : index
    %49 = vector.load %arg26[%c0_47, %c36_48] : memref<16x1158xf32, #tpu.memory_space<vmem>>, vector<16x1088xf32>
    %50 = arith.truncf %49 : vector<16x1088xf32> to vector<16x1088xbf16>
    %c0_49 = arith.constant 0 : index
    %c68_50 = arith.constant 68 : index
    %51 = vector.load %arg26[%c0_49, %c68_50] : memref<16x1158xf32, #tpu.memory_space<vmem>>, vector<16x1088xf32>
    %52 = arith.truncf %51 : vector<16x1088xf32> to vector<16x1088xbf16>
    %c0_51 = arith.constant 0 : index
    %c69_52 = arith.constant 69 : index
    %53 = vector.load %arg26[%c0_51, %c69_52] : memref<16x1158xf32, #tpu.memory_space<vmem>>, vector<16x1088xf32>
    %54 = arith.truncf %53 : vector<16x1088xf32> to vector<16x1088xbf16>
    %c0_53 = arith.constant 0 : index
    %c70_54 = arith.constant 70 : index
    %55 = vector.load %arg26[%c0_53, %c70_54] : memref<16x1158xf32, #tpu.memory_space<vmem>>, vector<16x1088xf32>
    %56 = arith.truncf %55 : vector<16x1088xf32> to vector<16x1088xbf16>
    %57 = tpu.concatenate %40, %42, %44, %46, %48, %50, %52, %54, %56 in 0 : vector<16x1088xbf16>, vector<16x1088xbf16>, vector<16x1088xbf16>, vector<16x1088xbf16>, vector<16x1088xbf16>, vector<16x1088xbf16>, vector<16x1088xbf16>, vector<16x1088xbf16>, vector<16x1088xbf16> -> vector<144x1088xbf16>
    %c0_55 = arith.constant 0 : index
    %c0_56 = arith.constant 0 : index
    %58 = vector.load %arg4[%c0_55, %c0_56] : memref<16x144xbf16, #tpu.memory_space<vmem>>, vector<16x144xbf16>
    %cst_57 = arith.constant dense<0.000000e+00> : vector<16x1088xf32>
    %59 = tpu.matmul %58, %57, %cst_57 {dimension_numbers = #tpu.dot_dimension_numbers<[1], [0], [0], [1], [0, 0, 1, 1], [], []>} : vector<16x144xbf16>, vector<144x1088xbf16>, vector<16x1088xf32> -> vector<16x1088xf32>
    %c0_58 = arith.constant 0 : index
    %c0_59 = arith.constant 0 : index
    %60 = vector.load %arg5[%c0_58, %c0_59] : memref<16x1xf32, #tpu.memory_space<vmem>>, vector<16x1xf32>
    %61 = vector.broadcast %60 : vector<16x1xf32> to vector<16x1088xf32>
    %62 = arith.addf %59, %61 : vector<16x1088xf32>
    %cst_60 = arith.constant 0.000000e+00 : f32
    %63 = vector.broadcast %cst_60 : f32 to vector<16x1088xf32>
    %64 = arith.maximumf %62, %63 : vector<16x1088xf32>
    %c0_61 = arith.constant 0 : index
    %c0_62 = arith.constant 0 : index
    %65 = vector.load %arg10[%c0_61, %c0_62] : memref<1x1088xf32, #tpu.memory_space<vmem>>, vector<1x1088xf32>
    %66 = vector.broadcast %65 : vector<1x1088xf32> to vector<16x1088xf32>
    %67 = arith.mulf %64, %66 : vector<16x1088xf32>
    %c0_63 = arith.constant 0 : index
    %c35_64 = arith.constant 35 : index
    %68 = vector.load %arg26[%c0_63, %c35_64] : memref<16x1158xf32, #tpu.memory_space<vmem>>, vector<16x1088xf32>
    tpu.vector_store %arg26[%c0_63, %c35_64], %67 {strides = array<i32>} : memref<16x1158xf32, #tpu.memory_space<vmem>>, vector<16x1088xf32>,
    %c0_65 = arith.constant 0 : index
    %c36_66 = arith.constant 36 : index
    %69 = vector.load %arg26[%c0_65, %c36_66] : memref<16x1158xf32, #tpu.memory_space<vmem>>, vector<16x1088xf32>
    %c0_67 = arith.constant 0 : index
    %c69_68 = arith.constant 69 : index
    %70 = vector.load %arg26[%c0_67, %c69_68] : memref<16x1158xf32, #tpu.memory_space<vmem>>, vector<16x1088xf32>
    %c0_69 = arith.constant 0 : index
    %c70_70 = arith.constant 70 : index
    %71 = vector.load %arg26[%c0_69, %c70_70] : memref<16x1158xf32, #tpu.memory_space<vmem>>, vector<16x1088xf32>
    %72 = arith.maximumf %67, %69 : vector<16x1088xf32>
    %73 = arith.maximumf %70, %71 : vector<16x1088xf32>
    %74 = arith.maximumf %72, %73 : vector<16x1088xf32>
    %75 = arith.truncf %74 : vector<16x1088xf32> to vector<16x1088xbf16>
    %c0_71 = arith.constant 0 : index
    %c0_72 = arith.constant 0 : index
    %76 = vector.load %arg12[%c0_71, %c0_72] : memref<1088x288xbf16, #tpu.memory_space<vmem>>, vector<1088x288xbf16>
    %cst_73 = arith.constant dense<0.000000e+00> : vector<16x288xf32>
    %77 = tpu.matmul %75, %76, %cst_73 {dimension_numbers = #tpu.dot_dimension_numbers<[1], [0], [0], [1], [0, 0, 1, 1], [], []>} : vector<16x1088xbf16>, vector<1088x288xbf16>, vector<16x288xf32> -> vector<16x288xf32>
    %c0_74 = arith.constant 0 : index
    %c19 = arith.constant 19 : index
    %78 = vector.load %arg27[%c0_74, %c19] : memref<32x326xf32, #tpu.memory_space<vmem>>, vector<16x288xf32>
    tpu.vector_store %arg27[%c0_74, %c19], %77 {strides = array<i32>} : memref<32x326xf32, #tpu.memory_space<vmem>>, vector<16x288xf32>,
    %c0_75 = arith.constant 0 : index
    %c0_76 = arith.constant 0 : index
    %79 = vector.load %arg27[%c0_75, %c0_76] : memref<32x326xf32, #tpu.memory_space<vmem>>, vector<16x288xf32>
    %80 = arith.truncf %79 : vector<16x288xf32> to vector<16x288xbf16>
    %c0_77 = arith.constant 0 : index
    %c1_78 = arith.constant 1 : index
    %81 = vector.load %arg27[%c0_77, %c1_78] : memref<32x326xf32, #tpu.memory_space<vmem>>, vector<16x288xf32>
    %82 = arith.truncf %81 : vector<16x288xf32> to vector<16x288xbf16>
    %c0_79 = arith.constant 0 : index
    %c2_80 = arith.constant 2 : index
    %83 = vector.load %arg27[%c0_79, %c2_80] : memref<32x326xf32, #tpu.memory_space<vmem>>, vector<16x288xf32>
    %84 = arith.truncf %83 : vector<16x288xf32> to vector<16x288xbf16>
    %c0_81 = arith.constant 0 : index
    %c18 = arith.constant 18 : index
    %85 = vector.load %arg27[%c0_81, %c18] : memref<32x326xf32, #tpu.memory_space<vmem>>, vector<16x288xf32>
    %86 = arith.truncf %85 : vector<16x288xf32> to vector<16x288xbf16>
    %c0_82 = arith.constant 0 : index
    %c19_83 = arith.constant 19 : index
    %87 = vector.load %arg27[%c0_82, %c19_83] : memref<32x326xf32, #tpu.memory_space<vmem>>, vector<16x288xf32>
    %88 = arith.truncf %87 : vector<16x288xf32> to vector<16x288xbf16>
    %c0_84 = arith.constant 0 : index
    %c20 = arith.constant 20 : index
    %89 = vector.load %arg27[%c0_84, %c20] : memref<32x326xf32, #tpu.memory_space<vmem>>, vector<16x288xf32>
    %90 = arith.truncf %89 : vector<16x288xf32> to vector<16x288xbf16>
    %c0_85 = arith.constant 0 : index
    %c36_86 = arith.constant 36 : index
    %91 = vector.load %arg27[%c0_85, %c36_86] : memref<32x326xf32, #tpu.memory_space<vmem>>, vector<16x288xf32>
    %92 = arith.truncf %91 : vector<16x288xf32> to vector<16x288xbf16>
    %c0_87 = arith.constant 0 : index
    %c37 = arith.constant 37 : index
    %93 = vector.load %arg27[%c0_87, %c37] : memref<32x326xf32, #tpu.memory_space<vmem>>, vector<16x288xf32>
    %94 = arith.truncf %93 : vector<16x288xf32> to vector<16x288xbf16>
    %c0_88 = arith.constant 0 : index
    %c38 = arith.constant 38 : index
    %95 = vector.load %arg27[%c0_88, %c38] : memref<32x326xf32, #tpu.memory_space<vmem>>, vector<16x288xf32>
    %96 = arith.truncf %95 : vector<16x288xf32> to vector<16x288xbf16>
    %97 = tpu.concatenate %80, %82, %84, %86, %88, %90, %92, %94, %96 in 0 : vector<16x288xbf16>, vector<16x288xbf16>, vector<16x288xbf16>, vector<16x288xbf16>, vector<16x288xbf16>, vector<16x288xbf16>, vector<16x288xbf16>, vector<16x288xbf16>, vector<16x288xbf16> -> vector<144x288xbf16>
    %c0_89 = arith.constant 0 : index
    %c0_90 = arith.constant 0 : index
    %98 = vector.load %arg6[%c0_89, %c0_90] : memref<32x144xbf16, #tpu.memory_space<vmem>>, vector<32x144xbf16>
    %cst_91 = arith.constant dense<0.000000e+00> : vector<32x288xf32>
    %99 = tpu.matmul %98, %97, %cst_91 {dimension_numbers = #tpu.dot_dimension_numbers<[1], [0], [0], [1], [0, 0, 1, 1], [], []>} : vector<32x144xbf16>, vector<144x288xbf16>, vector<32x288xf32> -> vector<32x288xf32>
    %c0_92 = arith.constant 0 : index
    %c0_93 = arith.constant 0 : index
    %100 = vector.load %arg7[%c0_92, %c0_93] : memref<32x1xf32, #tpu.memory_space<vmem>>, vector<32x1xf32>
    %101 = vector.broadcast %100 : vector<32x1xf32> to vector<32x288xf32>
    %102 = arith.addf %99, %101 : vector<32x288xf32>
    %cst_94 = arith.constant 0.000000e+00 : f32
    %103 = vector.broadcast %cst_94 : f32 to vector<32x288xf32>
    %104 = arith.maximumf %102, %103 : vector<32x288xf32>
    %c0_95 = arith.constant 0 : index
    %c0_96 = arith.constant 0 : index
    %105 = vector.load %arg11[%c0_95, %c0_96] : memref<1x288xf32, #tpu.memory_space<vmem>>, vector<1x288xf32>
    %106 = vector.broadcast %105 : vector<1x288xf32> to vector<32x288xf32>
    %107 = arith.mulf %104, %106 : vector<32x288xf32>
    %c0_97 = arith.constant 0 : index
    %c19_98 = arith.constant 19 : index
    %108 = vector.load %arg27[%c0_97, %c19_98] : memref<32x326xf32, #tpu.memory_space<vmem>>, vector<32x288xf32>
    tpu.vector_store %arg27[%c0_97, %c19_98], %107 {strides = array<i32>} : memref<32x326xf32, #tpu.memory_space<vmem>>, vector<32x288xf32>,
    %c0_99 = arith.constant 0 : index
    %c0_100 = arith.constant 0 : index
    %109 = vector.load %arg27[%c0_99, %c0_100] : memref<32x326xf32, #tpu.memory_space<vmem>>, vector<32x288xf32>
    %110 = arith.truncf %109 : vector<32x288xf32> to vector<32x288xbf16>
    %c0_101 = arith.constant 0 : index
    %c1_102 = arith.constant 1 : index
    %111 = vector.load %arg27[%c0_101, %c1_102] : memref<32x326xf32, #tpu.memory_space<vmem>>, vector<32x288xf32>
    %112 = arith.truncf %111 : vector<32x288xf32> to vector<32x288xbf16>
    %c0_103 = arith.constant 0 : index
    %c2_104 = arith.constant 2 : index
    %113 = vector.load %arg27[%c0_103, %c2_104] : memref<32x326xf32, #tpu.memory_space<vmem>>, vector<32x288xf32>
    %114 = arith.truncf %113 : vector<32x288xf32> to vector<32x288xbf16>
    %c0_105 = arith.constant 0 : index
    %c18_106 = arith.constant 18 : index
    %115 = vector.load %arg27[%c0_105, %c18_106] : memref<32x326xf32, #tpu.memory_space<vmem>>, vector<32x288xf32>
    %116 = arith.truncf %115 : vector<32x288xf32> to vector<32x288xbf16>
    %c0_107 = arith.constant 0 : index
    %c19_108 = arith.constant 19 : index
    %117 = vector.load %arg27[%c0_107, %c19_108] : memref<32x326xf32, #tpu.memory_space<vmem>>, vector<32x288xf32>
    %118 = arith.truncf %117 : vector<32x288xf32> to vector<32x288xbf16>
    %c0_109 = arith.constant 0 : index
    %c20_110 = arith.constant 20 : index
    %119 = vector.load %arg27[%c0_109, %c20_110] : memref<32x326xf32, #tpu.memory_space<vmem>>, vector<32x288xf32>
    %120 = arith.truncf %119 : vector<32x288xf32> to vector<32x288xbf16>
    %c0_111 = arith.constant 0 : index
    %c36_112 = arith.constant 36 : index
    %121 = vector.load %arg27[%c0_111, %c36_112] : memref<32x326xf32, #tpu.memory_space<vmem>>, vector<32x288xf32>
    %122 = arith.truncf %121 : vector<32x288xf32> to vector<32x288xbf16>
    %c0_113 = arith.constant 0 : index
    %c37_114 = arith.constant 37 : index
    %123 = vector.load %arg27[%c0_113, %c37_114] : memref<32x326xf32, #tpu.memory_space<vmem>>, vector<32x288xf32>
    %124 = arith.truncf %123 : vector<32x288xf32> to vector<32x288xbf16>
    %c0_115 = arith.constant 0 : index
    %c38_116 = arith.constant 38 : index
    %125 = vector.load %arg27[%c0_115, %c38_116] : memref<32x326xf32, #tpu.memory_space<vmem>>, vector<32x288xf32>
    %126 = arith.truncf %125 : vector<32x288xf32> to vector<32x288xbf16>
    %127 = tpu.concatenate %110, %112, %114, %116, %118, %120, %122, %124, %126 in 0 : vector<32x288xbf16>, vector<32x288xbf16>, vector<32x288xbf16>, vector<32x288xbf16>, vector<32x288xbf16>, vector<32x288xbf16>, vector<32x288xbf16>, vector<32x288xbf16>, vector<32x288xbf16> -> vector<288x288xbf16>
    %c0_117 = arith.constant 0 : index
    %c0_118 = arith.constant 0 : index
    %128 = vector.load %arg8[%c0_117, %c0_118] : memref<32x288xbf16, #tpu.memory_space<vmem>>, vector<32x288xbf16>
    %cst_119 = arith.constant dense<0.000000e+00> : vector<32x288xf32>
    %129 = tpu.matmul %128, %127, %cst_119 {dimension_numbers = #tpu.dot_dimension_numbers<[1], [0], [0], [1], [0, 0, 1, 1], [], []>} : vector<32x288xbf16>, vector<288x288xbf16>, vector<32x288xf32> -> vector<32x288xf32>
    %c0_120 = arith.constant 0 : index
    %c0_121 = arith.constant 0 : index
    %130 = vector.load %arg9[%c0_120, %c0_121] : memref<32x1xf32, #tpu.memory_space<vmem>>, vector<32x1xf32>
    %131 = vector.broadcast %130 : vector<32x1xf32> to vector<32x288xf32>
    %132 = arith.addf %129, %131 : vector<32x288xf32>
    %cst_122 = arith.constant 0.000000e+00 : f32
    %133 = vector.broadcast %cst_122 : f32 to vector<32x288xf32>
    %134 = arith.maximumf %132, %133 : vector<32x288xf32>
    %c0_123 = arith.constant 0 : index
    %c0_124 = arith.constant 0 : index
    %135 = vector.load %arg11[%c0_123, %c0_124] : memref<1x288xf32, #tpu.memory_space<vmem>>, vector<1x288xf32>
    %136 = vector.broadcast %135 : vector<1x288xf32> to vector<32x288xf32>
    %137 = arith.mulf %134, %136 : vector<32x288xf32>
    %cst_125 = arith.constant dense<0.000000e+00> : vector<32xf32>
    %138 = vector.multi_reduction <add>, %137, %cst_125 [1] : vector<32x288xf32> to vector<32xf32>
    %139 = vector.shape_cast %138 : vector<32xf32> to vector<32x1xf32>
    %cst_126 = arith.constant 3.906250e-03 : f32
    %140 = vector.broadcast %cst_126 : f32 to vector<32x1xf32>
    %141 = arith.mulf %139, %140 : vector<32x1xf32>
    %c0_127 = arith.constant 0 : index
    %c0_128 = arith.constant 0 : index
    %142 = vector.load %arg13[%c0_127, %c0_128] : memref<32x32xf32, #tpu.memory_space<vmem>>, vector<32x32xf32>
    %cst_129 = arith.constant dense<0.000000e+00> : vector<32x1xf32>
    %143 = tpu.matmul %142, %141, %cst_129 {dimension_numbers = #tpu.dot_dimension_numbers<[1], [0], [0], [1], [0, 0, 1, 1], [], []>} : vector<32x32xf32>, vector<32x1xf32>, vector<32x1xf32> -> vector<32x1xf32>
    %144 = arith.negf %143 : vector<32x1xf32>
    %145 = math.exp %144 : vector<32x1xf32>
    %cst_130 = arith.constant 1.000000e+00 : f32
    %146 = vector.broadcast %cst_130 : f32 to vector<32x1xf32>
    %147 = arith.addf %146, %145 : vector<32x1xf32>
    %148 = arith.divf %146, %147 : vector<32x1xf32>
    %149 = vector.broadcast %148 : vector<32x1xf32> to vector<32x288xf32>
    %150 = arith.mulf %137, %149 : vector<32x288xf32>
    %cst_131 = arith.constant 0.000000e+00 : f32
    %151 = vector.broadcast %cst_131 : f32 to vector<32x256xf32>
    %c0_132 = arith.constant 0 : index
    %c0_133 = arith.constant 0 : index
    %152 = vector.load %arg14[%c0_132, %c0_133] : memref<4x288xf32, #tpu.memory_space<vmem>>, vector<1x288xf32>
    %153 = vector.broadcast %152 : vector<1x288xf32> to vector<32x288xf32>
    %154 = arith.mulf %150, %153 : vector<32x288xf32>
    %cst_134 = arith.constant dense<0xFF800000> : vector<32xf32>
    %155 = vector.multi_reduction <maximumf>, %154, %cst_134 [1] : vector<32x288xf32> to vector<32xf32>
    %156 = vector.shape_cast %155 : vector<32xf32> to vector<32x1xf32>
    %c0_135 = arith.constant 0 : index
    %c0_136 = arith.constant 0 : index
    %c0_137 = arith.constant 0 : index
    %157 = vector.load %arg15[%c0_135, %c0_136, %c0_137] : memref<4x32x256xbf16, #tpu.memory_space<vmem>>, vector<1x32x256xbf16>
    %158 = vector.shape_cast %157 : vector<1x32x256xbf16> to vector<32x256xbf16>
    %159 = arith.extf %158 : vector<32x256xbf16> to vector<32x256xf32>
    %160 = vector.broadcast %156 : vector<32x1xf32> to vector<32x256xf32>
    %161 = arith.mulf %160, %159 : vector<32x256xf32>
    %162 = arith.addf %151, %161 : vector<32x256xf32>
    %c1_138 = arith.constant 1 : index
    %c0_139 = arith.constant 0 : index
    %163 = vector.load %arg14[%c1_138, %c0_139] : memref<4x288xf32, #tpu.memory_space<vmem>>, vector<1x288xf32>
    %164 = vector.broadcast %163 : vector<1x288xf32> to vector<32x288xf32>
    %165 = arith.mulf %150, %164 : vector<32x288xf32>
    %cst_140 = arith.constant dense<0xFF800000> : vector<32xf32>
    %166 = vector.multi_reduction <maximumf>, %165, %cst_140 [1] : vector<32x288xf32> to vector<32xf32>
    %167 = vector.shape_cast %166 : vector<32xf32> to vector<32x1xf32>
    %c1_141 = arith.constant 1 : index
    %c0_142 = arith.constant 0 : index
    %c0_143 = arith.constant 0 : index
    %168 = vector.load %arg15[%c1_141, %c0_142, %c0_143] : memref<4x32x256xbf16, #tpu.memory_space<vmem>>, vector<1x32x256xbf16>
    %169 = vector.shape_cast %168 : vector<1x32x256xbf16> to vector<32x256xbf16>
    %170 = arith.extf %169 : vector<32x256xbf16> to vector<32x256xf32>
    %171 = vector.broadcast %167 : vector<32x1xf32> to vector<32x256xf32>
    %172 = arith.mulf %171, %170 : vector<32x256xf32>
    %173 = arith.addf %162, %172 : vector<32x256xf32>
    %c2_144 = arith.constant 2 : index
    %c0_145 = arith.constant 0 : index
    %174 = vector.load %arg14[%c2_144, %c0_145] : memref<4x288xf32, #tpu.memory_space<vmem>>, vector<1x288xf32>
    %175 = vector.broadcast %174 : vector<1x288xf32> to vector<32x288xf32>
    %176 = arith.mulf %150, %175 : vector<32x288xf32>
    %cst_146 = arith.constant dense<0xFF800000> : vector<32xf32>
    %177 = vector.multi_reduction <maximumf>, %176, %cst_146 [1] : vector<32x288xf32> to vector<32xf32>
    %178 = vector.shape_cast %177 : vector<32xf32> to vector<32x1xf32>
    %c2_147 = arith.constant 2 : index
    %c0_148 = arith.constant 0 : index
    %c0_149 = arith.constant 0 : index
    %179 = vector.load %arg15[%c2_147, %c0_148, %c0_149] : memref<4x32x256xbf16, #tpu.memory_space<vmem>>, vector<1x32x256xbf16>
    %180 = vector.shape_cast %179 : vector<1x32x256xbf16> to vector<32x256xbf16>
    %181 = arith.extf %180 : vector<32x256xbf16> to vector<32x256xf32>
    %182 = vector.broadcast %178 : vector<32x1xf32> to vector<32x256xf32>
    %183 = arith.mulf %182, %181 : vector<32x256xf32>
    %184 = arith.addf %173, %183 : vector<32x256xf32>
    %c3 = arith.constant 3 : index
    %c0_150 = arith.constant 0 : index
    %185 = vector.load %arg14[%c3, %c0_150] : memref<4x288xf32, #tpu.memory_space<vmem>>, vector<1x288xf32>
    %186 = vector.broadcast %185 : vector<1x288xf32> to vector<32x288xf32>
    %187 = arith.mulf %150, %186 : vector<32x288xf32>
    %cst_151 = arith.constant dense<0xFF800000> : vector<32xf32>
    %188 = vector.multi_reduction <maximumf>, %187, %cst_151 [1] : vector<32x288xf32> to vector<32xf32>
    %189 = vector.shape_cast %188 : vector<32xf32> to vector<32x1xf32>
    %c3_152 = arith.constant 3 : index
    %c0_153 = arith.constant 0 : index
    %c0_154 = arith.constant 0 : index
    %190 = vector.load %arg15[%c3_152, %c0_153, %c0_154] : memref<4x32x256xbf16, #tpu.memory_space<vmem>>, vector<1x32x256xbf16>
    %191 = vector.shape_cast %190 : vector<1x32x256xbf16> to vector<32x256xbf16>
    %192 = arith.extf %191 : vector<32x256xbf16> to vector<32x256xf32>
    %193 = vector.broadcast %189 : vector<32x1xf32> to vector<32x256xf32>
    %194 = arith.mulf %193, %192 : vector<32x256xf32>
    %195 = arith.addf %184, %194 : vector<32x256xf32>
    %cst_155 = arith.constant dense<0.000000e+00> : vector<256xf32>
    %196 = vector.multi_reduction <add>, %195, %cst_155 [0] : vector<32x256xf32> to vector<256xf32>
    %197 = vector.shape_cast %196 : vector<256xf32> to vector<1x256xf32>
    %c0_156 = arith.constant 0 : index
    %c0_157 = arith.constant 0 : index
    %198 = vector.load %arg16[%c0_156, %c0_157] : memref<1x256xf32, #tpu.memory_space<vmem>>, vector<1x256xf32>
    %199 = arith.addf %197, %198 : vector<1x256xf32>
    %cst_158 = arith.constant 0.000000e+00 : f32
    %200 = vector.broadcast %cst_158 : f32 to vector<1x256xf32>
    %201 = arith.maximumf %199, %200 : vector<1x256xf32>
    %202 = arith.truncf %201 : vector<1x256xf32> to vector<1x256xbf16>
    %c0_159 = arith.constant 0 : index
    %c0_160 = arith.constant 0 : index
    %203 = vector.load %arg17[%c0_159, %c0_160] : memref<256x256xbf16, #tpu.memory_space<vmem>>, vector<256x256xbf16>
    %cst_161 = arith.constant dense<0.000000e+00> : vector<1x256xf32>
    %204 = tpu.matmul %202, %203, %cst_161 {dimension_numbers = #tpu.dot_dimension_numbers<[1], [0], [0], [1], [0, 0, 1, 1], [], []>} : vector<1x256xbf16>, vector<256x256xbf16>, vector<1x256xf32> -> vector<1x256xf32>
    %c0_162 = arith.constant 0 : index
    %c0_163 = arith.constant 0 : index
    %205 = vector.load %arg18[%c0_162, %c0_163] : memref<1x256xf32, #tpu.memory_space<vmem>>, vector<1x256xf32>
    %206 = arith.addf %204, %205 : vector<1x256xf32>
    %cst_164 = arith.constant 0.000000e+00 : f32
    %207 = vector.broadcast %cst_164 : f32 to vector<1x256xf32>
    %208 = arith.maximumf %206, %207 : vector<1x256xf32>
    %209 = arith.truncf %208 : vector<1x256xf32> to vector<1x256xbf16>
    %c0_165 = arith.constant 0 : index
    %c0_166 = arith.constant 0 : index
    %210 = vector.load %arg19[%c0_165, %c0_166] : memref<256x64xbf16, #tpu.memory_space<vmem>>, vector<256x64xbf16>
    %cst_167 = arith.constant dense<0.000000e+00> : vector<1x64xf32>
    %211 = tpu.matmul %209, %210, %cst_167 {dimension_numbers = #tpu.dot_dimension_numbers<[1], [0], [0], [1], [0, 0, 1, 1], [], []>} : vector<1x256xbf16>, vector<256x64xbf16>, vector<1x64xf32> -> vector<1x64xf32>
    %c0_168 = arith.constant 0 : index
    %c0_169 = arith.constant 0 : index
    %212 = vector.load %arg20[%c0_168, %c0_169] : memref<1x64xf32, #tpu.memory_space<vmem>>, vector<1x64xf32>
    %213 = arith.addf %211, %212 : vector<1x64xf32>
    %cst_170 = arith.constant 0.000000e+00 : f32
    %214 = vector.broadcast %cst_170 : f32 to vector<1x64xf32>
    %215 = arith.maximumf %213, %214 : vector<1x64xf32>
    %216 = arith.truncf %215 : vector<1x64xf32> to vector<1x64xbf16>
    %c0_171 = arith.constant 0 : index
    %c0_172 = arith.constant 0 : index
    %217 = vector.load %arg21[%c0_171, %c0_172] : memref<64x64xbf16, #tpu.memory_space<vmem>>, vector<64x64xbf16>
    %cst_173 = arith.constant dense<0.000000e+00> : vector<1x64xf32>
    %218 = tpu.matmul %216, %217, %cst_173 {dimension_numbers = #tpu.dot_dimension_numbers<[1], [0], [0], [1], [0, 0, 1, 1], [], []>} : vector<1x64xbf16>, vector<64x64xbf16>, vector<1x64xf32> -> vector<1x64xf32>
    %c0_174 = arith.constant 0 : index
    %c0_175 = arith.constant 0 : index
    %219 = vector.load %arg22[%c0_174, %c0_175] : memref<1x64xf32, #tpu.memory_space<vmem>>, vector<1x64xf32>
    %220 = arith.addf %218, %219 : vector<1x64xf32>
    %cst_176 = arith.constant 0.000000e+00 : f32
    %221 = vector.broadcast %cst_176 : f32 to vector<1x64xf32>
    %222 = arith.maximumf %220, %221 : vector<1x64xf32>
    %223 = arith.truncf %222 : vector<1x64xf32> to vector<1x64xbf16>
    %c0_177 = arith.constant 0 : index
    %c0_178 = arith.constant 0 : index
    %224 = vector.load %arg23[%c0_177, %c0_178] : memref<64x1xbf16, #tpu.memory_space<vmem>>, vector<64x1xbf16>
    %cst_179 = arith.constant dense<0.000000e+00> : vector<1x1xf32>
    %225 = tpu.matmul %223, %224, %cst_179 {dimension_numbers = #tpu.dot_dimension_numbers<[1], [0], [0], [1], [0, 0, 1, 1], [], []>} : vector<1x64xbf16>, vector<64x1xbf16>, vector<1x1xf32> -> vector<1x1xf32>
    %c0_180 = arith.constant 0 : index
    %c0_181 = arith.constant 0 : index
    %226 = vector.load %arg24[%c0_180, %c0_181] : memref<1x1xf32, #tpu.memory_space<vmem>>, vector<1x1xf32>
    %227 = arith.addf %225, %226 : vector<1x1xf32>
    %228 = arith.negf %227 : vector<1x1xf32>
    %229 = math.exp %228 : vector<1x1xf32>
    %cst_182 = arith.constant 1.000000e+00 : f32
    %230 = vector.broadcast %cst_182 : f32 to vector<1x1xf32>
    %231 = arith.addf %230, %229 : vector<1x1xf32>
    %232 = arith.divf %230, %231 : vector<1x1xf32>
    %c0_183 = arith.constant 0 : index
    %c0_184 = arith.constant 0 : index
    %c0_185 = arith.constant 0 : index
    %233 = vector.load %arg25[%c0_183, %c0_184, %c0_185] : memref<1x1x1xf32, #tpu.memory_space<vmem>>, vector<1x1x1xf32>
    %234 = vector.shape_cast %233 : vector<1x1x1xf32> to vector<1x1xf32>
    %235 = vector.shape_cast %232 : vector<1x1xf32> to vector<1x1x1xf32>
    tpu.vector_store %arg25[%c0_183, %c0_184, %c0_185], %235 {strides = array<i32>} : memref<1x1x1xf32, #tpu.memory_space<vmem>>, vector<1x1x1xf32>,
    return
  }
  func.func @transform_0(%arg0: i32) -> (i32, i32, i32) {
    %c0_i32 = arith.constant 0 : i32
    %c0_i32_0 = arith.constant 0 : i32
    %c0_i32_1 = arith.constant 0 : i32
    return %arg0, %c0_i32, %c0_i32_0 : i32, i32, i32
  }
  func.func @transform_1(%arg0: i32) -> (i32, i32) {
    %c0_i32 = arith.constant 0 : i32
    %c0_i32_0 = arith.constant 0 : i32
    %c0_i32_1 = arith.constant 0 : i32
    return %c0_i32, %c0_i32_0 : i32, i32
  }
  func.func @transform_2(%arg0: i32) -> (i32, i32) {
    %c0_i32 = arith.constant 0 : i32
    %c0_i32_0 = arith.constant 0 : i32
    %c0_i32_1 = arith.constant 0 : i32
    return %c0_i32, %c0_i32_0 : i32, i32
  }
  func.func @transform_3(%arg0: i32) -> (i32, i32) {
    %c0_i32 = arith.constant 0 : i32
    %c0_i32_0 = arith.constant 0 : i32
    %c0_i32_1 = arith.constant 0 : i32
    return %c0_i32, %c0_i32_0 : i32, i32
  }
  func.func @transform_4(%arg0: i32) -> (i32, i32) {
    %c0_i32 = arith.constant 0 : i32
    %c0_i32_0 = arith.constant 0 : i32
    %c0_i32_1 = arith.constant 0 : i32
    return %c0_i32, %c0_i32_0 : i32, i32
  }
  func.func @transform_5(%arg0: i32) -> (i32, i32) {
    %c0_i32 = arith.constant 0 : i32
    %c0_i32_0 = arith.constant 0 : i32
    %c0_i32_1 = arith.constant 0 : i32
    return %c0_i32, %c0_i32_0 : i32, i32
  }
  func.func @transform_6(%arg0: i32) -> (i32, i32) {
    %c0_i32 = arith.constant 0 : i32
    %c0_i32_0 = arith.constant 0 : i32
    %c0_i32_1 = arith.constant 0 : i32
    return %c0_i32, %c0_i32_0 : i32, i32
  }
  func.func @transform_7(%arg0: i32) -> (i32, i32) {
    %c0_i32 = arith.constant 0 : i32
    %c0_i32_0 = arith.constant 0 : i32
    %c0_i32_1 = arith.constant 0 : i32
    return %c0_i32, %c0_i32_0 : i32, i32
  }
  func.func @transform_8(%arg0: i32) -> (i32, i32) {
    %c0_i32 = arith.constant 0 : i32
    %c0_i32_0 = arith.constant 0 : i32
    %c0_i32_1 = arith.constant 0 : i32
    return %c0_i32, %c0_i32_0 : i32, i32
  }
  func.func @transform_9(%arg0: i32) -> (i32, i32) {
    %c0_i32 = arith.constant 0 : i32
    %c0_i32_0 = arith.constant 0 : i32
    %c0_i32_1 = arith.constant 0 : i32
    return %c0_i32, %c0_i32_0 : i32, i32
  }
  func.func @transform_10(%arg0: i32) -> (i32, i32) {
    %c0_i32 = arith.constant 0 : i32
    %c0_i32_0 = arith.constant 0 : i32
    %c0_i32_1 = arith.constant 0 : i32
    return %c0_i32, %c0_i32_0 : i32, i32
  }
  func.func @transform_11(%arg0: i32) -> (i32, i32) {
    %c0_i32 = arith.constant 0 : i32
    %c0_i32_0 = arith.constant 0 : i32
    %c0_i32_1 = arith.constant 0 : i32
    return %c0_i32, %c0_i32_0 : i32, i32
  }
  func.func @transform_12(%arg0: i32) -> (i32, i32) {
    %c0_i32 = arith.constant 0 : i32
    %c0_i32_0 = arith.constant 0 : i32
    %c0_i32_1 = arith.constant 0 : i32
    return %c0_i32, %c0_i32_0 : i32, i32
  }
  func.func @transform_13(%arg0: i32) -> (i32, i32) {
    %c0_i32 = arith.constant 0 : i32
    %c0_i32_0 = arith.constant 0 : i32
    %c0_i32_1 = arith.constant 0 : i32
    return %c0_i32, %c0_i32_0 : i32, i32
  }
  func.func @transform_14(%arg0: i32) -> (i32, i32, i32) {
    %c0_i32 = arith.constant 0 : i32
    %c0_i32_0 = arith.constant 0 : i32
    %c0_i32_1 = arith.constant 0 : i32
    %c0_i32_2 = arith.constant 0 : i32
    return %c0_i32, %c0_i32_0, %c0_i32_1 : i32, i32, i32
  }
  func.func @transform_15(%arg0: i32) -> (i32, i32) {
    %c0_i32 = arith.constant 0 : i32
    %c0_i32_0 = arith.constant 0 : i32
    %c0_i32_1 = arith.constant 0 : i32
    return %c0_i32, %c0_i32_0 : i32, i32
  }
  func.func @transform_16(%arg0: i32) -> (i32, i32) {
    %c0_i32 = arith.constant 0 : i32
    %c0_i32_0 = arith.constant 0 : i32
    %c0_i32_1 = arith.constant 0 : i32
    return %c0_i32, %c0_i32_0 : i32, i32
  }
  func.func @transform_17(%arg0: i32) -> (i32, i32) {
    %c0_i32 = arith.constant 0 : i32
    %c0_i32_0 = arith.constant 0 : i32
    %c0_i32_1 = arith.constant 0 : i32
    return %c0_i32, %c0_i32_0 : i32, i32
  }
  func.func @transform_18(%arg0: i32) -> (i32, i32) {
    %c0_i32 = arith.constant 0 : i32
    %c0_i32_0 = arith.constant 0 : i32
    %c0_i32_1 = arith.constant 0 : i32
    return %c0_i32, %c0_i32_0 : i32, i32
  }
  func.func @transform_19(%arg0: i32) -> (i32, i32) {
    %c0_i32 = arith.constant 0 : i32
    %c0_i32_0 = arith.constant 0 : i32
    %c0_i32_1 = arith.constant 0 : i32
    return %c0_i32, %c0_i32_0 : i32, i32
  }
  func.func @transform_20(%arg0: i32) -> (i32, i32) {
    %c0_i32 = arith.constant 0 : i32
    %c0_i32_0 = arith.constant 0 : i32
    %c0_i32_1 = arith.constant 0 : i32
    return %c0_i32, %c0_i32_0 : i32, i32
  }
  func.func @transform_21(%arg0: i32) -> (i32, i32) {
    %c0_i32 = arith.constant 0 : i32
    %c0_i32_0 = arith.constant 0 : i32
    %c0_i32_1 = arith.constant 0 : i32
    return %c0_i32, %c0_i32_0 : i32, i32
  }
  func.func @transform_22(%arg0: i32) -> (i32, i32) {
    %c0_i32 = arith.constant 0 : i32
    %c0_i32_0 = arith.constant 0 : i32
    %c0_i32_1 = arith.constant 0 : i32
    return %c0_i32, %c0_i32_0 : i32, i32
  }
  func.func @transform_23(%arg0: i32) -> (i32, i32) {
    %c0_i32 = arith.constant 0 : i32
    %c0_i32_0 = arith.constant 0 : i32
    %c0_i32_1 = arith.constant 0 : i32
    return %c0_i32, %c0_i32_0 : i32, i32
  }
  func.func @transform_24(%arg0: i32) -> (i32, i32, i32) {
    %c0_i32 = arith.constant 0 : i32
    %c0_i32_0 = arith.constant 0 : i32
    %c0_i32_1 = arith.constant 0 : i32
    return %arg0, %c0_i32, %c0_i32_0 : i32, i32, i32
  }
}

</mosaic_0001>

<bundles_post_ra>
// kernel: vgg_forward.1
= control target key start
LH: loop header
LB: loop body
LE: loop exit
PB: predicated region body
PF: predicated region fallthrough
CT: control target
= control target key end

     0   :  { %s8010_s27 = smov 0   ;;  %s10855_s0 = inlined_call_operand.vmem [shape: f32[2,8,1158], index: 0, kind: input, shape index: {}]   ;;  %s10856_s1 = inlined_call_operand.vmem [shape: bf16[16,72], index: 1, kind: input, shape index: {}]   ;;  %s10857_s2 = inlined_call_operand.vmem [shape: f32[16,1], index: 2, kind: input, shape index: {}]   ;;  %s10858_s3 = inlined_call_operand.vmem [shape: bf16[16,144], index: 3, kind: input, shape index: {}]   ;;  %s10859_s4 = inlined_call_operand.vmem [shape: f32[16,1], index: 4, kind: input, shape index: {}]   ;;  %s10860_s5 = inlined_call_operand.vmem [shape: bf16[32,144], index: 5, kind: input, shape index: {}]   ;;  %s10861_s6 = inlined_call_operand.vmem [shape: f32[32,1], index: 6, kind: input, shape index: {}]   ;;  %s10862_s7 = inlined_call_operand.vmem [shape: bf16[32,288], index: 7, kind: input, shape index: {}]   ;;  %s10863_s8 = inlined_call_operand.vmem [shape: f32[32,1], index: 8, kind: input, shape index: {}]   ;;  %s10864_s9 = inlined_call_operand.vmem [shape: f32[1,1088], index: 9, kind: input, shape index: {}]   ;;  %s10865_s10 = inlined_call_operand.vmem [shape: f32[1,288], index: 10, kind: input, shape index: {}]   ;;  %s10866_s11 = inlined_call_operand.vmem [shape: bf16[1088,288], index: 11, kind: input, shape index: {}]   ;;  %s10867_s12 = inlined_call_operand.vmem [shape: f32[32,32], index: 12, kind: input, shape index: {}]   ;;  %s10868_s13 = inlined_call_operand.vmem [shape: f32[4,288], index: 13, kind: input, shape index: {}]   ;;  %s10869_s14 = inlined_call_operand.vmem [shape: bf16[4,32,256], index: 14, kind: input, shape index: {}]   ;;  %s10870_s15 = inlined_call_operand.vmem [shape: f32[1,256], index: 15, kind: input, shape index: {}]   ;;  %s10871_s16 = inlined_call_operand.vmem [shape: bf16[256,256], index: 16, kind: input, shape index: {}]   ;;  %s10872_s17 = inlined_call_operand.vmem [shape: f32[1,256], index: 17, kind: input, shape index: {}]   ;;  %s10873_s18 = inlined_call_operand.vmem [shape: bf16[256,64], index: 18, kind: input, shape index: {}]   ;;  %s10874_s19 = inlined_call_operand.vmem [shape: f32[1,64], index: 19, kind: input, shape index: {}]   ;;  %s10875_s20 = inlined_call_operand.vmem [shape: bf16[64,64], index: 20, kind: input, shape index: {}]   ;;  %s10876_s21 = inlined_call_operand.vmem [shape: f32[1,64], index: 21, kind: input, shape index: {}]   ;;  %s10877_s22 = inlined_call_operand.vmem [shape: bf16[64,1], index: 22, kind: input, shape index: {}]   ;;  %s10878_s23 = inlined_call_operand.<no memory space> [shape: f32[1,1], index: 23, kind: input, shape index: {}]   ;;  %s10879_s24 = inlined_call_operand.vmem [shape: f32[2,1,1], index: 24, kind: output, shape index: {}]  }
   0x1   :  { %10907 = sst [smem:[#allocation5_spill]] %s10855_s0  ;;  %v29_v0 = vstv %s10878_s23 }
   0x2   :  { %10908 = sst [smem:[#allocation6_spill]] %s10856_s1  ;;  %30 = vst [vmem:[#allocation4] sm:$0x1] %v29_v0 }
   0x3   :  { %10909 = sst [smem:[#allocation7_spill]] %s10857_s2 }
   0x4   :  { %10910 = sst [smem:[#allocation8_spill]] %s10858_s3 }
   0x5   :  { %10911 = sst [smem:[#allocation9_spill]] %s10859_s4 }
   0x6   :  { %10912 = sst [smem:[#allocation10_spill]] %s10860_s5 }
   0x7   :  { %10913 = sst [smem:[#allocation11_spill]] %s10861_s6 }
   0x8   :  { %10914 = sst [smem:[#allocation12_spill]] %s10862_s7 }
   0x9   :  { %10915 = sst [smem:[#allocation13_spill]] %s10863_s8 }
   0xa   :  { %10916 = sst [smem:[#allocation14_spill]] %s10864_s9 }
   0xb LB: > { %s6554_s28 = sadd.s32 4294967295, %s7862_s27   ;;  %p6558_p0 = scmp.ge.s32.totalorder %s7862_s27, 1  ;;  %s7862_s27 = sphi %s8010_s27, %s36_s27  }
   0xc   : > { %p664_p1 = scmp.lt.s32.totalorder %s7862_s27, 3 }
   0xe   : > { %p665_p2 = pnand %p6558_p0, %p664_p1 }
   0xf   : > { %p728_p3 = scmp.lt.s32.totalorder (!%p665_p2), %s6554_s28, 1  ;;  %s10917_s29 = sld [smem:[#allocation5_spill]] (!%p665_p2) }
  0x10   : > { %668 = sbr.rel (%p665_p2) target bundleno = 4307 (0x10d3), region = 116  ;;  %s7864_s7 = smov (!%p665_p2), 60  }
  0x11   : > { %s7865_s30 = smov (!%p665_p2), 58   ;;  %s7866_s3 = smov (!%p665_p2), 59  }
  0x12   : > { %s10889_s25 = smov (!%p665_p2), 92   ;;  %s7868_s8 = smov (!%p665_p2), 93  }
  0x13   : > { %s10887_s4 = smov (!%p665_p2), 126   ;;  %s7870_s1 = smov (!%p665_p2), 94  }
  0x14   : > { %s10891_s5 = smov (!%p665_p2), 127   ;;  %s10918_s6 = sld [smem:[#allocation7_spill]] (!%p665_p2) }
  0x15   : > { %s10937_s28 = smov (!%p728_p3, %s6554_s28), 1  ;;  %v7871_v12 = vmov 0   ;;  %vm1054_vm0 = vcmask 474112   ;;  %vm976_vm1 = vcmask 490496   ;;  %vm1015_vm2 = vcmask 482304   ;;  %s10919_s2 = sld [smem:[#allocation6_spill]] }
  0x16   : > { %s7130_s23 = smul.u32 80, %s10937_s28  ;;  %1201 = vmatprep.mubr.bf16.mxu0 %v7871_v12  ;;  %1244 = vmatprep.mubr.bf16.mxu1 %v7871_v12  ;;  %vm1141_vm3 = vcmask 1043456   ;;  %vm901_vm4 = vcmask 760832   ;;  %vm937_vm5 = vcmask 752640   ;;  %vm829_vm6 = vcmask 1031168   ;;  %s10920_s9 = sld [smem:[#allocation14_spill]] }
  0x17   : > { %7317 = vset.pattern.permute.xlu1 %v7871_v12  ;;  %7318 = vset.pattern.permute.xlu0 %v7871_v12  ;;  %vm865_vm7 = vcmask 769024   ;;  %vm793_vm8 = vcmask 1039360   ;;  %vm1137_vm9 = vcmask 588800   ;;  %vm7874_vm10 = vmmov 0   ;;  %s7875_s26 = smov 35  }
  0x18   : > { %s8024_s0 = scalar_lea.vmem %s10917_s29, %s7130_s23  ;;  %vm737_vm11 = vcmask 285696   ;;  %vm740_vm12 = vcmask 1048344   ;;  %vm742_vm13 = vcmask 48128   ;;  %vm1555_vm14 = vcmask 1047832   ;;  %s10921_s23 = sld [smem:[#allocation8_spill]] }
  0x19   : > { %v757_v1 = vld [vmem:[%s8024_s0 + $0x8] sm:$0xff]  ;;  %v758_v2 = vld [vmem:[%s8024_s0 + $0x10] sm:$0xff]  ;;  %v756_v3 = vld [vmem:[%s8024_s0] sm:$0xff]  ;;  %vm1564_vm15 = vcmask 809984   ;;  %s7881_s29 = smov 90  }
  0x1a   : > { %v7167_v4 = vpack.i.bf16 %v758_v2, %v757_v1  ;;  %v7157_v5 = vpack.i.bf16 %v757_v1, %v756_v3  ;;  %v759_v6 = vld [vmem:[%s8024_s0 + $0x18] sm:$0xff]  ;;  %v760_v9 = vld [vmem:[%s8024_s0 + $0x20] sm:$0xff]  ;;  %v761_v10 = vld [vmem:[%s8024_s0 + $0x28] sm:$0xff] }
  0x1b   : > { %v7162_v7 = vpack.i.bf16 %v759_v6, %v758_v2  ;;  %v7182_v8 = vpack.i.bf16 %v759_v6, %v756_v3  ;;  %v7207_v11 = vpack.i.bf16 %v761_v10, %v760_v9  ;;  %v762_v13 = vld [vmem:[%s8024_s0 + $0x30] sm:$0xff]  ;;  %v8066_v14 = vld [vmem:[%s8024_s0 + $0x38] sm:$0xff]  ;;  %v764_v15 = vld [vmem:[%s8024_s0 + $0x40] sm:$0xff] }
  0x1c   : > { %7168 = vrot.lane.b32.xlu1 %v7167_v4, %s7864_s7  ;;  %7158 = vrot.lane.b32.xlu0 %v7157_v5, %s7865_s30  ;;  %v7272_v16 = vpack.i.bf16 %v762_v13, %v761_v10  ;;  %v7282_v17 = vpack.i.bf16 %v764_v15, %v8066_v14  ;;  %v765_v18 = vld [vmem:[%s8024_s0 + $0x48] sm:$0xff]  ;;  %v1120_v19 = vld [vmem:[%s10918_s6] sm:$0xff] }
  0x1d   : > { %v1121_v20 = vld [vmem:[%s10918_s6 + $0x8] sm:$0xff]  ;;  %s10930_s6 = smov 110  }
  0x20   : > { %7173 = vrot.lane.b32.xlu1 %v7167_v4, %s7866_s3  ;;  %7163 = vrot.lane.b32.xlu0 %v7162_v7, %s7865_s30 }
  0x24   : > { %7183 = vrot.lane.b32.xlu1 %v7182_v8, %s7866_s3  ;;  %7178 = vrot.lane.b32.xlu0 %v7182_v8, %s7864_s7 }
  0x28   : > { %7193 = vrot.lane.b32.xlu1 %v7167_v4, %s10889_s25  ;;  %7188 = vrot.lane.b32.xlu0 %v7167_v4, %s7868_s8 }
  0x2c   : > { %7203 = vrot.lane.b32.xlu1 %v7182_v8, %s10889_s25  ;;  %7198 = vrot.lane.b32.xlu0 %v7182_v8, %s7868_s8 }
  0x30   : > { %7213 = vrot.lane.b32.xlu1 %v7167_v4, %s10887_s4  ;;  %7208 = vrot.lane.b32.xlu0 %v7207_v11, %s7865_s30 }
  0x34   : > { %7223 = vrot.lane.b32.xlu1 %v7182_v8, %s10887_s4  ;;  %7218 = vrot.lane.b32.xlu0 %v7167_v4, %s7870_s1 }
  0x38   : > { %7233 = vrot.lane.b32.xlu1 %v7207_v11, %s7864_s7  ;;  %7228 = vrot.lane.b32.xlu0 %v7182_v8, %s7870_s1 }
  0x3c   : > { %7243 = vrot.lane.b32.xlu1 %v7167_v4, %s10891_s5  ;;  %7238 = vrot.lane.b32.xlu0 %v7207_v11, %s7866_s3 }
  0x40   : > { %7253 = vrot.lane.b32.xlu1 %v7207_v11, %s7868_s8  ;;  %7248 = vrot.lane.b32.xlu0 %v7182_v8, %s10891_s5 }
  0x44   : > { %1046 = vrot.lane.b32.xlu1 %v762_v13, %s7865_s30  ;;  %7258 = vrot.lane.b32.xlu0 %v7207_v11, %s10889_s25 }
  0x48   : > { %855 = vrot.lane.b32.xlu1 %v760_v9, %s7870_s1  ;;  %7263 = vrot.lane.b32.xlu0 %v7207_v11, %s10887_s4 }
  0x4c   : > { %1007 = vrot.lane.b32.xlu1 %v762_v13, %s7866_s3  ;;  %968 = vrot.lane.b32.xlu0 %v762_v13, %s7864_s7 }
  0x50   : > { %895 = vrot.lane.b32.xlu1 %v762_v13, %s7868_s8  ;;  %783 = vrot.lane.b32.xlu0 %v760_v9, %s10891_s5 }
  0x54   : > { %823 = vrot.lane.b32.xlu1 %v762_v13, %s10887_s4  ;;  %931 = vrot.lane.b32.xlu0 %v762_v13, %s10889_s25 }
  0x58   : > { %7273 = vrot.lane.b32.xlu1 %v7272_v16, %s10891_s5  ;;  %7268 = vrot.lane.b32.xlu0 %v7272_v16, %s7870_s1 }
  0x5c   : > { %7283 = vrot.lane.b32.xlu1 %v7282_v17, %s7864_s7  ;;  %7278 = vrot.lane.b32.xlu0 %v7282_v17, %s7865_s30 }
  0x60   : > { %7293 = vrot.lane.b32.xlu1 %v7282_v17, %s7868_s8  ;;  %7288 = vrot.lane.b32.xlu0 %v7282_v17, %s7866_s3 }
  0x64   : > { %7303 = vrot.lane.b32.xlu1 %v7282_v17, %s10887_s4  ;;  %7298 = vrot.lane.b32.xlu0 %v7282_v17, %s10889_s25 }
  0x68   : > { %7313 = vrot.lane.b32.xlu1 %v7282_v17, %s10891_s5  ;;  %7308 = vrot.lane.b32.xlu0 %v7282_v17, %s7870_s1 }
  0x6c   : > { %974 = vrot.lane.b32.xlu1 %v765_v18, %s7864_s7  ;;  %1052 = vrot.lane.b32.xlu0 %v765_v18, %s7865_s30 }
  0x70   : > { %1013 = vrot.lane.b32.xlu0 %v765_v18, %s7866_s3  ;;  %1124 = vperm.xlu1 %7317, %v1120_v19  }
  0x74   : > { %1129 = vperm.xlu0 %7318, %v1121_v20  }
  0x8e   : > { %v8092_v21 = vpop.permute.xlu1 %7168  ;;  %v7159_v22 = vpop.permute.xlu0 %7158 }
  0x8f   : > { %v7161_v23 = vunpack.i.h.bf16 %v7159_v22  ;;  %v7160_v24 = vunpack.i.l.bf16 %v7159_v22  ;;  %v7171_v25 = vunpack.i.h.bf16 %v8092_v21  ;;  %v7170_v26 = vunpack.i.l.bf16 %v8092_v21 }
  0x91   : > { %v1055_v27 = vsel %vm1054_vm0, %v7160_v24, %v7161_v23  ;;  %v978_v35 = vsel %vm976_vm1, %v7170_v26, %v7171_v25 }
  0x92   : > { %v8097_v28 = vpop.permute.xlu1 %7173  ;;  %v7164_v29 = vpop.permute.xlu0 %7163  ;;  %v1109_v33 = vpack.c.bf16 %v1055_v27, %v1055_v27 }
  0x93   : > { %v7176_v30 = vunpack.i.h.bf16 %v8097_v28  ;;  %v7175_v31 = vunpack.i.l.bf16 %v8097_v28  ;;  %v7165_v32 = vunpack.i.l.bf16 %v7164_v29  ;;  %v7166_v53 = vunpack.i.h.bf16 %v7164_v29 }
  0x94   : > { %v1143_v42 = vsel %vm1141_vm3, %v1109_v33, 0 }
  0x95   : > { %v1056_v34 = vsel %vm1054_vm0, %v7161_v23, %v7165_v32  ;;  %v1017_v36 = vsel %vm1015_vm2, %v7175_v31, %v7176_v30  ;;  %v1057_v63 = vsel %vm1054_vm0, %v7165_v32, %v7166_v53 }
  0x96   : > { %v8108_v37 = vpop.permute.xlu1 %7183  ;;  %v8110_v38 = vpop.permute.xlu0 %7178  ;;  %v1110_v39 = vpack.c.bf16 %v1056_v34, %v1056_v34  ;;  %v1101_v43 = vpack.c.bf16 %v1017_v36, %v978_v35  ;;  %v1111_v6 = vpack.c.bf16 %v1057_v63, %v1057_v63 }
  0x97   : > { %v7185_v40 = vunpack.i.l.bf16 %v8108_v37  ;;  %v7180_v41 = vunpack.i.l.bf16 %v8110_v38  ;;  %v7186_v24 = vunpack.i.h.bf16 %v8108_v37 }
  0x98   : > { %6561 = vmatprep.subr.msk.bf16.mxu0 %vm1141_vm3, %v1110_v39  ;;  %v1149_v16 = vsel %vm1141_vm3, %v1111_v6, 0 }
  0x99   : > { %1176 = vmatpush1.bf16.msra.mxu0 %v1143_v42  ;;  %v977_v44 = vsel %vm976_vm1, %v7180_v41, %v7170_v26  ;;  %v1016_v45 = vsel %vm1015_vm2, %v7185_v40, %v7175_v31  ;;  %v7181_v26 = vunpack.i.h.bf16 %v8110_v38  ;;  %v1018_v40 = vsel %vm1015_vm2, %v7176_v30, %v7186_v24 }
  0x9a   : > { %v8118_v46 = vpop.permute.xlu1 %7193  ;;  %v8120_v47 = vpop.permute.xlu0 %7188  ;;  %1177 = vmatprep.subr.bf16.mxu0 %v1101_v43  ;;  %v1100_v48 = vpack.c.bf16 %v1016_v45, %v977_v44 }
  0x9b   : > { %v7196_v49 = vunpack.i.h.bf16 %v8118_v46  ;;  %v7195_v50 = vunpack.i.l.bf16 %v8118_v46  ;;  %v7191_v51 = vunpack.i.h.bf16 %v8120_v47  ;;  %v7190_v52 = vunpack.i.l.bf16 %v8120_v47 }
  0x9c   : > { %v979_v39 = vsel %vm976_vm1, %v7171_v25, %v7181_v26  ;;  %v7846_v25 = vld [vmem:[%s8024_s0 + $0x8] sm:$0xff] }
  0x9d   : > { %1178 = vmatpush1.bf16.msra.mxu0 %v1100_v48  ;;  %v903_v54 = vsel %vm901_vm4, %v7190_v52, %v7191_v51  ;;  %v939_v55 = vsel %vm937_vm5, %v7195_v50, %v7196_v49  ;;  %v1102_v48 = vpack.c.bf16 %v1018_v40, %v979_v39  ;;  %v7848_v40 = vld [vmem:[%s8024_s0 + $0x18] sm:$0xff] }
  0x9e   : > { %v8132_v56 = vpop.permute.xlu1 %7203  ;;  %v8134_v57 = vpop.permute.xlu0 %7198  ;;  %v1092_v58 = vpack.c.bf16 %v939_v55, %v903_v54 }
  0x9f   : > { %v7205_v59 = vunpack.i.l.bf16 %v8132_v56  ;;  %v7200_v60 = vunpack.i.l.bf16 %v8134_v57 }
  0xa0   : > { %1179 = vmatprep.subr.bf16.mxu0 %v1092_v58 }
  0xa1   : > { %v902_v61 = vsel %vm901_vm4, %v7200_v60, %v7190_v52  ;;  %v938_v62 = vsel %vm937_vm5, %v7205_v59, %v7195_v50  ;;  %v7206_v50 = vunpack.i.h.bf16 %v8132_v56  ;;  %v7201_v52 = vunpack.i.h.bf16 %v8134_v57  ;;  %v7847_v60 = vld [vmem:[%s8024_s0] sm:$0xff] }
  0xa2   : > { %v8141_v0 = vpop.permute.xlu1 %7213  ;;  %v8143_v1 = vpop.permute.xlu0 %7208  ;;  %v1091_v2 = vpack.c.bf16 %v938_v62, %v902_v61  ;;  %v8217_v62 = vld [vmem:[%s10919_s2] sm:$0xff]   ;;  %s10924_s2 = smov 92  }
  0xa3   : > { %v7216_v3 = vunpack.i.h.bf16 %v8141_v0  ;;  %v7215_v4 = vunpack.i.l.bf16 %v8141_v0  ;;  %v7210_v5 = vunpack.i.l.bf16 %v8143_v1  ;;  %v7211_v38 = vunpack.i.h.bf16 %v8143_v1 }
  0xa4   : > { %1180 = vmatpush1.bf16.msra.mxu0 %v1091_v2 }
  0xa5   : > { %v1058_v7 = vsel %vm1054_vm0, %v7166_v53, %v7210_v5  ;;  %v831_v15 = vsel %vm829_vm6, %v7215_v4, %v7216_v3  ;;  %v1059_v53 = vsel %vm1054_vm0, %v7210_v5, %v7211_v38  ;;  %v940_v5 = vsel %vm937_vm5, %v7196_v49, %v7206_v50 }
  0xa6   : > { %v8149_v8 = vpop.permute.xlu1 %7223  ;;  %v8151_v9 = vpop.permute.xlu0 %7218  ;;  %v1112_v10 = vpack.c.bf16 %v1058_v7, %v1058_v7  ;;  %v1113_v63 = vpack.c.bf16 %v1059_v53, %v1059_v53 }
  0xa7   : > { %v7221_v11 = vunpack.i.h.bf16 %v8151_v9  ;;  %v7220_v13 = vunpack.i.l.bf16 %v8151_v9  ;;  %v7225_v17 = vunpack.i.l.bf16 %v8149_v8  ;;  %v7226_v6 = vunpack.i.h.bf16 %v8149_v8 }
  0xa8   : > { %6563 = vmatprep.subr.msk.bf16.mxu1 %vm1141_vm3, %v1112_v10 }
  0xa9   : > { %1219 = vmatpush1.bf16.msra.mxu1 %v1149_v16  ;;  %v867_v18 = vsel %vm865_vm7, %v7220_v13, %v7221_v11  ;;  %v830_v29 = vsel %vm829_vm6, %v7225_v17, %v7215_v4  ;;  %v904_v4 = vsel %vm901_vm4, %v7191_v51, %v7201_v52  ;;  %v1155_v51 = vsel %vm1141_vm3, %v1113_v63, 0 }
  0xaa   : > { %v8164_v19 = vpop.permute.xlu1 %7233  ;;  %v8166_v20 = vpop.permute.xlu0 %7228  ;;  %v1083_v22 = vpack.c.bf16 %v867_v18, %v831_v15  ;;  %v1093_v8 = vpack.c.bf16 %v940_v5, %v904_v4 }
  0xab   : > { %v7230_v23 = vunpack.i.l.bf16 %v8166_v20  ;;  %v7235_v27 = vunpack.i.l.bf16 %v8164_v19  ;;  %v7231_v1 = vunpack.i.h.bf16 %v8166_v20 }
  0xac   : > { %1181 = vmatprep.subr.bf16.mxu0 %v1083_v22  ;;  %v832_v22 = vsel %vm829_vm6, %v7216_v3, %v7226_v6 }
  0xad   : > { %v866_v31 = vsel %vm865_vm7, %v7230_v23, %v7220_v13  ;;  %v980_v41 = vsel %vm976_vm1, %v7181_v26, %v7235_v27  ;;  %v7236_v13 = vunpack.i.h.bf16 %v8164_v19  ;;  %v868_v17 = vsel %vm865_vm7, %v7221_v11, %v7231_v1 }
  0xae   : > { %v8174_v32 = vpop.permute.xlu1 %7243  ;;  %v8176_v33 = vpop.permute.xlu0 %7238  ;;  %v1082_v34 = vpack.c.bf16 %v866_v31, %v830_v29  ;;  %v1084_v19 = vpack.c.bf16 %v868_v17, %v832_v22 }
  0xaf   : > { %v7246_v35 = vunpack.i.h.bf16 %v8174_v32  ;;  %v7245_v36 = vunpack.i.l.bf16 %v8174_v32  ;;  %v7240_v37 = vunpack.i.l.bf16 %v8176_v33  ;;  %v7241_v15 = vunpack.i.h.bf16 %v8176_v33 }
  0xb0   : > { %1182 = vmatpush1.bf16.msra.mxu0 %v1082_v34  ;;  %v981_v23 = vsel %vm976_vm1, %v7235_v27, %v7236_v13 }
  0xb1   : > { %v1019_v42 = vsel %vm1015_vm2, %v7186_v24, %v7240_v37  ;;  %v795_v43 = vsel %vm793_vm8, %v7245_v36, %v7246_v35  ;;  %v1020_v9 = vsel %vm1015_vm2, %v7240_v37, %v7241_v15 }
  0xb2   : > { %v8195_v44 = vpop.permute.xlu1 %7253  ;;  %v8197_v45 = vpop.permute.xlu0 %7248  ;;  %v1103_v21 = vpack.c.bf16 %v1019_v42, %v980_v41  ;;  %v1074_v28 = vpack.c.bf16 %v795_v43, %v7846_v25  ;;  %v1104_v31 = vpack.c.bf16 %v1020_v9, %v981_v23  ;;  %v7849_v42 = vld [vmem:[%s8024_s0 + $0x10] sm:$0xff] }
  0xb3   : > { %v7250_v30 = vunpack.i.l.bf16 %v8197_v45  ;;  %v7255_v54 = vunpack.i.l.bf16 %v8195_v44  ;;  %v7251_v11 = vunpack.i.h.bf16 %v8197_v45  ;;  %v7256_v33 = vunpack.i.h.bf16 %v8195_v44 }
  0xb4   : > { %1220 = vmatprep.subr.bf16.mxu1 %v1103_v21  ;;  %1183 = vmatprep.subr.bf16.mxu0 %v1074_v28 }
  0xb5   : > { %1221 = vmatpush1.bf16.msra.mxu1 %v1102_v48  ;;  %v794_v55 = vsel %vm793_vm8, %v7250_v30, %v7245_v36  ;;  %v905_v7 = vsel %vm901_vm4, %v7201_v52, %v7255_v54  ;;  %v906_v45 = vsel %vm901_vm4, %v7255_v54, %v7256_v33 }
  0xb6   : > { %v8206_v58 = vpop.permute.xlu1 %1046  ;;  %v8208_v59 = vpop.permute.xlu0 %7258  ;;  %v1073_v61 = vpack.c.bf16 %v794_v55, %v7847_v60 }
  0xb7   : > { %v1060_v56 = vsel %vm1054_vm0, %v7211_v38, %v8206_v58  ;;  %v7260_v57 = vunpack.i.l.bf16 %v8208_v59  ;;  %v7261_v34 = vunpack.i.h.bf16 %v8208_v59  ;;  %v796_v38 = vsel %vm793_vm8, %v7246_v35, %v7251_v11 }
  0xb8   : > { %v1114_v2 = vpack.c.bf16 %v1060_v56, %v1060_v56  ;;  %1184 = vmatpush1.bf16.msra.mxu0 %v1073_v61  ;;  %v1075_v43 = vpack.c.bf16 %v796_v38, %v7849_v42 }
  0xb9   : > { %v941_v10 = vsel %vm937_vm5, %v7206_v50, %v7260_v57  ;;  %v942_v21 = vsel %vm937_vm5, %v7260_v57, %v7261_v34 }
  0xba   : > { %v8233_v16 = vpop.permute.xlu1 %855  ;;  %v8235_v47 = vpop.permute.xlu0 %7263  ;;  %6565 = vmatprep.subr.msk.bf16.mxu0 %vm1141_vm3, %v1114_v2  ;;  %v1094_v46 = vpack.c.bf16 %v941_v10, %v905_v7  ;;  %v1095_v44 = vpack.c.bf16 %v942_v21, %v906_v45 }
  0xbb   : > { %v7265_v49 = vunpack.i.l.bf16 %v8235_v47  ;;  %6562 = vmatmul.mubr.msk.bf16.vlgmr.msra.gmra.mxu0 %vm1137_vm9, %v8217_v62  ;;  %v869_v18 = vsel %vm865_vm7, %v7231_v1, %v8233_v16  ;;  %v7266_v30 = vunpack.i.h.bf16 %v8235_v47 }
  0xbc   : > { %1222 = vmatprep.subr.bf16.mxu1 %v1094_v46  ;;  %1262 = vmatpush1.bf16.msra.mxu0 %v1155_v51 }
  0xbd   : > { %1223 = vmatpush1.bf16.msra.mxu1 %v1093_v8  ;;  %v833_v20 = vsel %vm829_vm6, %v7226_v6, %v7265_v49  ;;  %1287 = vmatprep.mubr.bf16.mxu0 %v7871_v12  ;;  %v834_v60 = vsel %vm829_vm6, %v7265_v49, %v7266_v30  ;;  %v7850_v6 = vld [vmem:[%s8024_s0 + $0x28] sm:$0xff] }
  0xbe   : > { %v8257_v24 = vpop.permute.xlu1 %1007  ;;  %v8259_v26 = vpop.permute.xlu0 %968  ;;  %v1085_v29 = vpack.c.bf16 %v869_v18, %v833_v20  ;;  %v7851_v18 = vld [vmem:[%s8024_s0 + $0x20] sm:$0xff] }
  0xbf   : > { %v1021_v0 = vsel %vm1015_vm2, %v7241_v15, %v8257_v24  ;;  %v982_v3 = vsel %vm976_vm1, %v7236_v13, %v8259_v26 }
  0xc0   : > { %1224 = vmatprep.subr.bf16.mxu1 %v1085_v29  ;;  %v1105_v27 = vpack.c.bf16 %v1021_v0, %v982_v3 }
  0xc1   : > { %1225 = vmatpush1.bf16.msra.mxu1 %v1084_v19 }
  0xc2   : > { %v8267_v36 = vpop.permute.xlu1 %895  ;;  %v784_v37 = vpop.permute.xlu0 %783  ;;  %1263 = vmatprep.subr.bf16.mxu0 %v1105_v27 }
  0xc3   : > { %v797_v39 = vsel %vm793_vm8, %v7251_v11, %v784_v37  ;;  %1264 = vmatpush1.bf16.msra.mxu0 %v1104_v31  ;;  %v907_v32 = vsel %vm901_vm4, %v7256_v33, %v8267_v36 }
  0xc4   : > { %v1076_v41 = vpack.c.bf16 %v797_v39, %v7848_v40  ;;  %v10893_v39 = vmov 0.0  }
  0xc5   : > { %738 = vst.msk [vmem:[#allocation2] sm:$0xff] %vm737_vm11, %v10893_v39  ;;  %739 = vst.msk [vmem:[#allocation2 + $0x50] sm:$0xff] %vm737_vm11, %v10893_v39 }
  0xc6   : > { %v8279_v25 = vpop.permute.xlu1 %823  ;;  %v8281_v28 = vpop.permute.xlu0 %931  ;;  %1226 = vmatprep.subr.bf16.mxu1 %v1076_v41  ;;  %741 = vst.msk [vmem:[#allocation2 + $0x40] sm:$0xff] %vm740_vm12, %v10893_v39  ;;  %744 = vst.msk [vmem:[#allocation2 + $0x90] sm:$0xff] %vm740_vm12, %v10893_v39  ;;  %vm4564_vm12 = vcmask 891904  }
  0xc7   : > { %v943_v35 = vsel %vm937_vm5, %v7261_v34, %v8281_v28  ;;  %1227 = vmatpush1.bf16.msra.mxu1 %v1075_v43  ;;  %v835_v61 = vsel %vm829_vm6, %v7266_v30, %v8279_v25  ;;  %743 = vst.msk [vmem:[#allocation2 + $0x48] sm:$0xff] %vm742_vm13, %v10893_v39  ;;  %745 = vst.msk [vmem:[#allocation2 + $0x98] sm:$0xff] %vm742_vm13, %v10893_v39  ;;  %vm4552_vm13 = vcmask 900096  }
  0xc8   : > { %v1096_v48 = vpack.c.bf16 %v943_v35, %v907_v32 }
  0xca   : > { %v8288_v50 = vpop.permute.xlu1 %7273  ;;  %v8290_v52 = vpop.permute.xlu0 %7268  ;;  %6564 = vmatmul.mubr.msk.bf16.vlgmr.msra.gmra.mxu1 %vm1137_vm9, %v8217_v62  ;;  %1265 = vmatprep.subr.bf16.mxu0 %v1096_v48 }
  0xcb   : > { %v7276_v53 = vunpack.i.h.bf16 %v8288_v50  ;;  %v7275_v54 = vunpack.i.l.bf16 %v8288_v50  ;;  %v7271_v55 = vunpack.i.h.bf16 %v8290_v52  ;;  %v7270_v59 = vunpack.i.l.bf16 %v8290_v52  ;;  %1266 = vmatpush1.bf16.msra.mxu0 %v1095_v44  ;;  %1330 = vmatprep.mubr.bf16.mxu1 %v7871_v12  ;;  %v7852_v50 = vld [vmem:[%s8024_s0 + $0x30] sm:$0xff] }
  0xcd   : > { %v870_v56 = vsel %vm865_vm7, %v8233_v16, %v7270_v59  ;;  %v871_v57 = vsel %vm865_vm7, %v7270_v59, %v7271_v55  ;;  %v799_v63 = vsel %vm793_vm8, %v7275_v54, %v7276_v53  ;;  %v798_v10 = vsel %vm793_vm8, %v784_v37, %v7275_v54 }
  0xce   : > { %v8310_v1 = vpop.permute.xlu1 %7283  ;;  %v8312_v2 = vpop.permute.xlu0 %7278  ;;  %v1087_v4 = vpack.c.bf16 %v871_v57, %v835_v61  ;;  %v1086_v5 = vpack.c.bf16 %v870_v56, %v834_v60  ;;  %v1078_v7 = vpack.c.bf16 %v799_v63, %v7850_v6  ;;  %v1077_v20 = vpack.c.bf16 %v798_v10, %v7851_v18 }
  0xcf   : > { %v7286_v13 = vunpack.i.h.bf16 %v8310_v1  ;;  %v7281_v15 = vunpack.i.h.bf16 %v8312_v2  ;;  %v7280_v16 = vunpack.i.l.bf16 %v8312_v2  ;;  %v7285_v47 = vunpack.i.l.bf16 %v8310_v1 }
  0xd0   : > { %1267 = vmatprep.subr.bf16.mxu0 %v1087_v4 }
  0xd1   : > { %1268 = vmatpush1.bf16.msra.mxu0 %v1086_v5  ;;  %v1062_v46 = vsel %vm1054_vm0, %v7280_v16, %v7281_v15  ;;  %v1061_v49 = vsel %vm1054_vm0, %v8206_v58, %v7280_v16  ;;  %v984_v23 = vsel %vm976_vm1, %v7285_v47, %v7286_v13  ;;  %v983_v3 = vsel %vm976_vm1, %v8259_v26, %v7285_v47 }
  0xd2   : > { %v8325_v51 = vpop.permute.xlu1 %7293  ;;  %v8327_v8 = vpop.permute.xlu0 %7288  ;;  %1269 = vmatprep.subr.bf16.mxu0 %v1078_v7  ;;  %v1116_v17 = vpack.c.bf16 %v1062_v46, %v1062_v46  ;;  %v1115_v22 = vpack.c.bf16 %v1061_v49, %v1061_v49  ;;  %v1404_v46 = vlaneseq }
  0xd3   : > { %v7296_v9 = vunpack.i.h.bf16 %v8325_v51  ;;  %v7295_v11 = vunpack.i.l.bf16 %v8325_v51  ;;  %v7291_v29 = vunpack.i.h.bf16 %v8327_v8  ;;  %v7290_v58 = vunpack.i.l.bf16 %v8327_v8 }
  0xd4   : > { %6567 = vmatprep.subr.msk.bf16.mxu1 %vm1141_vm3, %v1116_v17  ;;  %v1161_v0 = vsel %vm1141_vm3, %v1115_v22, 0  ;;  %v8393_v49 = vshrl.u32 %v1404_v46, 7  ;;  %v8403_v17 = vld [vmem:[%s10920_s9] sm:$0xff] }
  0xd5   : > { %v1022_v19 = vsel %vm1015_vm2, %v8257_v24, %v7290_v58  ;;  %1270 = vmatpush1.bf16.msra.mxu0 %v1077_v20  ;;  %1305 = vmatpush1.bf16.msra.mxu1 %v1161_v0  ;;  %v1023_v27 = vsel %vm1015_vm2, %v7290_v58, %v7291_v29  ;;  %v908_v31 = vsel %vm901_vm4, %v8267_v36, %v7295_v11 }
  0xd6   : > { %v7304_v33 = vpop.permute.xlu1 %7303  ;;  %v7299_v34 = vpop.permute.xlu0 %7298  ;;  %v1107_v37 = vpack.c.bf16 %v1023_v27, %v984_v23  ;;  %v1106_v38 = vpack.c.bf16 %v1022_v19, %v983_v3  ;;  %7058 = vmatprep.subr.bf16.mxu0 %v10893_v39  ;;  %v909_v24 = vsel %vm901_vm4, %v7295_v11, %v7296_v9  ;;  %v8396_v51 = vsub.s32 0, %v8393_v49 }
  0xd7   : > { %v7305_v40 = vunpack.i.l.bf16 %v7304_v33  ;;  %v7301_v41 = vunpack.i.h.bf16 %v7299_v34  ;;  %v7300_v26 = vunpack.i.l.bf16 %v7299_v34  ;;  %v7306_v42 = vunpack.i.h.bf16 %v7304_v33 }
  0xd8   : > { %6566 = vmatmul.mubr.msk.bf16.vlgmr.msra.gmra.mxu0 %vm1137_vm9, %v8217_v62  ;;  %1306 = vmatprep.subr.bf16.mxu1 %v1107_v37  ;;  %v1407_v20 = vrot.slane %v8403_v17, %v8396_v51  ;;  %v8409_v22 = vsub.s32 1, %v8393_v49  ;;  %v8420_v34 = vsub.s32 2, %v8393_v49  ;;  %v1430_v46 = vsub.s32 6, %v8393_v49 }
  0xd9   : > { %v944_v36 = vsel %vm937_vm5, %v8281_v28, %v7300_v26  ;;  %1307 = vmatpush1.bf16.msra.mxu1 %v1106_v38  ;;  %v945_v43 = vsel %vm937_vm5, %v7300_v26, %v7301_v41  ;;  %v836_v45 = vsel %vm829_vm6, %v8279_v25, %v7305_v40  ;;  %7068 = vmatprep.mubr.msk.bf16.mxu0 %vm7874_vm10, %v10893_v39 }
  0xda   : > { %v7314_v21 = vpop.permute.xlu1 %7313  ;;  %v7309_v32 = vpop.permute.xlu0 %7308  ;;  %v1098_v35 = vpack.c.bf16 %v945_v43, %v909_v24  ;;  %v1097_v30 = vpack.c.bf16 %v944_v36, %v908_v31  ;;  %v837_v28 = vsel %vm829_vm6, %v7305_v40, %v7306_v42  ;;  %v1411_v19 = vrot.slane %v8403_v17, %v8409_v22 }
  0xdb   : > { %v7316_v48 = vunpack.i.h.bf16 %v7314_v21  ;;  %v7315_v44 = vunpack.i.l.bf16 %v7314_v21  ;;  %v7311_v54 = vunpack.i.h.bf16 %v7309_v32  ;;  %v7310_v59 = vunpack.i.l.bf16 %v7309_v32 }
  0xdc   : > { %1308 = vmatprep.subr.bf16.mxu1 %v1098_v35  ;;  %v1415_v24 = vrot.slane %v8403_v17, %v8420_v34  ;;  %v1418_v43 = vsub.s32 3, %v8393_v49 }
  0xdd   : > { %v872_v60 = vsel %vm865_vm7, %v7271_v55, %v7310_v59  ;;  %1309 = vmatpush1.bf16.msra.mxu1 %v1097_v30  ;;  %v873_v56 = vsel %vm865_vm7, %v7310_v59, %v7311_v54  ;;  %v801_v63 = vsel %vm793_vm8, %v7315_v44, %v7316_v48  ;;  %v800_v4 = vsel %vm793_vm8, %v7276_v53, %v7315_v44 }
  0xde   : > { %v975_v25 = vpop.permute.xlu1 %974  ;;  %v1053_v61 = vpop.permute.xlu0 %1052  ;;  %v1088_v57 = vpack.c.bf16 %v872_v60, %v836_v45  ;;  %v1089_v52 = vpack.c.bf16 %v873_v56, %v837_v28  ;;  %v1080_v55 = vpack.c.bf16 %v801_v63, %v8066_v14  ;;  %v1079_v53 = vpack.c.bf16 %v800_v4, %v7852_v50 }
  0xdf   : > { %v1063_v5 = vsel %vm1054_vm0, %v7281_v15, %v1053_v61  ;;  %v985_v7 = vsel %vm976_vm1, %v7286_v13, %v975_v25  ;;  %v1099_v14 = vpack.c.bf16 %v7301_v41, %v7296_v9  ;;  %v1090_v1 = vpack.c.bf16 %v7311_v54, %v7306_v42  ;;  %v7853_v13 = vld [vmem:[%s8024_s0 + $0x40] sm:$0xff]  ;;  %s10926_s0 = smov 126  }
  0xe0   : > { %v1117_v6 = vpack.c.bf16 %v1063_v5, %v1063_v5  ;;  %1310 = vmatprep.subr.bf16.mxu1 %v1089_v52  ;;  %v1081_v47 = vpack.c.bf16 %v7316_v48, %v7853_v13  ;;  %v1419_v54 = vrot.slane %v8403_v17, %v1418_v43  ;;  %v1422_v61 = vsub.s32 4, %v8393_v49 }
  0xe1   : > { %1311 = vmatpush1.bf16.msra.mxu1 %v1088_v57  ;;  %v1426_v63 = vsub.s32 5, %v8393_v49 }
  0xe2   : > { %v1014_v10 = vpop.permute.xlu0 %1013  ;;  %v1167_v16 = vsel %vm1141_vm3, %v1117_v6, 0  ;;  %1312 = vmatprep.subr.bf16.mxu1 %v1080_v55  ;;  %v1423_v52 = vrot.slane %v8403_v17, %v1422_v61  ;;  %vm1935_vm3 = vcmask 130048  }
  0xe3   : > { %v1024_v2 = vsel %vm1015_vm2, %v7291_v29, %v1014_v10  ;;  %7059 = vmatpush3.bf16.msra.mxu0 %v1167_v16  ;;  %v1427_v16 = vrot.slane %v8403_v17, %v1426_v63 }
  0xe4   : > { %v1108_v15 = vpack.c.bf16 %v1024_v2, %v985_v7  ;;  %7060 = vmatprep.subr.bf16.mxu0 %v10893_v39 }
  0xe5   : > { %1313 = vmatpush1.bf16.msra.mxu1 %v1079_v53 }
  0xe7   : > { %7061 = vmatpush3.bf16.msra.mxu0 %v1108_v15 }
  0xe8   : > { %7062 = vmatprep.subr.bf16.mxu0 %v10893_v39  ;;  %6568 = vmatmul.mubr.msk.bf16.vlgmr.msra.gmra.mxu1 %vm1137_vm9, %v8217_v62 }
  0xeb   : > { %7063 = vmatpush3.bf16.msra.mxu0 %v1099_v14  ;;  %v8398_v8 = vpop.permute.xlu1 %1124 }
  0xec   : > { %7064 = vmatprep.subr.bf16.mxu0 %v10893_v39 }
  0xef   : > { %7065 = vmatpush3.bf16.msra.mxu0 %v1090_v1  ;;  %v8411_v9 = vpop.permute.xlu0 %1129 }
  0xf0   : > { %7066 = vmatprep.subr.bf16.mxu0 %v10893_v39 }
  0xf3   : > { %7067 = vmatpush3.bf16.msra.mxu0 %v1081_v47 }
  0xf6   : > { %7069 = vmatmul.mubr.msk.bf16.vlgmr.msra.gmra.mxu0 %vm1137_vm9, %v8217_v62  ;;  %vm4599_vm9 = vcmask 744448  }
 0x17b   : > { %v1203_v62 = vpop.f32.mrf.mxu0 }
 0x17c   : > { %v1204_v18 = vadd.f32 %v1203_v62, %v8398_v8 }
 0x17d   : > { %v1205_v23 = vpop.f32.mrf.mxu0 }
 0x17e   : > { %v1382_v11 = vmax.f32 %v1204_v18, 0.0  ;;  %v1206_v29 = vadd.f32 %v1205_v23, %v8398_v8  ;;  %v1431_v23 = vrot.slane %v8403_v17, %v1430_v46 }
 0x17f   : > { %v1207_v58 = vpop.f32.mrf.mxu0 }
 0x180   : > { %v1449_v0 = vmul.f32 %v1407_v20, %v1382_v11  ;;  %v1383_v3 = vmax.f32 %v1206_v29, 0.0  ;;  %v1208_v27 = vadd.f32 %v1207_v58, %v8411_v9 }
 0x181   : > { %v1209_v38 = vpop.f32.mrf.mxu0 }
 0x182   : > { %1485 = vrot.lane.b32.xlu1 %v1449_v0, %s7875_s26  ;;  %v1450_v31 = vmul.f32 %v1411_v19, %v1383_v3  ;;  %v1391_v33 = vmax.f32 %v1208_v27, 0.0  ;;  %v1210_v41 = vadd.f32 %v1209_v38, %v8411_v9 }
 0x184   : > { %v1458_v37 = vmul.f32 %v1407_v20, %v1391_v33  ;;  %v1392_v21 = vmax.f32 %v1210_v41, 0.0 }
 0x186   : > { %1487 = vrot.lane.b32.xlu1 %v1450_v31, %s7875_s26  ;;  %v1459_v59 = vmul.f32 %v1411_v19, %v1392_v21  ;;  %v1434_v19 = vsub.s32 7, %v8393_v49 }
 0x18a   : > { %v1246_v40 = vpop.f32.mrf.mxu1  ;;  %1503 = vrot.lane.b32.xlu1 %v1458_v37, %s7875_s26  ;;  %v1435_v37 = vrot.slane %v8403_v17, %v1434_v19 }
 0x18b   : > { %v1247_v26 = vadd.f32 %v1246_v40, %v8398_v8 }
 0x18c   : > { %v1248_v42 = vpop.f32.mrf.mxu1 }
 0x18d   : > { %v1384_v36 = vmax.f32 %v1247_v26, 0.0  ;;  %v1249_v35 = vadd.f32 %v1248_v42, %v8398_v8 }
 0x18e   : > { %v1250_v45 = vpop.f32.mrf.mxu1 }
 0x18f   : > { %v1451_v32 = vmul.f32 %v1415_v24, %v1384_v36  ;;  %v1251_v30 = vadd.f32 %v1250_v45, %v8411_v9  ;;  %v1385_v28 = vmax.f32 %v1249_v35, 0.0  ;;  %v6570_v45 = vld [vmem:[%s10920_s9 + $0x8] ss:$0 sm:$0xff] }
 0x190   : > { %v1252_v48 = vpop.f32.mrf.mxu1 }
 0x191   : > { %v1393_v44 = vmax.f32 %v1251_v30, 0.0  ;;  %1489 = vrot.lane.b32.xlu0 %v1451_v32, %s7875_s26  ;;  %v1253_v25 = vadd.f32 %v1252_v48, %v8411_v9  ;;  %v1452_v56 = vmul.f32 %v1419_v54, %v1385_v28 }
 0x193   : > { %v1460_v60 = vmul.f32 %v1415_v24, %v1393_v44  ;;  %v1394_v57 = vmax.f32 %v1253_v25, 0.0 }
 0x195   : > { %1505 = vrot.lane.b32.xlu0 %v1459_v59, %s7875_s26  ;;  %1507 = vrot.lane.b32.xlu1 %v1460_v60, %s7875_s26  ;;  %v1461_v6 = vmul.f32 %v1419_v54, %v1394_v57 }
 0x198   : > { %v1289_v4 = vpop.f32.mrf.mxu0 }
 0x199   : > { %v1290_v5 = vadd.f32 %v1289_v4, %v8398_v8  ;;  %1491 = vrot.lane.b32.xlu0 %v1452_v56, %s7875_s26 }
 0x19a   : > { %v1291_v55 = vpop.f32.mrf.mxu0 }
 0x19b   : > { %v1386_v7 = vmax.f32 %v1290_v5, 0.0  ;;  %v1292_v10 = vadd.f32 %v1291_v55, %v8398_v8 }
 0x19c   : > { %v1293_v50 = vpop.f32.mrf.mxu0 }
 0x19d   : > { %v1453_v53 = vmul.f32 %v1423_v52, %v1386_v7  ;;  %v1387_v2 = vmax.f32 %v1292_v10, 0.0  ;;  %1509 = vrot.lane.b32.xlu0 %v1461_v6, %s7875_s26  ;;  %v1294_v18 = vadd.f32 %v1293_v50, %v8411_v9 }
 0x19e   : > { %v1295_v15 = vpop.f32.mrf.mxu0 }
 0x19f   : > { %v1454_v14 = vmul.f32 %v1427_v16, %v1387_v2  ;;  %v1296_v1 = vadd.f32 %v1295_v15, %v8411_v9  ;;  %1493 = vrot.lane.b32.xlu1 %v1453_v53, %s7875_s26  ;;  %v1395_v58 = vmax.f32 %v1294_v18, 0.0 }
 0x1a1   : > { %v1396_v13 = vmax.f32 %v1296_v1, 0.0  ;;  %1495 = vrot.lane.b32.xlu0 %v1454_v14, %s7875_s26  ;;  %v1462_v31 = vmul.f32 %v1423_v52, %v1395_v58 }
 0x1a3   : > { %v1463_v47 = vmul.f32 %v1427_v16, %v1396_v13 }
 0x1a5   : > { %1513 = vrot.lane.b32.xlu0 %v1463_v47, %s7875_s26 }
 0x1a8   : > { %v1332_v62 = vpop.f32.mrf.mxu1 }
 0x1a9   : > { %v1333_v20 = vadd.f32 %v1332_v62, %v8398_v8 }
 0x1aa   : > { %v1334_v11 = vpop.f32.mrf.mxu1 }
 0x1ab   : > { %v1388_v29 = vmax.f32 %v1333_v20, 0.0  ;;  %v1335_v3 = vadd.f32 %v1334_v11, %v8398_v8 }
 0x1ac   : > { %v1336_v27 = vpop.f32.mrf.mxu1 }
 0x1ad   : > { %v1455_v0 = vmul.f32 %v1431_v23, %v1388_v29  ;;  %v1389_v33 = vmax.f32 %v1335_v3, 0.0  ;;  %v1337_v38 = vadd.f32 %v1336_v27, %v8411_v9 }
 0x1ae   : > { %v1338_v40 = vpop.f32.mrf.mxu1 }
 0x1af   : > { %1497 = vrot.lane.b32.xlu1 %v1455_v0, %s7875_s26  ;;  %v1456_v41 = vmul.f32 %v1435_v37, %v1389_v33  ;;  %v1397_v26 = vmax.f32 %v1337_v38, 0.0  ;;  %v1339_v24 = vadd.f32 %v1338_v40, %v8411_v9  ;;  %v8574_v40 = vld [vmem:[%s10921_s23 + $0x4] ss:$8 sps:$4 sm:$0xff]  }
 0x1b0   : > { %6573 = vmatprep.mubr.msk.bf16.mxu1 %vm1935_vm3, %v8574_v40  ;;  %6574 = vmatprep.mubr.msk.bf16.mxu0 %vm1935_vm3, %v8574_v40 }
 0x1b1   : > { %v1464_v32 = vmul.f32 %v1431_v23, %v1397_v26  ;;  %v1398_v35 = vmax.f32 %v1339_v24, 0.0 }
 0x1b3   : > { %1511 = vrot.lane.b32.xlu1 %v1462_v31, %s7875_s26 }
 0x1b6   : > { %v1375_v42 = vpop.f32.mrf.mxu0 }
 0x1b7   : > { %v1376_v36 = vadd.f32 %v1375_v42, %v8398_v8  ;;  %1499 = vrot.lane.b32.xlu1 %v1456_v41, %s7875_s26  ;;  %v1465_v8 = vmul.f32 %v1435_v37, %v1398_v35 }
 0x1b8   : > { %v7070_v21 = vpop.f32.mrf.mxu0 }
 0x1b9   : > { %v1390_v17 = vmax.f32 %v1376_v36, 0.0  ;;  %v1602_v21 = vld [vmem:[#allocation2 + $0x48] sm:$0xff] }
 0x1ba   : > { %v1378_v30 = vpop.f32.mrf.mxu0 }
 0x1bb   : > { %v1457_v48 = vmul.f32 %v6570_v45, %v1390_v17  ;;  %v1379_v44 = vadd.f32 %v1378_v30, %v8411_v9  ;;  %1515 = vrot.lane.b32.xlu1 %v1464_v32, %s7875_s26  ;;  %v1603_v17 = vld [vmem:[#allocation2 + $0x98] sm:$0xff] }
 0x1bc   : > { %v7071_v54 = vpop.f32.mrf.mxu0  ;;  %v1604_v35 = vpack.c.bf16 %v1603_v17, %v1602_v21 }
 0x1bd   : > { %v1399_v59 = vmax.f32 %v1379_v44, 0.0  ;;  %1501 = vrot.lane.b32.xlu0 %v1457_v48, %s7875_s26 }
 0x1bf   : > { %v1466_v28 = vmul.f32 %v6570_v45, %v1399_v59  ;;  %1517 = vrot.lane.b32.xlu1 %v1465_v8, %s7875_s26 }
 0x1c1   : > { %1519 = vrot.lane.b32.xlu0 %v1466_v28, %s7875_s26 }
 0x1f4   : > { %v1486_v60 = vpop.permute.xlu1 %1485 }
 0x1f5   : > { %1556 = vst.msk [vmem:[#allocation2] sm:$0xff] %vm1555_vm14, %v1486_v60 }
 0x1f8   : > { %v1488_v9 = vpop.permute.xlu1 %1487 }
 0x1f9   : > { %v1521_v53 = vsel %vm737_vm11, %v1486_v60, %v1488_v9 }
 0x1fc   : > { %v1504_v25 = vpop.permute.xlu1 %1503  ;;  %v1575_v56 = vld [vmem:[#allocation2] sm:$0xff] }
 0x1fd   : > { %1566 = vst.msk [vmem:[#allocation2 + $0x50] sm:$0xff] %vm1555_vm14, %v1504_v25 }
 0x203   : > { %v1490_v5 = vpop.permute.xlu0 %1489 }
 0x204   : > { %v1584_v57 = vld [vmem:[#allocation2 + $0x50] sm:$0xff]  ;;  %v1522_v7 = vsel %vm737_vm11, %v1488_v9, %v1490_v5 }
 0x205   : > { %v8484_v4 = vpack.c.bf16 %v1584_v57, %v1575_v56 }
 0x207   : > { %1795 = vrot.lane.b32.xlu1 %v8484_v4, %s7864_s7  ;;  %1834 = vrot.lane.b32.xlu0 %v8484_v4, %s7866_s3  ;;  %v1506_v52 = vpop.permute.xlu0 %1505  ;;  %v1508_v55 = vpop.permute.xlu1 %1507 }
 0x208   : > { %v1530_v6 = vsel %vm737_vm11, %v1506_v52, %v1508_v55  ;;  %v1529_v50 = vsel %vm737_vm11, %v1504_v25, %v1506_v52 }
 0x209   : > { %v8500_v10 = vpack.c.bf16 %v1530_v6, %v1522_v7  ;;  %v8508_v2 = vpack.c.bf16 %v1529_v50, %v1521_v53 }
 0x20b   : > { %1722 = vrot.lane.b32.xlu1 %v8484_v4, %s7868_s8  ;;  %1758 = vrot.lane.b32.xlu0 %v8484_v4, %s10889_s25  ;;  %v1492_v16 = vpop.permute.xlu0 %1491 }
 0x20c   : > { %v1523_v1 = vsel %vm737_vm11, %v1490_v5, %v1492_v16 }
 0x20f   : > { %1650 = vrot.lane.b32.xlu1 %v8484_v4, %s10887_s4  ;;  %1686 = vrot.lane.b32.xlu0 %v8484_v4, %s7870_s1  ;;  %v1510_v15 = vpop.permute.xlu0 %1509 }
 0x210   : > { %v1531_v14 = vsel %vm737_vm11, %v1508_v55, %v1510_v15 }
 0x211   : > { %v8520_v13 = vpack.c.bf16 %v1531_v14, %v1523_v1  ;;  %v1494_v47 = vpop.permute.xlu1 %1493 }
 0x212   : > { %v1524_v37 = vsel %vm737_vm11, %v1492_v16, %v1494_v47 }
 0x213   : > { %1614 = vrot.lane.b32.xlu0 %v8484_v4, %s10891_s5  ;;  %1838 = vrot.lane.b32.xlu1 %v8500_v10, %s7866_s3  ;;  %v1496_v18 = vpop.permute.xlu0 %1495 }
 0x214   : > { %v1525_v24 = vsel %vm737_vm11, %v1494_v47, %v1496_v18 }
 0x217   : > { %1836 = vrot.lane.b32.xlu0 %v8508_v2, %s7866_s3  ;;  %1797 = vrot.lane.b32.xlu1 %v8508_v2, %s7864_s7  ;;  %v1514_v11 = vpop.permute.xlu0 %1513 }
 0x21b   : > { %1799 = vrot.lane.b32.xlu0 %v8500_v10, %s7864_s7  ;;  %1762 = vrot.lane.b32.xlu1 %v8500_v10, %s10889_s25 }
 0x21f   : > { %1760 = vrot.lane.b32.xlu0 %v8508_v2, %s10889_s25  ;;  %1840 = vrot.lane.b32.xlu1 %v8520_v13, %s7866_s3 }
 0x221   : > { %v8526_v62 = vpop.permute.xlu1 %1497 }
 0x222   : > { %v1526_v42 = vsel %vm737_vm11, %v1496_v18, %v8526_v62 }
 0x223   : > { %1726 = vrot.lane.b32.xlu0 %v8500_v10, %s7868_s8  ;;  %1724 = vrot.lane.b32.xlu1 %v8508_v2, %s7868_s8 }
 0x225   : > { %v1512_v20 = vpop.permute.xlu1 %1511 }
 0x226   : > { %v1532_v33 = vsel %vm737_vm11, %v1510_v15, %v1512_v20  ;;  %v1533_v41 = vsel %vm737_vm11, %v1512_v20, %v1514_v11 }
 0x227   : > { %1801 = vrot.lane.b32.xlu0 %v8520_v13, %s7864_s7  ;;  %1690 = vrot.lane.b32.xlu1 %v8500_v10, %s7870_s1  ;;  %v8561_v38 = vpack.c.bf16 %v1532_v33, %v1524_v37  ;;  %v8605_v36 = vpack.c.bf16 %v1533_v41, %v1525_v24 }
 0x229   : > { %v8536_v23 = vpop.permute.xlu1 %1499 }
 0x22a   : > { %v1527_v30 = vsel %vm737_vm11, %v8526_v62, %v8536_v23 }
 0x22b   : > { %1688 = vrot.lane.b32.xlu0 %v8508_v2, %s7870_s1  ;;  %1764 = vrot.lane.b32.xlu1 %v8520_v13, %s10889_s25 }
 0x22d   : > { %v1516_v29 = vpop.permute.xlu1 %1515 }
 0x22e   : > { %v1534_v26 = vsel %vm737_vm11, %v1514_v11, %v1516_v29 }
 0x22f   : > { %v1502_v58 = vpop.permute.xlu0 %1501  ;;  %1654 = vrot.lane.b32.xlu0 %v8500_v10, %s10887_s4  ;;  %1652 = vrot.lane.b32.xlu1 %v8508_v2, %s10887_s4  ;;  %v8607_v45 = vpack.c.bf16 %v1534_v26, %v1526_v42 }
 0x230   : > { %v1528_v0 = vsel %vm737_vm11, %v8536_v23, %v1502_v58 }
 0x231   : > { %1565 = vst.msk [vmem:[#allocation2 + $0x40] sm:$0xff] %vm1564_vm15, %v1528_v0  ;;  %v1518_v3 = vpop.permute.xlu1 %1517 }
 0x232   : > { %v1535_v32 = vsel %vm737_vm11, %v1516_v29, %v1518_v3 }
 0x233   : > { %v1520_v27 = vpop.permute.xlu0 %1519  ;;  %1728 = vrot.lane.b32.xlu0 %v8520_v13, %s7868_s8  ;;  %1618 = vrot.lane.b32.xlu1 %v8500_v10, %s10891_s5  ;;  %v8645_v48 = vpack.c.bf16 %v1535_v32, %v1527_v30 }
 0x234   : > { %v1536_v31 = vsel %vm737_vm11, %v1518_v3, %v1520_v27 }
 0x235   : > { %1574 = vst.msk [vmem:[#allocation2 + $0x90] sm:$0xff] %vm1564_vm15, %v1536_v31 }
 0x237   : > { %1616 = vrot.lane.b32.xlu0 %v8508_v2, %s10891_s5  ;;  %1692 = vrot.lane.b32.xlu1 %v8520_v13, %s7870_s1 }
 0x238   : > { %v1583_v54 = vld [vmem:[#allocation2 + $0x40] sm:$0xff] }
 0x23b   : > { %1656 = vrot.lane.b32.xlu1 %v8520_v13, %s10887_s4  ;;  %1842 = vrot.lane.b32.xlu0 %v8561_v38, %s7866_s3 }
 0x23c   : > { %v1592_v44 = vld [vmem:[#allocation2 + $0x90] sm:$0xff] }
 0x23d   : > { %v8650_v59 = vpack.c.bf16 %v1592_v44, %v1583_v54 }
 0x23f   : > { %1803 = vrot.lane.b32.xlu1 %v8561_v38, %s7864_s7  ;;  %1877 = vrot.lane.b32.xlu0 %v8500_v10, %s7865_s30 }
 0x243   : > { %1875 = vrot.lane.b32.xlu1 %v8508_v2, %s7865_s30  ;;  %1766 = vrot.lane.b32.xlu0 %v8561_v38, %s10889_s25 }
 0x247   : > { %1730 = vrot.lane.b32.xlu1 %v8561_v38, %s7868_s8  ;;  %1620 = vrot.lane.b32.xlu0 %v8520_v13, %s10891_s5 }
 0x24b   : > { %1873 = vrot.lane.b32.xlu1 %v8484_v4, %s7865_s30  ;;  %1694 = vrot.lane.b32.xlu0 %v8561_v38, %s7870_s1 }
 0x24f   : > { %1622 = vrot.lane.b32.xlu1 %v8561_v38, %s10891_s5  ;;  %1658 = vrot.lane.b32.xlu0 %v8561_v38, %s10887_s4 }
 0x253   : > { %1881 = vrot.lane.b32.xlu1 %v8561_v38, %s7865_s30  ;;  %1879 = vrot.lane.b32.xlu0 %v8520_v13, %s7865_s30 }
 0x257   : > { %1844 = vrot.lane.b32.xlu0 %v8605_v36, %s7866_s3  ;;  %1846 = vrot.lane.b32.xlu1 %v8607_v45, %s7866_s3 }
 0x25b   : > { %1805 = vrot.lane.b32.xlu0 %v8605_v36, %s7864_s7  ;;  %1807 = vrot.lane.b32.xlu1 %v8607_v45, %s7864_s7 }
 0x25f   : > { %1768 = vrot.lane.b32.xlu0 %v8605_v36, %s10889_s25  ;;  %1770 = vrot.lane.b32.xlu1 %v8607_v45, %s10889_s25 }
 0x263   : > { %1732 = vrot.lane.b32.xlu0 %v8605_v36, %s7868_s8  ;;  %1734 = vrot.lane.b32.xlu1 %v8607_v45, %s7868_s8 }
 0x267   : > { %1696 = vrot.lane.b32.xlu0 %v8605_v36, %s7870_s1  ;;  %1698 = vrot.lane.b32.xlu1 %v8607_v45, %s7870_s1 }
 0x26b   : > { %1660 = vrot.lane.b32.xlu0 %v8605_v36, %s10887_s4  ;;  %1662 = vrot.lane.b32.xlu1 %v8607_v45, %s10887_s4 }
 0x26f   : > { %1624 = vrot.lane.b32.xlu0 %v8605_v36, %s10891_s5  ;;  %1626 = vrot.lane.b32.xlu1 %v8607_v45, %s10891_s5 }
 0x273   : > { %1883 = vrot.lane.b32.xlu0 %v8605_v36, %s7865_s30  ;;  %1885 = vrot.lane.b32.xlu1 %v8607_v45, %s7865_s30 }
 0x277   : > { %1852 = vrot.lane.b32.xlu0 %v1604_v35, %s7866_s3  ;;  %1628 = vrot.lane.b32.xlu1 %v8645_v48, %s10891_s5 }
 0x279   : > { %v1835_v8 = vpop.permute.xlu0 %1834  ;;  %v1796_v28 = vpop.permute.xlu1 %1795 }
 0x27b   : > { %1850 = vrot.lane.b32.xlu1 %v8650_v59, %s7866_s3  ;;  %1848 = vrot.lane.b32.xlu0 %v8645_v48, %s7866_s3 }
 0x27d   : > { %v1759_v60 = vpop.permute.xlu0 %1758  ;;  %v1723_v9 = vpop.permute.xlu1 %1722 }
 0x27f   : > { %1811 = vrot.lane.b32.xlu1 %v8650_v59, %s7864_s7  ;;  %1809 = vrot.lane.b32.xlu0 %v8645_v48, %s7864_s7 }
 0x281   : > { %v1687_v25 = vpop.permute.xlu0 %1686  ;;  %v1651_v56 = vpop.permute.xlu1 %1650 }
 0x283   : > { %1774 = vrot.lane.b32.xlu1 %v8650_v59, %s10889_s25  ;;  %1772 = vrot.lane.b32.xlu0 %v8645_v48, %s10889_s25 }
 0x285   : > { %v1615_v57 = vpop.permute.xlu0 %1614  ;;  %v8664_v5 = vpop.permute.xlu1 %1838 }
 0x287   : > { %1738 = vrot.lane.b32.xlu1 %v8650_v59, %s7868_s8  ;;  %1736 = vrot.lane.b32.xlu0 %v8645_v48, %s7868_s8  ;;  %s10904_s8 = smov 19  }
 0x289   : > { %v1837_v52 = vpop.permute.xlu0 %1836  ;;  %v1798_v55 = vpop.permute.xlu1 %1797 }
 0x28a   : > { %v1856_v6 = vsel %vm1015_vm2, %v1837_v52, %v8664_v5  ;;  %v1855_v7 = vsel %vm1015_vm2, %v1835_v8, %v1837_v52  ;;  %v1816_v15 = vsel %vm976_vm1, %v1796_v28, %v1798_v55 }
 0x28b   : > { %1702 = vrot.lane.b32.xlu1 %v8650_v59, %s7870_s1  ;;  %1700 = vrot.lane.b32.xlu0 %v8645_v48, %s7870_s1  ;;  %s10922_s1 = sld [smem:[#allocation9_spill]] }
 0x28c   : > { %1939 = vmatprep.subr.bf16.mxu1 %v1856_v6 }
 0x28d   : > { %1940 = vmatpush1.bf16.msra.mxu1 %v1855_v7  ;;  %v8677_v16 = vpop.permute.xlu0 %1799  ;;  %v8679_v50 = vpop.permute.xlu1 %1762 }
 0x28e   : > { %v1817_v53 = vsel %vm976_vm1, %v1798_v55, %v8677_v16 }
 0x28f   : > { %1666 = vrot.lane.b32.xlu1 %v8650_v59, %s10887_s4  ;;  %1664 = vrot.lane.b32.xlu0 %v8645_v48, %s10887_s4  ;;  %s10898_s4 = smov 108  }
 0x290   : > { %1941 = vmatprep.subr.bf16.mxu1 %v1817_v53 }
 0x291   : > { %1942 = vmatpush1.bf16.msra.mxu1 %v1816_v15  ;;  %v1761_v14 = vpop.permute.xlu0 %1760  ;;  %v1841_v1 = vpop.permute.xlu1 %1840  ;;  %v1914_v29 = vld [vmem:[%s10922_s1] sm:$0xff]  ;;  %v1915_v3 = vld [vmem:[%s10922_s1 + $0x8] sm:$0xff]  ;;  %s10902_s1 = smov 110  }
 0x292   : > { %v1778_v47 = vsel %vm937_vm5, %v1761_v14, %v8679_v50  ;;  %v1777_v62 = vsel %vm937_vm5, %v1759_v60, %v1761_v14  ;;  %v1857_v60 = vsel %vm1015_vm2, %v8664_v5, %v1841_v1 }
 0x293   : > { %1813 = vrot.lane.b32.xlu1 %v1604_v35, %s7864_s7  ;;  %1630 = vrot.lane.b32.xlu0 %v8650_v59, %s10891_s5  ;;  %s10900_s7 = smov 91  }
 0x294   : > { %1943 = vmatprep.subr.bf16.mxu1 %v1778_v47 }
 0x295   : > { %1944 = vmatpush1.bf16.msra.mxu1 %v1777_v62  ;;  %v1727_v18 = vpop.permute.xlu0 %1726  ;;  %v1725_v20 = vpop.permute.xlu1 %1724  ;;  %v8732_v62 = vld [vmem:[%s10921_s23] ss:$8 sps:$4 sm:$0xff]  }
 0x296   : > { %v1742_v23 = vsel %vm901_vm4, %v1725_v20, %v1727_v18  ;;  %v1741_v11 = vsel %vm901_vm4, %v1723_v9, %v1725_v20 }
 0x297   : > { %1889 = vrot.lane.b32.xlu1 %v8650_v59, %s7865_s30  ;;  %1887 = vrot.lane.b32.xlu0 %v8645_v48, %s7865_s30 }
 0x298   : > { %1945 = vmatprep.subr.bf16.mxu1 %v1742_v23 }
 0x299   : > { %1946 = vmatpush1.bf16.msra.mxu1 %v1741_v11  ;;  %v1802_v58 = vpop.permute.xlu0 %1801  ;;  %v1691_v0 = vpop.permute.xlu1 %1690 }
 0x29b   : > { %1918 = vperm.xlu1 %7317, %v1914_v29   ;;  %1891 = vrot.lane.b32.xlu0 %v1604_v35, %s7865_s30  ;;  %s10928_s30 = sld [smem:[#allocation11_spill]] }
 0x29d   : > { %v1689_v27 = vpop.permute.xlu0 %1688  ;;  %v1765_v31 = vpop.permute.xlu1 %1764 }
 0x29e   : > { %v1706_v33 = vsel %vm865_vm7, %v1689_v27, %v1691_v0  ;;  %v1705_v37 = vsel %vm865_vm7, %v1687_v25, %v1689_v27 }
 0x29f   : > { %1923 = vperm.xlu0 %7318, %v1915_v3   ;;  %1947 = vmatprep.subr.bf16.mxu1 %v1706_v33 }
 0x2a0   : > { %1948 = vmatpush1.bf16.msra.mxu1 %v1705_v37 }
 0x2a1   : > { %v1655_v41 = vpop.permute.xlu0 %1654  ;;  %v1653_v26 = vpop.permute.xlu1 %1652 }
 0x2a2   : > { %v1670_v24 = vsel %vm829_vm6, %v1653_v26, %v1655_v41  ;;  %v1669_v42 = vsel %vm829_vm6, %v1651_v56, %v1653_v26 }
 0x2a3   : > { %1949 = vmatprep.subr.bf16.mxu1 %v1670_v24 }
 0x2a4   : > { %1950 = vmatpush1.bf16.msra.mxu1 %v1669_v42 }
 0x2a5   : > { %v1729_v21 = vpop.permute.xlu0 %1728  ;;  %v1619_v17 = vpop.permute.xlu1 %1618 }
 0x2a9   : > { %v1617_v32 = vpop.permute.xlu0 %1616  ;;  %v1693_v35 = vpop.permute.xlu1 %1692 }
 0x2aa   : > { %v1634_v30 = vsel %vm793_vm8, %v1617_v32, %v1619_v17  ;;  %v1633_v44 = vsel %vm793_vm8, %v1615_v57, %v1617_v32  ;;  %v1818_v57 = vsel %vm976_vm1, %v8677_v16, %v1802_v58  ;;  %v1743_v16 = vsel %vm901_vm4, %v1727_v18, %v1729_v21 }
 0x2ab   : > { %1951 = vmatprep.subr.bf16.mxu1 %v1634_v30 }
 0x2ac   : > { %1952 = vmatpush1.bf16.msra.mxu1 %v1633_v44 }
 0x2ad   : > { %v1843_v54 = vpop.permute.xlu0 %1842  ;;  %1953 = vmatprep.subr.bf16.mxu1 %v8508_v2  ;;  %v1657_v8 = vpop.permute.xlu1 %1656 }
 0x2ae   : > { %v1858_v28 = vsel %vm1015_vm2, %v1841_v1, %v1843_v54  ;;  %v1671_v11 = vsel %vm829_vm6, %v1655_v41, %v1657_v8 }
 0x2af   : > { %1982 = vmatprep.subr.bf16.mxu0 %v1858_v28 }
 0x2b0   : > { %1954 = vmatpush1.bf16.msra.mxu1 %v8484_v4  ;;  %1983 = vmatpush1.bf16.msra.mxu0 %v1857_v60  ;;  %v1779_v4 = vsel %vm937_vm5, %v8679_v50, %v1765_v31  ;;  %v1707_v50 = vsel %vm865_vm7, %v1691_v0, %v1693_v35 }
 0x2b1   : > { %v1878_v9 = vpop.permute.xlu0 %1877  ;;  %v1804_v25 = vpop.permute.xlu1 %1803 }
 0x2b2   : > { %v1819_v56 = vsel %vm976_vm1, %v1802_v58, %v1804_v25 }
 0x2b3   : > { %1984 = vmatprep.subr.bf16.mxu0 %v1819_v56 }
 0x2b4   : > { %1985 = vmatpush1.bf16.msra.mxu0 %v1818_v57 }
 0x2b5   : > { %v1767_v2 = vpop.permute.xlu0 %1766  ;;  %v1876_v52 = vpop.permute.xlu1 %1875 }
 0x2b6   : > { %v1895_v55 = vsel %vm1054_vm0, %v1876_v52, %v1878_v9  ;;  %v1780_v6 = vsel %vm937_vm5, %v1765_v31, %v1767_v2 }
 0x2b7   : > { %1969 = vmatprep.subr.bf16.mxu1 %v1895_v55  ;;  %1986 = vmatprep.subr.bf16.mxu0 %v1780_v6 }
 0x2b8   : > { %1987 = vmatpush1.bf16.msra.mxu0 %v1779_v4 }
 0x2b9   : > { %v1621_v5 = vpop.permute.xlu0 %1620  ;;  %v1731_v7 = vpop.permute.xlu1 %1730 }
 0x2ba   : > { %v1744_v53 = vsel %vm901_vm4, %v1729_v21, %v1731_v7  ;;  %v1635_v0 = vsel %vm793_vm8, %v1619_v17, %v1621_v5 }
 0x2bb   : > { %1988 = vmatprep.subr.bf16.mxu0 %v1744_v53 }
 0x2bc   : > { %1989 = vmatpush1.bf16.msra.mxu0 %v1743_v16 }
 0x2bd   : > { %v1695_v15 = vpop.permute.xlu0 %1694  ;;  %v1874_v14 = vpop.permute.xlu1 %1873 }
 0x2be   : > { %v1894_v1 = vsel %vm1054_vm0, %v1874_v14, %v1876_v52  ;;  %v1708_v47 = vsel %vm865_vm7, %v1693_v35, %v1695_v15 }
 0x2bf   : > { %1970 = vmatpush2.bf16.msra.mxu1 %v1894_v1  ;;  %1990 = vmatprep.subr.bf16.mxu0 %v1708_v47 }
 0x2c0   : > { %1991 = vmatpush1.bf16.msra.mxu0 %v1707_v50 }
 0x2c1   : > { %v1659_v20 = vpop.permute.xlu0 %1658  ;;  %v1623_v23 = vpop.permute.xlu1 %1622 }
 0x2c2   : > { %1972 = vmatmul.mubr.bf16.vlgmr.msra.gmra.mxu1 %v8732_v62  ;;  %v1672_v18 = vsel %vm829_vm6, %v1657_v8, %v1659_v20  ;;  %v1636_v29 = vsel %vm793_vm8, %v1621_v5, %v1623_v23 }
 0x2c3   : > { %1992 = vmatprep.subr.bf16.mxu0 %v1672_v18  ;;  %6575 = vmatprep.mubr.msk.bf16.mxu1 %vm1935_vm3, %v8574_v40 }
 0x2c4   : > { %1993 = vmatpush1.bf16.msra.mxu0 %v1671_v11 }
 0x2c5   : > { %v1880_v58 = vpop.permute.xlu0 %1879  ;;  %1994 = vmatprep.subr.bf16.mxu0 %v1636_v29  ;;  %v1882_v3 = vpop.permute.xlu1 %1881 }
 0x2c6   : > { %v1897_v41 = vsel %vm1054_vm0, %v1880_v58, %v1882_v3  ;;  %v1896_v21 = vsel %vm1054_vm0, %v1878_v9, %v1880_v58 }
 0x2c8   : > { %1995 = vmatpush1.bf16.msra.mxu0 %v1635_v0 }
 0x2c9   : > { %v1845_v27 = vpop.permute.xlu0 %1844  ;;  %1996 = vmatprep.subr.bf16.mxu0 %v8520_v13  ;;  %v8743_v31 = vpop.permute.xlu1 %1846 }
 0x2ca   : > { %v1860_v33 = vsel %vm1015_vm2, %v1845_v27, %v8743_v31  ;;  %v1859_v37 = vsel %vm1015_vm2, %v1843_v54, %v1845_v27 }
 0x2cb   : > { %2025 = vmatprep.subr.bf16.mxu1 %v1860_v33 }
 0x2cc   : > { %1997 = vmatpush1.bf16.msra.mxu0 %v8500_v10  ;;  %2026 = vmatpush1.bf16.msra.mxu1 %v1859_v37 }
 0x2cd   : > { %v1806_v26 = vpop.permute.xlu0 %1805  ;;  %2012 = vmatprep.subr.bf16.mxu0 %v1897_v41  ;;  %v8750_v24 = vpop.permute.xlu1 %1807 }
 0x2ce   : > { %v1821_v13 = vsel %vm976_vm1, %v1806_v26, %v8750_v24  ;;  %v1820_v42 = vsel %vm976_vm1, %v1804_v25, %v1806_v26 }
 0x2cf   : > { %2027 = vmatprep.subr.bf16.mxu1 %v1821_v13 }
 0x2d0   : > { %2013 = vmatpush2.bf16.msra.mxu0 %v1896_v21  ;;  %2028 = vmatpush1.bf16.msra.mxu1 %v1820_v42 }
 0x2d1   : > { %v1769_v17 = vpop.permute.xlu0 %1768  ;;  %v8756_v32 = vpop.permute.xlu1 %1770 }
 0x2d2   : > { %v1782_v10 = vsel %vm937_vm5, %v1769_v17, %v8756_v32  ;;  %v1781_v35 = vsel %vm937_vm5, %v1767_v2, %v1769_v17 }
 0x2d3   : > { %2015 = vmatmul.mubr.bf16.vlgmr.msra.gmra.mxu0 %v8732_v62  ;;  %2029 = vmatprep.subr.bf16.mxu1 %v1782_v10 }
 0x2d4   : > { %2030 = vmatpush1.bf16.msra.mxu1 %v1781_v35  ;;  %6576 = vmatprep.mubr.msk.bf16.mxu0 %vm1935_vm3, %v8574_v40 }
 0x2d5   : > { %v1733_v30 = vpop.permute.xlu0 %1732  ;;  %v1735_v44 = vpop.permute.xlu1 %1734 }
 0x2d6   : > { %v1746_v54 = vsel %vm901_vm4, %v1733_v30, %v1735_v44  ;;  %v1745_v8 = vsel %vm901_vm4, %v1731_v7, %v1733_v30 }
 0x2d7   : > { %2031 = vmatprep.subr.bf16.mxu1 %v1746_v54 }
 0x2d8   : > { %2032 = vmatpush1.bf16.msra.mxu1 %v1745_v8 }
 0x2d9   : > { %v1697_v28 = vpop.permute.xlu0 %1696  ;;  %v1699_v60 = vpop.permute.xlu1 %1698 }
 0x2da   : > { %v1710_v9 = vsel %vm865_vm7, %v1697_v28, %v1699_v60  ;;  %v1709_v25 = vsel %vm865_vm7, %v1695_v15, %v1697_v28 }
 0x2db   : > { %2033 = vmatprep.subr.bf16.mxu1 %v1710_v9 }
 0x2dc   : > { %2034 = vmatpush1.bf16.msra.mxu1 %v1709_v25  ;;  %v8826_v25 = vld [vmem:[%s10920_s9] sm:$0xff] }
 0x2dd   : > { %v1661_v56 = vpop.permute.xlu0 %1660  ;;  %v1663_v57 = vpop.permute.xlu1 %1662 }
 0x2de   : > { %v1674_v2 = vsel %vm829_vm6, %v1661_v56, %v1663_v57  ;;  %v1673_v52 = vsel %vm829_vm6, %v1659_v20, %v1661_v56 }
 0x2df   : > { %2035 = vmatprep.subr.bf16.mxu1 %v1674_v2 }
 0x2e0   : > { %2036 = vmatpush1.bf16.msra.mxu1 %v1673_v52 }
 0x2e1   : > { %v1625_v55 = vpop.permute.xlu0 %1624  ;;  %v8770_v6 = vpop.permute.xlu1 %1626 }
 0x2e2   : > { %v1638_v4 = vsel %vm793_vm8, %v1625_v55, %v8770_v6  ;;  %v1637_v5 = vsel %vm793_vm8, %v1623_v23, %v1625_v55 }
 0x2e3   : > { %2037 = vmatprep.subr.bf16.mxu1 %v1638_v4 }
 0x2e4   : > { %2038 = vmatpush1.bf16.msra.mxu1 %v1637_v5 }
 0x2e5   : > { %v1884_v7 = vpop.permute.xlu0 %1883  ;;  %2039 = vmatprep.subr.bf16.mxu1 %v8605_v36  ;;  %v8776_v53 = vpop.permute.xlu1 %1885 }
 0x2e6   : > { %v1899_v16 = vsel %vm1054_vm0, %v1884_v7, %v8776_v53  ;;  %v1898_v1 = vsel %vm1054_vm0, %v1882_v3, %v1884_v7 }
 0x2e8   : > { %2040 = vmatpush1.bf16.msra.mxu1 %v8561_v38 }
 0x2e9   : > { %v1853_v15 = vpop.permute.xlu0 %1852  ;;  %2055 = vmatprep.subr.bf16.mxu1 %v1899_v16  ;;  %v1629_v14 = vpop.permute.xlu1 %1628 }
 0x2ea   : > { %v1639_v54 = vsel %vm793_vm8, %v8770_v6, %v1629_v14 }
 0x2ec   : > { %2056 = vmatpush2.bf16.msra.mxu1 %v1898_v1 }
 0x2ed   : > { %v1849_v47 = vpop.permute.xlu0 %1848  ;;  %v1851_v50 = vpop.permute.xlu1 %1850  ;;  %2111 = vmatprep.subr.bf16.mxu1 %v7871_v12 }
 0x2ee   : > { %v1862_v20 = vsel %vm1015_vm2, %v1849_v47, %v1851_v50  ;;  %v1861_v36 = vsel %vm1015_vm2, %v8743_v31, %v1849_v47  ;;  %v1863_v38 = vsel %vm1015_vm2, %v1851_v50, %v1853_v15 }
 0x2ef   : > { %2058 = vmatmul.mubr.bf16.vlgmr.msra.gmra.mxu1 %v8732_v62  ;;  %2068 = vmatprep.subr.bf16.mxu0 %v1862_v20 }
 0x2f0   : > { %2069 = vmatpush1.bf16.msra.mxu0 %v1861_v36  ;;  %2112 = vmatpush1.bf16.msra.mxu1 %v1863_v38 }
 0x2f1   : > { %v1810_v23 = vpop.permute.xlu0 %1809  ;;  %v1812_v18 = vpop.permute.xlu1 %1811  ;;  %2113 = vmatprep.subr.bf16.mxu1 %v7871_v12  ;;  %6577 = vmatprep.mubr.msk.bf16.mxu1 %vm1935_vm3, %v8574_v40 }
 0x2f2   : > { %v1823_v11 = vsel %vm976_vm1, %v1810_v23, %v1812_v18  ;;  %v1822_v29 = vsel %vm976_vm1, %v8750_v24, %v1810_v23 }
 0x2f3   : > { %2070 = vmatprep.subr.bf16.mxu0 %v1823_v11 }
 0x2f4   : > { %2071 = vmatpush1.bf16.msra.mxu0 %v1822_v29 }
 0x2f5   : > { %v1773_v58 = vpop.permute.xlu0 %1772  ;;  %v1775_v3 = vpop.permute.xlu1 %1774 }
 0x2f6   : > { %v1784_v0 = vsel %vm937_vm5, %v1773_v58, %v1775_v3  ;;  %v1783_v27 = vsel %vm937_vm5, %v8756_v32, %v1773_v58 }
 0x2f7   : > { %2072 = vmatprep.subr.bf16.mxu0 %v1784_v0 }
 0x2f8   : > { %2073 = vmatpush1.bf16.msra.mxu0 %v1783_v27 }
 0x2f9   : > { %v1737_v31 = vpop.permute.xlu0 %1736  ;;  %v1739_v33 = vpop.permute.xlu1 %1738 }
 0x2fa   : > { %v1748_v40 = vsel %vm901_vm4, %v1737_v31, %v1739_v33  ;;  %v1747_v37 = vsel %vm901_vm4, %v1735_v44, %v1737_v31  ;;  %vm4504_vm4 = vcmask 1047704  }
 0x2fb   : > { %2074 = vmatprep.subr.bf16.mxu0 %v1748_v40 }
 0x2fc   : > { %2075 = vmatpush1.bf16.msra.mxu0 %v1747_v37 }
 0x2fd   : > { %v1701_v41 = vpop.permute.xlu0 %1700  ;;  %v1703_v26 = vpop.permute.xlu1 %1702 }
 0x2fe   : > { %v1712_v24 = vsel %vm865_vm7, %v1701_v41, %v1703_v26  ;;  %v1711_v13 = vsel %vm865_vm7, %v1699_v60, %v1701_v41  ;;  %vm4507_vm7 = vcmask 416768  }
 0x2ff   : > { %2076 = vmatprep.subr.bf16.mxu0 %v1712_v24 }
 0x300   : > { %2077 = vmatpush1.bf16.msra.mxu0 %v1711_v13 }
 0x301   : > { %v1665_v42 = vpop.permute.xlu0 %1664  ;;  %v1667_v21 = vpop.permute.xlu1 %1666 }
 0x302   : > { %v1676_v17 = vsel %vm829_vm6, %v1665_v42, %v1667_v21  ;;  %v1675_v32 = vsel %vm829_vm6, %v1663_v57, %v1665_v42 }
 0x303   : > { %2078 = vmatprep.subr.bf16.mxu0 %v1676_v17  ;;  %v2193_v17 = vrot.slane %v8826_v25, %v1422_v61 }
 0x304   : > { %2079 = vmatpush1.bf16.msra.mxu0 %v1675_v32 }
 0x305   : > { %v1631_v10 = vpop.permute.xlu0 %1630  ;;  %v1814_v35 = vpop.permute.xlu1 %1813 }
 0x306   : > { %v1824_v30 = vsel %vm976_vm1, %v1812_v18, %v1814_v35  ;;  %v1640_v44 = vsel %vm793_vm8, %v1629_v14, %v1631_v10  ;;  %v2185_v18 = vrot.slane %v8826_v25, %v8420_v34  ;;  %vm746_vm1 = vcmask 154624  }
 0x307   : > { %2080 = vmatprep.subr.bf16.mxu0 %v1640_v44  ;;  %2114 = vmatpush1.bf16.msra.mxu1 %v1824_v30  ;;  %v2197_v30 = vrot.slane %v8826_v25, %v1426_v63 }
 0x308   : > { %2081 = vmatpush1.bf16.msra.mxu0 %v1639_v54  ;;  %2115 = vmatprep.subr.bf16.mxu1 %v7871_v12 }
 0x309   : > { %v1888_v8 = vpop.permute.xlu0 %1887  ;;  %2082 = vmatprep.subr.bf16.mxu0 %v8645_v48  ;;  %v1890_v28 = vpop.permute.xlu1 %1889 }
 0x30a   : > { %v1901_v60 = vsel %vm1054_vm0, %v1888_v8, %v1890_v28  ;;  %v1900_v9 = vsel %vm1054_vm0, %v8776_v53, %v1888_v8 }
 0x30b   : > { %2116 = vmatpush1.bf16.msra.mxu1 %v1775_v3  ;;  %v2189_v3 = vrot.slane %v8826_v25, %v1418_v43 }
 0x30c   : > { %2083 = vmatpush1.bf16.msra.mxu0 %v8607_v45  ;;  %2117 = vmatprep.subr.bf16.mxu1 %v7871_v12 }
 0x30d   : > { %2098 = vmatprep.subr.bf16.mxu0 %v1901_v60  ;;  %v1892_v45 = vpop.permute.xlu0 %1891 }
 0x30e   : > { %v1902_v48 = vsel %vm1054_vm0, %v1890_v28, %v1892_v45  ;;  %vm4052_vm0 = vcmask 523264  }
 0x30f   : > { %2118 = vmatpush1.bf16.msra.mxu1 %v1739_v33 }
 0x310   : > { %2099 = vmatpush2.bf16.msra.mxu0 %v1900_v9  ;;  %2119 = vmatprep.subr.bf16.mxu1 %v7871_v12 }
 0x313   : > { %2101 = vmatmul.mubr.bf16.vlgmr.msra.gmra.mxu0 %v8732_v62  ;;  %2120 = vmatpush1.bf16.msra.mxu1 %v1703_v26 }
 0x314   : > { %2121 = vmatprep.subr.bf16.mxu1 %v7871_v12 }
 0x316   : > { %v8828_v56 = vpop.permute.xlu1 %1918 }
 0x317   : > { %2122 = vmatpush1.bf16.msra.mxu1 %v1667_v21 }
 0x318   : > { %2123 = vmatprep.subr.bf16.mxu1 %v7871_v12 }
 0x31a   : > { %v8836_v4 = vpop.permute.xlu0 %1923 }
 0x31b   : > { %2124 = vmatpush1.bf16.msra.mxu1 %v1631_v10 }
 0x31c   : > { %2125 = vmatprep.subr.bf16.mxu1 %v7871_v12 }
 0x31f   : > { %2126 = vmatpush1.bf16.msra.mxu1 %v8650_v59  ;;  %v2177_v59 = vrot.slane %v8826_v25, %v8396_v51 }
 0x320   : > { %2141 = vmatprep.subr.bf16.mxu1 %v7871_v12 }
 0x323   : > { %2142 = vmatpush2.bf16.msra.mxu1 %v1902_v48 }
 0x326   : > { %2144 = vmatmul.mubr.bf16.vlgmr.msra.gmra.mxu1 %v8732_v62  ;;  %v2181_v62 = vrot.slane %v8826_v25, %v8409_v22 }
 0x382   : > { %v1973_v57 = vpop.f32.mrf.mxu1 }
 0x383   : > { %v1974_v2 = vadd.f32 %v1973_v57, %v8828_v56 }
 0x384   : > { %v1975_v52 = vpop.f32.mrf.mxu1 }
 0x385   : > { %v2152_v55 = vmax.f32 %v1974_v2, 0.0  ;;  %v1976_v6 = vadd.f32 %v1975_v52, %v8828_v56  ;;  %v2201_v52 = vrot.slane %v8826_v25, %v1430_v46 }
 0x386   : > { %v1977_v5 = vpop.f32.mrf.mxu1 }
 0x387   : > { %v8838_v7 = vmul.f32 %v2177_v59, %v2152_v55  ;;  %v2153_v53 = vmax.f32 %v1976_v6, 0.0  ;;  %v1978_v16 = vadd.f32 %v1977_v5, %v8836_v4  ;;  %v2205_v5 = vrot.slane %v8826_v25, %v1434_v19 }
 0x388   : > { %v1979_v15 = vpop.f32.mrf.mxu1 }
 0x389   : > { %v8841_v14 = vmul.f32 %v2181_v62, %v2153_v53  ;;  %v2161_v1 = vmax.f32 %v1978_v16, 0.0  ;;  %v1980_v47 = vadd.f32 %v1979_v15, %v8836_v4  ;;  %2255 = vrot.lane.b32.xlu1 %v8838_v7, %s7875_s26 }
 0x38b   : > { %v8846_v50 = vmul.f32 %v2177_v59, %v2161_v1  ;;  %v2162_v20 = vmax.f32 %v1980_v47, 0.0  ;;  %2257 = vrot.lane.b32.xlu0 %v8841_v14, %s7875_s26 }
 0x38d   : > { %v8850_v36 = vmul.f32 %v2181_v62, %v2162_v20  ;;  %2273 = vrot.lane.b32.xlu1 %v8846_v50, %s7875_s26 }
 0x38f   : > { %2275 = vrot.lane.b32.xlu0 %v8850_v36, %s7875_s26 }
 0x393   : > { %v2016_v38 = vpop.f32.mrf.mxu0 }
 0x394   : > { %v2017_v23 = vadd.f32 %v2016_v38, %v8828_v56 }
 0x395   : > { %v2018_v11 = vpop.f32.mrf.mxu0 }
 0x396   : > { %v2154_v29 = vmax.f32 %v2017_v23, 0.0  ;;  %v2019_v58 = vadd.f32 %v2018_v11, %v8828_v56 }
 0x397   : > { %v2020_v0 = vpop.f32.mrf.mxu0 }
 0x398   : > { %v8863_v27 = vmul.f32 %v2185_v18, %v2154_v29  ;;  %v2155_v31 = vmax.f32 %v2019_v58, 0.0  ;;  %v2021_v33 = vadd.f32 %v2020_v0, %v8836_v4 }
 0x399   : > { %v2022_v40 = vpop.f32.mrf.mxu0 }
 0x39a   : > { %v8866_v37 = vmul.f32 %v2189_v3, %v2155_v31  ;;  %v2163_v41 = vmax.f32 %v2021_v33, 0.0  ;;  %v2023_v26 = vadd.f32 %v2022_v40, %v8836_v4  ;;  %2259 = vrot.lane.b32.xlu1 %v8863_v27, %s7875_s26 }
 0x39c   : > { %v8871_v24 = vmul.f32 %v2185_v18, %v2163_v41  ;;  %v2164_v13 = vmax.f32 %v2023_v26, 0.0  ;;  %2261 = vrot.lane.b32.xlu0 %v8866_v37, %s7875_s26 }
 0x39e   : > { %v8875_v43 = vmul.f32 %v2189_v3, %v2164_v13  ;;  %2277 = vrot.lane.b32.xlu1 %v8871_v24, %s7875_s26 }
 0x3a0   : > { %2279 = vrot.lane.b32.xlu0 %v8875_v43, %s7875_s26 }
 0x3af   : > { %v2059_v42 = vpop.f32.mrf.mxu1 }
 0x3b0   : > { %v2060_v21 = vadd.f32 %v2059_v42, %v8828_v56 }
 0x3b1   : > { %v2061_v32 = vpop.f32.mrf.mxu1 }
 0x3b2   : > { %v2156_v10 = vmax.f32 %v2060_v21, 0.0  ;;  %v2062_v35 = vadd.f32 %v2061_v32, %v8828_v56 }
 0x3b3   : > { %v2063_v44 = vpop.f32.mrf.mxu1 }
 0x3b4   : > { %v8889_v54 = vmul.f32 %v2193_v17, %v2156_v10  ;;  %v2157_v8 = vmax.f32 %v2062_v35, 0.0  ;;  %v2064_v28 = vadd.f32 %v2063_v44, %v8836_v4 }
 0x3b5   : > { %v2065_v60 = vpop.f32.mrf.mxu1 }
 0x3b6   : > { %v8892_v9 = vmul.f32 %v2197_v30, %v2157_v8  ;;  %v2165_v45 = vmax.f32 %v2064_v28, 0.0  ;;  %v2066_v61 = vadd.f32 %v2065_v60, %v8836_v4  ;;  %2263 = vrot.lane.b32.xlu1 %v8889_v54, %s7875_s26 }
 0x3b8   : > { %v8897_v48 = vmul.f32 %v2193_v17, %v2165_v45  ;;  %v2166_v57 = vmax.f32 %v2066_v61, 0.0  ;;  %2265 = vrot.lane.b32.xlu0 %v8892_v9, %s7875_s26 }
 0x3ba   : > { %v8901_v63 = vmul.f32 %v2197_v30, %v2166_v57  ;;  %2281 = vrot.lane.b32.xlu1 %v8897_v48, %s7875_s26  ;;  %v6578_v57 = vld [vmem:[%s10920_s9 + $0x8] ss:$0 sm:$0xff]  ;;  %s10929_s9 = smov 19  }
 0x3bc   : > { %2283 = vrot.lane.b32.xlu0 %v8901_v63, %s7875_s26 }
 0x3d3   : > { %v2102_v2 = vpop.f32.mrf.mxu0 }
 0x3d4   : > { %v2103_v59 = vadd.f32 %v2102_v2, %v8828_v56 }
 0x3d5   : > { %v2104_v55 = vpop.f32.mrf.mxu0 }
 0x3d6   : > { %v2158_v6 = vmax.f32 %v2103_v59, 0.0  ;;  %v2105_v62 = vadd.f32 %v2104_v55, %v8828_v56 }
 0x3d7   : > { %v2106_v53 = vpop.f32.mrf.mxu0 }
 0x3d8   : > { %v8915_v16 = vmul.f32 %v2201_v52, %v2158_v6  ;;  %v2159_v15 = vmax.f32 %v2105_v62, 0.0  ;;  %v2107_v1 = vadd.f32 %v2106_v53, %v8836_v4 }
 0x3d9   : > { %v2108_v47 = vpop.f32.mrf.mxu0 }
 0x3da   : > { %v8918_v20 = vmul.f32 %v2205_v5, %v2159_v15  ;;  %v2167_v38 = vmax.f32 %v2107_v1, 0.0  ;;  %v2109_v46 = vadd.f32 %v2108_v47, %v8836_v4  ;;  %2267 = vrot.lane.b32.xlu1 %v8915_v16, %s7875_s26 }
 0x3dc   : > { %v8923_v23 = vmul.f32 %v2201_v52, %v2167_v38  ;;  %v2168_v49 = vmax.f32 %v2109_v46, 0.0  ;;  %2269 = vrot.lane.b32.xlu0 %v8918_v20, %s7875_s26  ;;  %v7468_v46 = vld [vmem:[%s10866_s11 + $0xa8] ss:$12 sps:$4 sm:$0xff]  }
 0x3de   : > { %v8927_v19 = vmul.f32 %v2205_v5, %v2168_v49  ;;  %2285 = vrot.lane.b32.xlu1 %v8923_v23, %s7875_s26  ;;  %v7470_v49 = vld [vmem:[%s10866_s11 + $0xac] ss:$12 sps:$4 sm:$0xff]  }
 0x3df   : > { %4056 = vmatprep.subr.bf16.mxu0 %v7470_v49  ;;  %v7527_v49 = vld [vmem:[%s10866_s11 + $0x19c] ss:$12 sps:$4 sm:$0xff]  }
 0x3e0   : > { %2287 = vrot.lane.b32.xlu0 %v8927_v19, %s7875_s26  ;;  %4057 = vmatpush1.bf16.msra.mxu0 %v7468_v46  ;;  %v7494_v46 = vld [vmem:[%s10866_s11 + $0x4] ss:$12 sps:$4 sm:$0xff]  }
 0x3e6   : > { %v2145_v25 = vpop.f32.mrf.mxu1 }
 0x3e7   : > { %v2146_v17 = vadd.f32 %v2145_v25, %v8828_v56  ;;  %v7473_v25 = vld [vmem:[%s10866_s11 + $0x94] ss:$12 sps:$4 sm:$0xff]  }
 0x3e8   : > { %v2147_v18 = vpop.f32.mrf.mxu1  ;;  %4058 = vmatprep.subr.bf16.mxu0 %v7473_v25 }
 0x3ea   : > { %v2148_v11 = vpop.f32.mrf.mxu1 }
 0x3eb   : > { %v2149_v32 = vadd.f32 %v2148_v11, %v8836_v4  ;;  %v2160_v4 = vmax.f32 %v2146_v17, 0.0  ;;  %v7471_v11 = vld [vmem:[%s10866_s11 + $0x90] ss:$12 sps:$4 sm:$0xff]   ;;  %v7477_v17 = vld [vmem:[%s10866_s11 + $0x60] ss:$12 sps:$4 sm:$0xff]  }
 0x3ec   : > { %v2150_v29 = vpop.f32.mrf.mxu1  ;;  %4059 = vmatpush1.bf16.msra.mxu0 %v7471_v11  ;;  %v7525_v11 = vld [vmem:[%s10866_s11 + $0x198] ss:$12 sps:$4 sm:$0xff]  }
 0x3ed   : > { %v2169_v60 = vmax.f32 %v2149_v32, 0.0  ;;  %v8974_v2 = vmul.f32 %v6578_v57, %v2160_v4  ;;  %v7476_v29 = vld [vmem:[%s10866_s11 + $0x7c] ss:$12 sps:$4 sm:$0xff]   ;;  %v7501_v32 = vld [vmem:[%s10866_s11 + $0x1f8] ss:$12 sps:$4 sm:$0xff]  }
 0x3ee   : > { %4060 = vmatprep.subr.bf16.mxu0 %v7476_v29  ;;  %v7507_v4 = vld [vmem:[%s10866_s11 + $0x1e0] ss:$12 sps:$4 sm:$0xff]  }
 0x3ef   : > { %v8976_v59 = vmul.f32 %v6578_v57, %v2169_v60  ;;  %v7485_v60 = vld [vmem:[%s10866_s11 + $0x34] ss:$12 sps:$4 sm:$0xff]  }
 0x3f0   : > { %v7513_v57 = vld [vmem:[%s10866_s11 + $0x1c8] ss:$12 sps:$4 sm:$0xff]  }
 0x3fb   : > { %v2256_v58 = vpop.permute.xlu1 %2255 }
 0x3fc   : > { %2325 = vst.msk [vmem:[#allocation2] sm:$0xff] %vm1555_vm14, %v2256_v58 }
 0x3fd   : > { %v2258_v3 = vpop.permute.xlu0 %2257 }
 0x3fe   : > { %v8935_v0 = vsel %vm737_vm11, %v2256_v58, %v2258_v3  ;;  %v7489_v58 = vld [vmem:[%s10866_s11 + $0x228] ss:$12 sps:$4 sm:$0xff]  }
 0x3ff   : > { %v2274_v31 = vpop.permute.xlu1 %2273 }
 0x400   : > { %2334 = vst.msk [vmem:[#allocation2 + $0x50] sm:$0xff] %vm1555_vm14, %v2274_v31  ;;  %vm4611_vm14 = vcmask 736256  }
 0x401   : > { %v2276_v33 = vpop.permute.xlu0 %2275 }
 0x402   : > { %v8939_v40 = vsel %vm737_vm11, %v2274_v31, %v2276_v33  ;;  %v7497_v31 = vld [vmem:[%s10866_s11 + $0x214] ss:$12 sps:$4 sm:$0xff]  }
 0x403   : > { %v8963_v56 = vld [vmem:[#allocation2] sm:$0xff] }
 0x407   : > { %v8957_v44 = vld [vmem:[#allocation2 + $0x50] sm:$0xff] }
 0x408   : > { %v7334_v45 = vpack.i.bf16 %v8957_v44, %v8963_v56 }
 0x40c   : > { %v2260_v41 = vpop.permute.xlu1 %2259 }
 0x40d   : > { %v8942_v26 = vsel %vm737_vm11, %v2258_v3, %v2260_v41  ;;  %v7491_v3 = vld [vmem:[%s10866_s11 + $0x22c] ss:$12 sps:$4 sm:$0xff]  }
 0x40e   : > { %v2262_v13 = vpop.permute.xlu0 %2261  ;;  %v7319_v42 = vpack.i.bf16 %v8942_v26, %v8935_v0  ;;  %4099 = vmatprep.subr.bf16.mxu1 %v7491_v3 }
 0x40f   : > { %v8947_v21 = vsel %vm737_vm11, %v2260_v41, %v2262_v13  ;;  %4100 = vmatpush1.bf16.msra.mxu1 %v7489_v58  ;;  %v7495_v41 = vld [vmem:[%s10866_s11 + $0x210] ss:$12 sps:$4 sm:$0xff]   ;;  %v7500_v58 = vld [vmem:[%s10866_s11 + $0x16c] ss:$12 sps:$4 sm:$0xff]  }
 0x410   : > { %v2278_v10 = vpop.permute.xlu1 %2277  ;;  %7320 = vrot.lane.b32.xlu1 %v7319_v42, %s10891_s5  ;;  %v7324_v35 = vpack.i.bf16 %v8939_v40, %v8947_v21  ;;  %4101 = vmatprep.subr.bf16.mxu1 %v7497_v31 }
 0x411   : > { %v8955_v30 = vsel %vm737_vm11, %v2276_v33, %v2278_v10  ;;  %v7474_v33 = vld [vmem:[%s10866_s11 + $0x78] ss:$12 sps:$4 sm:$0xff]  }
 0x412   : > { %v2280_v8 = vpop.permute.xlu0 %2279  ;;  %7325 = vrot.lane.b32.xlu0 %v7324_v35, %s10891_s5  ;;  %v7354_v18 = vpack.i.bf16 %v8955_v30, %v8939_v40  ;;  %4061 = vmatpush1.bf16.msra.mxu0 %v7474_v33  ;;  %v7509_v35 = vld [vmem:[%s10866_s11 + $0x1e4] ss:$12 sps:$4 sm:$0xff]  }
 0x413   : > { %v8961_v28 = vsel %vm737_vm11, %v2278_v10, %v2280_v8  ;;  %4102 = vmatpush1.bf16.msra.mxu1 %v7495_v41  ;;  %v7482_v10 = vld [vmem:[%s10866_s11 + $0x4c] ss:$12 sps:$4 sm:$0xff]   ;;  %v7498_v41 = vld [vmem:[%s10866_s11 + $0x168] ss:$12 sps:$4 sm:$0xff]  }
 0x414   : > { %v7329_v61 = vpack.i.bf16 %v8961_v28, %v8955_v30 }
 0x416   : > { %7335 = vrot.lane.b32.xlu0 %v7334_v45, %s10891_s5  ;;  %7330 = vrot.lane.b32.xlu1 %v7329_v61, %s10891_s5  ;;  %v7483_v61 = vld [vmem:[%s10866_s11 + $0x30] ss:$12 sps:$4 sm:$0xff]  }
 0x41a   : > { %2289 = vrot.lane.b32.xlu0 %v8976_v59, %s7875_s26  ;;  %2271 = vrot.lane.b32.xlu1 %v8974_v2, %s7875_s26  ;;  %s10935_s26 = sld [smem:[#allocation12_spill]] }
 0x428   : > { %v2264_v52 = vpop.permute.xlu1 %2263 }
 0x429   : > { %v8983_v55 = vsel %vm737_vm11, %v2262_v13, %v2264_v52  ;;  %v7479_v13 = vld [vmem:[%s10866_s11 + $0x64] ss:$12 sps:$4 sm:$0xff]  }
 0x42a   : > { %v8985_v6 = vpop.permute.xlu0 %2265  ;;  %4062 = vmatprep.subr.bf16.mxu0 %v7479_v13  ;;  %v7506_v13 = vld [vmem:[%s10866_s11 + $0x154] ss:$12 sps:$4 sm:$0xff]  }
 0x42b   : > { %v8989_v62 = vsel %vm737_vm11, %v2264_v52, %v8985_v6  ;;  %4063 = vmatpush1.bf16.msra.mxu0 %v7477_v17  ;;  %v7488_v52 = vld [vmem:[%s10866_s11 + $0x1c] ss:$12 sps:$4 sm:$0xff]  }
 0x42c   : > { %v2282_v5 = vpop.permute.xlu1 %2281  ;;  %v7339_v53 = vpack.i.bf16 %v8989_v62, %v8983_v55  ;;  %4064 = vmatprep.subr.bf16.mxu0 %v7482_v10  ;;  %v7510_v10 = vld [vmem:[%s10866_s11 + $0x138] ss:$12 sps:$4 sm:$0xff]  }
 0x42d   : > { %v8994_v15 = vsel %vm737_vm11, %v2280_v8, %v2282_v5  ;;  %v7480_v8 = vld [vmem:[%s10866_s11 + $0x48] ss:$12 sps:$4 sm:$0xff]  }
 0x42e   : > { %v8996_v1 = vpop.permute.xlu0 %2283  ;;  %7340 = vrot.lane.b32.xlu1 %v7339_v53, %s10891_s5  ;;  %v7486_v53 = vld [vmem:[%s10866_s11 + $0x18] ss:$12 sps:$4 sm:$0xff]  }
 0x42f   : > { %v9001_v47 = vsel %vm737_vm11, %v2282_v5, %v8996_v1  ;;  %4065 = vmatpush1.bf16.msra.mxu0 %v7480_v8  ;;  %v7521_v5 = vld [vmem:[%s10866_s11 + $0x1b4] ss:$12 sps:$4 sm:$0xff]  }
 0x430   : > { %v7344_v38 = vpack.i.bf16 %v9001_v47, %v8994_v15  ;;  %4066 = vmatprep.subr.bf16.mxu0 %v7485_v60  ;;  %v7516_v8 = vld [vmem:[%s10866_s11 + $0x120] ss:$12 sps:$4 sm:$0xff]   ;;  %v7522_v60 = vld [vmem:[%s10866_s11 + $0x108] ss:$12 sps:$4 sm:$0xff]  }
 0x432   : > { %7350 = vrot.lane.b32.xlu1 %v7319_v42, %s10889_s25  ;;  %7345 = vrot.lane.b32.xlu0 %v7344_v38, %s10891_s5  ;;  %v7503_v42 = vld [vmem:[%s10866_s11 + $0x1fc] ss:$12 sps:$4 sm:$0xff]   ;;  %s10896_s5 = smov 109  }
 0x433   : > { %4103 = vmatprep.subr.bf16.mxu1 %v7503_v42  ;;  %4067 = vmatpush1.bf16.msra.mxu0 %v7483_v61  ;;  %v7519_v38 = vld [vmem:[%s10866_s11 + $0x1b0] ss:$12 sps:$4 sm:$0xff]  }
 0x434   : > { %4104 = vmatpush1.bf16.msra.mxu1 %v7501_v32  ;;  %4068 = vmatprep.subr.bf16.mxu0 %v7488_v52  ;;  %v7504_v32 = vld [vmem:[%s10866_s11 + $0x150] ss:$12 sps:$4 sm:$0xff]   ;;  %v7531_v52 = vld [vmem:[%s10866_s11 + $0x180] ss:$12 sps:$4 sm:$0xff]  }
 0x435   : > { %4105 = vmatprep.subr.bf16.mxu1 %v7509_v35  ;;  %v7518_v35 = vld [vmem:[%s10866_s11 + $0x124] ss:$12 sps:$4 sm:$0xff]  }
 0x436   : > { %7360 = vrot.lane.b32.xlu1 %v7334_v45, %s10889_s25  ;;  %7355 = vrot.lane.b32.xlu0 %v7354_v18, %s10889_s25  ;;  %v7515_v45 = vld [vmem:[%s10866_s11 + $0x1cc] ss:$12 sps:$4 sm:$0xff]   ;;  %v7533_v61 = vld [vmem:[%s10866_s11 + $0x184] ss:$12 sps:$4 sm:$0xff]   ;;  %s10923_s25 = smov 127  }
 0x437   : > { %4069 = vmatpush1.bf16.msra.mxu0 %v7486_v53  ;;  %v7492_v18 = vld [vmem:[%s10866_s11] ss:$12 sps:$4 sm:$0xff]  }
 0x438   : > { %4106 = vmatpush1.bf16.msra.mxu1 %v7507_v4  ;;  %4070 = vmatprep.subr.bf16.mxu0 %v7494_v46  ;;  %v7524_v4 = vld [vmem:[%s10866_s11 + $0x10c] ss:$12 sps:$4 sm:$0xff]   ;;  %v7536_v46 = vld [vmem:[%s10866_s11 + $0xdc] ss:$12 sps:$4 sm:$0xff]  }
 0x439   : > { %4107 = vmatprep.subr.bf16.mxu1 %v7515_v45  ;;  %v7530_v45 = vld [vmem:[%s10866_s11 + $0xf4] ss:$12 sps:$4 sm:$0xff]  }
 0x43b   : > { %4071 = vmatpush1.bf16.msra.mxu0 %v7492_v18  ;;  %v7537_v18 = vld [vmem:[%s10866_s11 + $0x2e8] ss:$12 sps:$4 sm:$0xff]  }
 0x43c   : > { %4108 = vmatpush1.bf16.msra.mxu1 %v7513_v57  ;;  %4072 = vmatprep.subr.bf16.mxu0 %v7500_v58  ;;  %v7528_v57 = vld [vmem:[%s10866_s11 + $0xf0] ss:$12 sps:$4 sm:$0xff]  }
 0x43d   : > { %4109 = vmatprep.subr.bf16.mxu1 %v7521_v5 }
 0x43f   : > { %4073 = vmatpush2.bf16.msra.mxu0 %v7498_v41 }
 0x440   : > { %4110 = vmatpush1.bf16.msra.mxu1 %v7519_v38  ;;  %4074 = vmatprep.subr.bf16.mxu0 %v7506_v13 }
 0x441   : > { %4111 = vmatprep.subr.bf16.mxu1 %v7527_v49  ;;  %v7539_v49 = vld [vmem:[%s10866_s11 + $0x2ec] ss:$12 sps:$4 sm:$0xff]  }
 0x443   : > { %4075 = vmatpush2.bf16.msra.mxu0 %v7504_v32 }
 0x444   : > { %4112 = vmatpush1.bf16.msra.mxu1 %v7525_v11 }
 0x445   : > { %4113 = vmatprep.subr.bf16.mxu1 %v7533_v61 }
 0x448   : > { %4114 = vmatpush1.bf16.msra.mxu1 %v7531_v52 }
 0x449   : > { %4115 = vmatprep.subr.bf16.mxu1 %v7539_v49 }
 0x44c   : > { %v2268_v25 = vpop.permute.xlu1 %2267  ;;  %4116 = vmatpush2.bf16.msra.mxu1 %v7537_v18 }
 0x44d   : > { %v9103_v29 = vsel %vm737_vm11, %v8985_v6, %v2268_v25 }
 0x44e   : > { %v9108_v3 = vpop.permute.xlu0 %2269 }
 0x44f   : > { %v9112_v31 = vsel %vm737_vm11, %v2268_v25, %v9108_v3  ;;  %v7534_v25 = vld [vmem:[%s10866_s11 + $0xd8] ss:$12 sps:$4 sm:$0xff]  }
 0x450   : > { %v2286_v33 = vpop.permute.xlu1 %2285 }
 0x451   : > { %v9119_v6 = vsel %vm737_vm11, %v8996_v1, %v2286_v33  ;;  %v7512_v1 = vld [vmem:[%s10866_s11 + $0x13c] ss:$12 sps:$4 sm:$0xff]  }
 0x452   : > { %v9124_v42 = vpop.permute.xlu0 %2287  ;;  %4076 = vmatprep.subr.bf16.mxu0 %v7512_v1 }
 0x453   : > { %v9128_v17 = vsel %vm737_vm11, %v2286_v33, %v9124_v42  ;;  %4077 = vmatpush2.bf16.msra.mxu0 %v7510_v10 }
 0x454   : > { %4078 = vmatprep.subr.bf16.mxu0 %v7518_v35 }
 0x457   : > { %4079 = vmatpush2.bf16.msra.mxu0 %v7516_v8 }
 0x458   : > { %4080 = vmatprep.subr.bf16.mxu0 %v7524_v4  ;;  %v7542_v4 = vld [vmem:[%s10866_s11 + $0xc4] ss:$12 sps:$4 sm:$0xff]  }
 0x45b   : > { %4081 = vmatpush2.bf16.msra.mxu0 %v7522_v60  ;;  %v7545_v60 = vld [vmem:[%s10866_s11 + $0x2d4] ss:$12 sps:$4 sm:$0xff]  }
 0x45c   : > { %4082 = vmatprep.subr.bf16.mxu0 %v7530_v45  ;;  %4117 = vmatprep.subr.bf16.mxu1 %v7545_v60  ;;  %v7384_v60 = vpack.i.bf16 %v9128_v17, %v9119_v6 }
 0x45f   : > { %4083 = vmatpush2.bf16.msra.mxu0 %v7528_v57 }
 0x460   : > { %4084 = vmatprep.subr.bf16.mxu0 %v7536_v46  ;;  %v7543_v46 = vld [vmem:[%s10866_s11 + $0x2d0] ss:$12 sps:$4 sm:$0xff]  }
 0x461   : > { %4118 = vmatpush2.bf16.msra.mxu1 %v7543_v46 }
 0x463   : > { %4085 = vmatpush2.bf16.msra.mxu0 %v7534_v25 }
 0x464   : > { %4086 = vmatprep.subr.bf16.mxu0 %v7542_v4 }
 0x482   : > { %v7321_v5 = vpop.permute.xlu1 %7320 }
 0x483   : > { %v7323_v11 = vunpack.i.h.bf16 %v7321_v5  ;;  %v7322_v58 = vunpack.i.l.bf16 %v7321_v5  ;;  %v7540_v5 = vld [vmem:[%s10866_s11 + $0xc0] ss:$12 sps:$4 sm:$0xff]  }
 0x484   : > { %v9163_v53 = vpop.permute.xlu0 %7325  ;;  %4087 = vmatpush2.bf16.msra.mxu0 %v7540_v5  ;;  %v9255_v5 = vld [vmem:[#allocation2 + $0x98] sm:$0xff] }
 0x485   : > { %v7327_v38 = vunpack.i.l.bf16 %v9163_v53  ;;  %v7328_v33 = vunpack.i.h.bf16 %v9163_v53 }
 0x487   : > { %v2513_v8 = vsel %vm793_vm8, %v7323_v11, %v7327_v38 }
 0x488   : > { %v7336_v41 = vpop.permute.xlu0 %7335  ;;  %v9179_v13 = vpop.permute.xlu1 %7330 }
 0x489   : > { %v7338_v32 = vunpack.i.h.bf16 %v7336_v41  ;;  %v7337_v1 = vunpack.i.l.bf16 %v7336_v41  ;;  %v7333_v10 = vunpack.i.h.bf16 %v9179_v13  ;;  %v7332_v35 = vunpack.i.l.bf16 %v9179_v13  ;;  %v7575_v13 = vld [vmem:[%s10866_s11 + $0x52c] ss:$12 sps:$4 sm:$0xff]  }
 0x48b   : > { %v2511_v45 = vsel %vm793_vm8, %v7337_v1, %v7322_v58  ;;  %v2520_v61 = vsel %vm793_vm8, %v7338_v32, %v7328_v33  ;;  %v2521_v57 = vsel %vm793_vm8, %v7328_v33, %v7332_v35  ;;  %v2522_v52 = vsel %vm793_vm8, %v7332_v35, %v7333_v10 }
 0x48c   : > { %v2549_v49 = vmax.f32 %v8963_v56, %v2511_v45  ;;  %v2559_v25 = vmax.f32 %v8957_v44, %v2520_v61  ;;  %v2560_v18 = vmax.f32 %v8939_v40, %v2521_v57  ;;  %v2561_v33 = vmax.f32 %v8955_v30, %v2522_v52  ;;  %v2290_v41 = vpop.permute.xlu0 %2289  ;;  %v2272_v32 = vpop.permute.xlu1 %2271  ;;  %v7548_v44 = vld [vmem:[%s10866_s11 + $0x2bc] ss:$12 sps:$4 sm:$0xff]   ;;  %v7554_v45 = vld [vmem:[%s10866_s11 + $0x28c] ss:$12 sps:$4 sm:$0xff]  }
 0x48d   : > { %v2512_v1 = vsel %vm793_vm8, %v7322_v58, %v7323_v11  ;;  %v2306_v35 = vsel %vm737_vm11, %v9124_v42, %v2290_v41  ;;  %v2298_v39 = vsel %vm737_vm11, %v9108_v3, %v2272_v32  ;;  %v2551_v56 = vmax.f32 %v8942_v26, %v2513_v8  ;;  %v7546_v42 = vld [vmem:[%s10866_s11 + $0x2b8] ss:$12 sps:$4 sm:$0xff]   ;;  %4119 = vmatprep.subr.bf16.mxu1 %v7548_v44  ;;  %v7549_v58 = vld [vmem:[%s10866_s11 + $0x2a0] ss:$12 sps:$4 sm:$0xff]   ;;  %v7552_v57 = vld [vmem:[%s10866_s11 + $0x288] ss:$12 sps:$4 sm:$0xff]  }
 0x48e   : > { %2342 = vst.msk [vmem:[#allocation2 + $0x90] sm:$0xff] %vm1564_vm15, %v2306_v35  ;;  %2333 = vst.msk [vmem:[#allocation2 + $0x40] sm:$0xff] %vm1564_vm15, %v2298_v39  ;;  %v7374_v40 = vpack.i.bf16 %v2561_v33, %v2560_v18  ;;  %v7364_v30 = vpack.i.bf16 %v2559_v25, %v2549_v49  ;;  %v2550_v3 = vmax.f32 %v8935_v0, %v2512_v1  ;;  %4120 = vmatpush2.bf16.msra.mxu1 %v7546_v42  ;;  %v7551_v11 = vld [vmem:[%s10866_s11 + $0x2a4] ss:$12 sps:$4 sm:$0xff]   ;;  %v9237_v8 = vld [vmem:[#allocation2 + $0x48] sm:$0xff]  ;;  %vm4576_vm11 = vcmask 883712  }
 0x48f   : > { %v7379_v39 = vpack.i.bf16 %v9112_v31, %v9103_v29  ;;  %4121 = vmatprep.subr.bf16.mxu1 %v7551_v11  ;;  %v7399_v52 = vpack.i.bf16 %v8983_v55, %v8947_v21  ;;  %v7557_v49 = vld [vmem:[%s10866_s11 + $0x274] ss:$12 sps:$4 sm:$0xff]   ;;  %v7555_v25 = vld [vmem:[%s10866_s11 + $0x270] ss:$12 sps:$4 sm:$0xff]   ;;  %v7404_v18 = vpack.i.bf16 %v8994_v15, %v8961_v28  ;;  %v7558_v41 = vld [vmem:[%s10866_s11 + $0x258] ss:$12 sps:$4 sm:$0xff]  }
 0x490   : > { %7375 = vrot.lane.b32.xlu1 %v7374_v40, %s7866_s3  ;;  %7365 = vrot.lane.b32.xlu0 %v7364_v30, %s7866_s3  ;;  %v7369_v26 = vpack.i.bf16 %v2551_v56, %v2550_v3  ;;  %v7560_v33 = vld [vmem:[%s10866_s11 + $0x25c] ss:$12 sps:$4 sm:$0xff]   ;;  %v7563_v56 = vld [vmem:[%s10866_s11 + $0x244] ss:$12 sps:$4 sm:$0xff]  }
 0x491   : > { %v7561_v44 = vld [vmem:[%s10866_s11 + $0x240] ss:$12 sps:$4 sm:$0xff]  }
 0x492   : > { %4122 = vmatpush2.bf16.msra.mxu1 %v7549_v58 }
 0x493   : > { %4123 = vmatprep.subr.bf16.mxu1 %v7554_v45 }
 0x494   : > { %7380 = vrot.lane.b32.xlu1 %v7379_v39, %s10923_s25  ;;  %7370 = vrot.lane.b32.xlu0 %v7369_v26, %s7866_s3 }
 0x495   : > { %v9235_v0 = vld [vmem:[#allocation2 + $0x40] sm:$0xff]  ;;  %v9246_v61 = vld [vmem:[#allocation2 + $0x90] sm:$0xff] }
 0x496   : > { %v7389_v4 = vpack.i.bf16 %v9237_v8, %v9235_v0  ;;  %v7394_v46 = vpack.i.bf16 %v9255_v5, %v9246_v61  ;;  %4124 = vmatpush2.bf16.msra.mxu1 %v7552_v57 }
 0x497   : > { %4125 = vmatprep.subr.bf16.mxu1 %v7557_v49 }
 0x498   : > { %7390 = vrot.lane.b32.xlu1 %v7389_v4, %s10923_s25  ;;  %7385 = vrot.lane.b32.xlu0 %v7384_v60, %s10923_s25 }
 0x49a   : > { %4126 = vmatpush2.bf16.msra.mxu1 %v7555_v25 }
 0x49b   : > { %4127 = vmatprep.subr.bf16.mxu1 %v7560_v33 }
 0x49c   : > { %7400 = vrot.lane.b32.xlu1 %v7399_v52, %s10924_s2  ;;  %7395 = vrot.lane.b32.xlu0 %v7394_v46, %s10923_s25 }
 0x49e   : > { %4128 = vmatpush2.bf16.msra.mxu1 %v7558_v41 }
 0x49f   : > { %4129 = vmatprep.subr.bf16.mxu1 %v7563_v56 }
 0x4a0   : > { %v9275_v32 = vpop.permute.xlu1 %7340  ;;  %7405 = vrot.lane.b32.xlu0 %v7404_v18, %s10924_s2 }
 0x4a1   : > { %v7343_v1 = vunpack.i.h.bf16 %v9275_v32  ;;  %v7342_v35 = vunpack.i.l.bf16 %v9275_v32 }
 0x4a2   : > { %4130 = vmatpush2.bf16.msra.mxu1 %v7561_v44 }
 0x4a3   : > { %v2514_v40 = vsel %vm793_vm8, %v7327_v38, %v7342_v35  ;;  %v2515_v30 = vsel %vm793_vm8, %v7342_v35, %v7343_v1  ;;  %4185 = vmatprep.subr.bf16.mxu1 %v7575_v13 }
 0x4a4   : > { %v2552_v42 = vmax.f32 %v8947_v21, %v2514_v40  ;;  %v2553_v3 = vmax.f32 %v8983_v55, %v2515_v30  ;;  %v9294_v39 = vpop.permute.xlu0 %7345  ;;  %v7566_v21 = vld [vmem:[%s10866_s11 + $0x3ac] ss:$12 sps:$4 sm:$0xff]  }
 0x4a5   : > { %v7348_v26 = vunpack.i.h.bf16 %v9294_v39  ;;  %v7347_v53 = vunpack.i.l.bf16 %v9294_v39  ;;  %4142 = vmatprep.subr.bf16.mxu0 %v7566_v21  ;;  %v7569_v39 = vld [vmem:[%s10866_s11 + $0x394] ss:$12 sps:$4 sm:$0xff]  }
 0x4a6   : > { %v7409_v38 = vpack.i.bf16 %v2553_v3, %v2552_v42 }
 0x4a7   : > { %v2523_v11 = vsel %vm793_vm8, %v7333_v10, %v7347_v53  ;;  %v2524_v58 = vsel %vm793_vm8, %v7347_v53, %v7348_v26  ;;  %v7419_v10 = vpack.i.bf16 %v9103_v29, %v8989_v62 }
 0x4a8   : > { %v2562_v55 = vmax.f32 %v8961_v28, %v2523_v11  ;;  %v2563_v4 = vmax.f32 %v8994_v15, %v2524_v58  ;;  %7410 = vrot.lane.b32.xlu1 %v7409_v38, %s7866_s3  ;;  %v7424_v28 = vpack.i.bf16 %v9119_v6, %v9001_v47  ;;  %v9320_v15 = vpop.permute.xlu1 %7350  ;;  %v9322_v45 = vpop.permute.xlu0 %7355 }
 0x4a9   : > { %v7358_v52 = vunpack.i.h.bf16 %v9322_v45  ;;  %v7357_v46 = vunpack.i.l.bf16 %v9322_v45  ;;  %v7353_v25 = vunpack.i.h.bf16 %v9320_v15  ;;  %v7352_v18 = vunpack.i.l.bf16 %v9320_v15 }
 0x4aa   : > { %v7414_v60 = vpack.i.bf16 %v2563_v4, %v2562_v55 }
 0x4ab   : > { %v2426_v41 = vsel %vm937_vm5, %v7357_v46, %v7358_v52  ;;  %v2418_v3 = vsel %vm937_vm5, %v7352_v18, %v7353_v25 }
 0x4ac   : > { %7420 = vrot.lane.b32.xlu1 %v7419_v10, %s10924_s2  ;;  %7415 = vrot.lane.b32.xlu0 %v7414_v60, %s7866_s3  ;;  %v7361_v57 = vpop.permute.xlu1 %7360  ;;  %v2461_v13 = vmax.f32 %v8850_v36, %v2426_v41 }
 0x4ad   : > { %v7363_v49 = vunpack.i.h.bf16 %v7361_v57  ;;  %v7362_v33 = vunpack.i.l.bf16 %v7361_v57 }
 0x4af   : > { %v2425_v40 = vsel %vm937_vm5, %v7363_v49, %v7357_v46  ;;  %v2417_v53 = vsel %vm937_vm5, %v7362_v33, %v7352_v18  ;;  %v2452_v18 = vmax.f32 %v8841_v14, %v2418_v3 }
 0x4b0   : > { %7425 = vrot.lane.b32.xlu0 %v7424_v28, %s10924_s2  ;;  %v2460_v58 = vmax.f32 %v8846_v50, %v2425_v40  ;;  %v2451_v46 = vmax.f32 %v8838_v7, %v2417_v53 }
 0x502   : > { %v9331_v35 = vpop.permute.xlu1 %7375  ;;  %v7366_v56 = vpop.permute.xlu0 %7365 }
 0x503   : > { %v7378_v30 = vunpack.i.h.bf16 %v9331_v35  ;;  %v7377_v44 = vunpack.i.l.bf16 %v9331_v35  ;;  %v7368_v42 = vunpack.i.h.bf16 %v7366_v56  ;;  %v7367_v21 = vunpack.i.l.bf16 %v7366_v56 }
 0x505   : > { %v2638_v38 = vsel %vm1015_vm2, %v7368_v42, %v7377_v44  ;;  %v2639_v11 = vsel %vm1015_vm2, %v7377_v44, %v7378_v30 }
 0x506   : > { %v7381_v55 = vpop.permute.xlu1 %7380  ;;  %v9345_v4 = vpop.permute.xlu0 %7370  ;;  %v2674_v49 = vmax.f32 %v2460_v58, %v2638_v38  ;;  %v2675_v33 = vmax.f32 %v2461_v13, %v2639_v11 }
 0x507   : > { %v7383_v10 = vunpack.i.h.bf16 %v7381_v55  ;;  %v7382_v60 = vunpack.i.l.bf16 %v7381_v55  ;;  %v7373_v28 = vunpack.i.h.bf16 %v9345_v4  ;;  %v7372_v57 = vunpack.i.l.bf16 %v9345_v4 }
 0x509   : > { %v2516_v50 = vsel %vm793_vm8, %v7343_v1, %v7382_v60  ;;  %v2517_v56 = vsel %vm793_vm8, %v7382_v60, %v7383_v10  ;;  %v2629_v36 = vsel %vm1015_vm2, %v7367_v21, %v7372_v57  ;;  %v2630_v41 = vsel %vm1015_vm2, %v7372_v57, %v7373_v28 }
 0x50a   : > { %v2554_v40 = vmax.f32 %v8989_v62, %v2516_v50  ;;  %v2555_v7 = vmax.f32 %v9103_v29, %v2517_v56  ;;  %v2665_v44 = vmax.f32 %v2451_v46, %v2629_v36  ;;  %v7391_v42 = vpop.permute.xlu1 %7390  ;;  %v7386_v14 = vpop.permute.xlu0 %7385  ;;  %v2666_v3 = vmax.f32 %v2452_v18, %v2630_v41  ;;  %v7564_v62 = vld [vmem:[%s10866_s11 + $0x3a8] ss:$12 sps:$4 sm:$0xff]   ;;  %v7567_v56 = vld [vmem:[%s10866_s11 + $0x390] ss:$12 sps:$4 sm:$0xff]  }
 0x50b   : > { %v7393_v53 = vunpack.i.h.bf16 %v7391_v42  ;;  %v7392_v32 = vunpack.i.l.bf16 %v7391_v42  ;;  %v7388_v38 = vunpack.i.h.bf16 %v7386_v14  ;;  %v7387_v1 = vunpack.i.l.bf16 %v7386_v14  ;;  %v7570_v14 = vld [vmem:[%s10866_s11 + $0x378] ss:$12 sps:$4 sm:$0xff]  }
 0x50c   : > { %v7429_v11 = vpack.i.bf16 %v2555_v7, %v2554_v40  ;;  %v9362_v58 = vpack.c.bf16 %v2675_v33, %v2666_v3  ;;  %v9364_v21 = vpack.c.bf16 %v2674_v49, %v2665_v44  ;;  %v7439_v18 = vpack.i.bf16 %v9246_v61, %v9235_v0 }
 0x50d   : > { %v2525_v55 = vsel %vm793_vm8, %v7348_v26, %v7387_v1  ;;  %v2519_v29 = vsel %vm793_vm8, %v7392_v32, %v7393_v53  ;;  %v2526_v13 = vsel %vm793_vm8, %v7387_v1, %v7388_v38 }
 0x50e   : > { %v2564_v60 = vmax.f32 %v9001_v47, %v2525_v55  ;;  %7430 = vrot.lane.b32.xlu1 %v7429_v11, %s7866_s3  ;;  %v7396_v57 = vpop.permute.xlu0 %7395  ;;  %v2565_v46 = vmax.f32 %v9119_v6, %v2526_v13  ;;  %4088 = vmatprep.mubr.bf16.mxu0 %v9362_v58  ;;  %v2558_v47 = vmax.f32 %v9237_v8, %v7393_v53  ;;  %v7572_v8 = vld [vmem:[%s10866_s11 + $0x37c] ss:$12 sps:$4 sm:$0xff]   ;;  %v9399_v40 = vpop.permute.xlu1 %7400  ;;  %v7584_v13 = vld [vmem:[%s10866_s11 + $0x34c] ss:$12 sps:$4 sm:$0xff]  }
 0x50f   : > { %v7398_v49 = vunpack.i.h.bf16 %v7396_v57  ;;  %v7397_v26 = vunpack.i.l.bf16 %v7396_v57  ;;  %4089 = vmatmul.mubr.bf16.vlgmr.msra.gmra.mxu0 %v9364_v21  ;;  %v2557_v33 = vmax.f32 %v9235_v0, %v2519_v29  ;;  %v7403_v53 = vunpack.i.h.bf16 %v9399_v40 }
 0x510   : > { %v7434_v6 = vpack.i.bf16 %v2565_v46, %v2564_v60  ;;  %4143 = vmatpush1.bf16.msra.mxu0 %v7564_v62  ;;  %v7576_v62 = vld [vmem:[%s10866_s11 + $0x360] ss:$12 sps:$4 sm:$0xff]  }
 0x511   : > { %v2568_v50 = vmax.f32 %v9255_v5, %v7398_v49  ;;  %v2527_v36 = vsel %vm793_vm8, %v7388_v38, %v7397_v26  ;;  %v2528_v41 = vsel %vm793_vm8, %v7397_v26, %v7398_v49  ;;  %4144 = vmatprep.subr.bf16.mxu0 %v7569_v39  ;;  %v2518_v5 = vsel %vm793_vm8, %v7383_v10, %v7392_v32  ;;  %v7582_v39 = vld [vmem:[%s10866_s11 + $0x348] ss:$12 sps:$4 sm:$0xff]  }
 0x512   : > { %7440 = vrot.lane.b32.xlu1 %v7439_v18, %s10924_s2  ;;  %v2567_v0 = vmax.f32 %v9246_v61, %v2528_v41  ;;  %7435 = vrot.lane.b32.xlu0 %v7434_v6, %s7866_s3  ;;  %v2566_v7 = vmax.f32 %v9128_v17, %v2527_v36  ;;  %v7444_v42 = vpack.i.bf16 %v2558_v47, %v2557_v33  ;;  %v9405_v3 = vpop.permute.xlu0 %7405  ;;  %v7578_v61 = vld [vmem:[%s10866_s11 + $0x364] ss:$12 sps:$4 sm:$0xff]   ;;  %v7402_v38 = vunpack.i.l.bf16 %v9399_v40 }
 0x513   : > { %v2556_v10 = vmax.f32 %v9112_v31, %v2518_v5  ;;  %v7454_v32 = vpack.i.bf16 %v9128_v17, %v9112_v31  ;;  %v7408_v1 = vunpack.i.h.bf16 %v9405_v3  ;;  %v7407_v11 = vunpack.i.l.bf16 %v9405_v3  ;;  %v7602_v5 = vld [vmem:[%s10866_s11 + $0x304] ss:$12 sps:$4 sm:$0xff]  }
 0x514   : > { %v7449_v44 = vpack.i.bf16 %v2568_v50, %v2567_v0  ;;  %4145 = vmatpush1.bf16.msra.mxu0 %v7567_v56  ;;  %v2419_v60 = vsel %vm937_vm5, %v7353_v25, %v7402_v38  ;;  %v2420_v57 = vsel %vm937_vm5, %v7402_v38, %v7403_v53  ;;  %v7590_v25 = vld [vmem:[%s10866_s11 + $0x334] ss:$12 sps:$4 sm:$0xff]   ;;  %v7588_v56 = vld [vmem:[%s10866_s11 + $0x330] ss:$12 sps:$4 sm:$0xff]   ;;  %v7594_v0 = vld [vmem:[%s10866_s11 + $0x318] ss:$12 sps:$4 sm:$0xff]  }
 0x515   : > { %4146 = vmatprep.subr.bf16.mxu0 %v7572_v8  ;;  %v7459_v55 = vpack.i.bf16 %v2566_v7, %v2556_v10  ;;  %v2427_v46 = vsel %vm937_vm5, %v7358_v52, %v7407_v11  ;;  %v2428_v49 = vsel %vm937_vm5, %v7407_v11, %v7408_v1  ;;  %v2453_v47 = vmax.f32 %v8863_v27, %v2419_v60  ;;  %v7581_v8 = vld [vmem:[%s10866_s11 + $0x514] ss:$12 sps:$4 sm:$0xff]   ;;  %v7579_v7 = vld [vmem:[%s10866_s11 + $0x510] ss:$12 sps:$4 sm:$0xff]  }
 0x516   : > { %7450 = vrot.lane.b32.xlu1 %v7449_v44, %s7866_s3  ;;  %7445 = vrot.lane.b32.xlu0 %v7444_v42, %s7866_s3  ;;  %v2462_v33 = vmax.f32 %v8871_v24, %v2427_v46  ;;  %v2454_v50 = vmax.f32 %v8866_v37, %v2420_v57  ;;  %v2463_v6 = vmax.f32 %v8875_v43, %v2428_v49  ;;  %v7596_v37 = vld [vmem:[%s10866_s11 + $0x31c] ss:$12 sps:$4 sm:$0xff]   ;;  %v7600_v42 = vld [vmem:[%s10866_s11 + $0x300] ss:$12 sps:$4 sm:$0xff]  }
 0x517   : > { %v7587_v44 = vld [vmem:[%s10866_s11 + $0x4fc] ss:$12 sps:$4 sm:$0xff]   ;;  %v7593_v10 = vld [vmem:[%s10866_s11 + $0x4e4] ss:$12 sps:$4 sm:$0xff]   ;;  %v7614_v38 = vld [vmem:[%s10866_s11 + $0x454] ss:$12 sps:$4 sm:$0xff]  }
 0x518   : > { %4147 = vmatpush1.bf16.msra.mxu0 %v7570_v14  ;;  %v7608_v14 = vld [vmem:[%s10866_s11 + $0x46c] ss:$12 sps:$4 sm:$0xff]   ;;  %v7605_v60 = vld [vmem:[%s10866_s11 + $0x4b4] ss:$12 sps:$4 sm:$0xff]   ;;  %v7626_v46 = vld [vmem:[%s10866_s11 + $0x424] ss:$12 sps:$4 sm:$0xff]  }
 0x519   : > { %4148 = vmatprep.subr.bf16.mxu0 %v7578_v61  ;;  %v7585_v61 = vld [vmem:[%s10866_s11 + $0x4f8] ss:$12 sps:$4 sm:$0xff]   ;;  %v7591_v11 = vld [vmem:[%s10866_s11 + $0x4e0] ss:$12 sps:$4 sm:$0xff]   ;;  %v7603_v49 = vld [vmem:[%s10866_s11 + $0x4b0] ss:$12 sps:$4 sm:$0xff]  }
 0x51a   : > { %v9422_v29 = vpop.permute.xlu1 %7410  ;;  %7460 = vrot.lane.b32.xlu1 %v7459_v55, %s7866_s3  ;;  %7455 = vrot.lane.b32.xlu0 %v7454_v32, %s10924_s2  ;;  %v7606_v32 = vld [vmem:[%s10866_s11 + $0x468] ss:$12 sps:$4 sm:$0xff]   ;;  %v7599_v55 = vld [vmem:[%s10866_s11 + $0x4cc] ss:$12 sps:$4 sm:$0xff]   ;;  %s10927_s3 = sld [smem:[#allocation10_spill]] }
 0x51b   : > { %v7413_v31 = vunpack.i.h.bf16 %v9422_v29  ;;  %v7412_v17 = vunpack.i.l.bf16 %v9422_v29  ;;  %v7618_v57 = vld [vmem:[%s10866_s11 + $0x438] ss:$12 sps:$4 sm:$0xff]  }
 0x51c   : > { %4149 = vmatpush1.bf16.msra.mxu0 %v7576_v62  ;;  %v7612_v62 = vld [vmem:[%s10866_s11 + $0x450] ss:$12 sps:$4 sm:$0xff]  }
 0x51d   : > { %4150 = vmatprep.subr.bf16.mxu0 %v7584_v13  ;;  %v2631_v45 = vsel %vm1015_vm2, %v7373_v28, %v7412_v17  ;;  %v2632_v18 = vsel %vm1015_vm2, %v7412_v17, %v7413_v31  ;;  %v7620_v13 = vld [vmem:[%s10866_s11 + $0x43c] ss:$12 sps:$4 sm:$0xff]  }
 0x51e   : > { %v9446_v15 = vpop.permute.xlu0 %7415  ;;  %v2667_v27 = vmax.f32 %v2453_v47, %v2631_v45  ;;  %v2668_v24 = vmax.f32 %v2454_v50, %v2632_v18  ;;  %v7597_v17 = vld [vmem:[%s10866_s11 + $0x4c8] ss:$12 sps:$4 sm:$0xff]   ;;  %v7632_v45 = vld [vmem:[%s10866_s11 + $0x40c] ss:$12 sps:$4 sm:$0xff]   ;;  %v7617_v18 = vld [vmem:[%s10866_s11 + $0x484] ss:$12 sps:$4 sm:$0xff]  }
 0x51f   : > { %v7418_v52 = vunpack.i.h.bf16 %v9446_v15  ;;  %v7417_v26 = vunpack.i.l.bf16 %v9446_v15  ;;  %v7630_v47 = vld [vmem:[%s10866_s11 + $0x408] ss:$12 sps:$4 sm:$0xff]   ;;  %v7615_v50 = vld [vmem:[%s10866_s11 + $0x480] ss:$12 sps:$4 sm:$0xff]  }
 0x520   : > { %4151 = vmatpush1.bf16.msra.mxu0 %v7582_v39  ;;  %v7611_v39 = vld [vmem:[%s10866_s11 + $0x49c] ss:$12 sps:$4 sm:$0xff]  }
 0x521   : > { %v2640_v4 = vsel %vm1015_vm2, %v7378_v30, %v7417_v26  ;;  %v2641_v28 = vsel %vm1015_vm2, %v7417_v26, %v7418_v52  ;;  %4152 = vmatprep.subr.bf16.mxu0 %v7590_v25  ;;  %v7573_v30 = vld [vmem:[%s10866_s11 + $0x528] ss:$12 sps:$4 sm:$0xff]   ;;  %v7624_v25 = vld [vmem:[%s10866_s11 + $0x420] ss:$12 sps:$4 sm:$0xff]   ;;  %v7609_v26 = vld [vmem:[%s10866_s11 + $0x498] ss:$12 sps:$4 sm:$0xff]  }
 0x522   : > { %v2676_v36 = vmax.f32 %v2462_v33, %v2640_v4  ;;  %v2677_v41 = vmax.f32 %v2463_v6, %v2641_v28  ;;  %v7638_v33 = vld [vmem:[%s10866_s11 + $0x3f4] ss:$12 sps:$4 sm:$0xff]   ;;  %v7623_v6 = vld [vmem:[%s10866_s11 + $0x5ec] ss:$12 sps:$4 sm:$0xff]   ;;  %v7636_v4 = vld [vmem:[%s10866_s11 + $0x3f0] ss:$12 sps:$4 sm:$0xff]  }
 0x523   : > { %v7644_v28 = vld [vmem:[%s10866_s11 + $0x3dc] ss:$12 sps:$4 sm:$0xff]  }
 0x524   : > { %v9475_v43 = vpack.c.bf16 %v2677_v41, %v2668_v24  ;;  %v9477_v35 = vpack.c.bf16 %v2676_v36, %v2667_v27  ;;  %4153 = vmatpush1.bf16.msra.mxu0 %v7588_v56  ;;  %v7621_v56 = vld [vmem:[%s10866_s11 + $0x5e8] ss:$12 sps:$4 sm:$0xff]   ;;  %v7642_v36 = vld [vmem:[%s10866_s11 + $0x3d8] ss:$12 sps:$4 sm:$0xff]   ;;  %v7627_v41 = vld [vmem:[%s10866_s11 + $0x5d0] ss:$12 sps:$4 sm:$0xff]  }
 0x525   : > { %4154 = vmatprep.subr.bf16.mxu0 %v7596_v37  ;;  %v7629_v27 = vld [vmem:[%s10866_s11 + $0x5d4] ss:$12 sps:$4 sm:$0xff]   ;;  %v7650_v24 = vld [vmem:[%s10866_s11 + $0x3c4] ss:$12 sps:$4 sm:$0xff]   ;;  %v7635_v37 = vld [vmem:[%s10866_s11 + $0x5bc] ss:$12 sps:$4 sm:$0xff]  }
 0x526   : > { %4131 = vmatprep.mubr.bf16.mxu1 %v9475_v43 }
 0x527   : > { %4132 = vmatmul.mubr.bf16.vlgmr.msra.gmra.mxu1 %v9477_v35 }
 0x528   : > { %4186 = vmatpush1.bf16.msra.mxu1 %v7573_v30  ;;  %4155 = vmatpush1.bf16.msra.mxu0 %v7594_v0  ;;  %v7648_v30 = vld [vmem:[%s10866_s11 + $0x3c0] ss:$12 sps:$4 sm:$0xff]   ;;  %v7633_v0 = vld [vmem:[%s10866_s11 + $0x5b8] ss:$12 sps:$4 sm:$0xff]  }
 0x529   : > { %4187 = vmatprep.subr.bf16.mxu1 %v7581_v8  ;;  %4156 = vmatprep.subr.bf16.mxu0 %v7602_v5  ;;  %v7656_v8 = vld [vmem:[%s10866_s11 + $0x64c] ss:$12 sps:$4 sm:$0xff]   ;;  %v7641_v5 = vld [vmem:[%s10866_s11 + $0x5a4] ss:$12 sps:$4 sm:$0xff]  }
 0x52c   : > { %4188 = vmatpush1.bf16.msra.mxu1 %v7579_v7  ;;  %4157 = vmatpush1.bf16.msra.mxu0 %v7600_v42  ;;  %v7639_v7 = vld [vmem:[%s10866_s11 + $0x5a0] ss:$12 sps:$4 sm:$0xff]   ;;  %v7645_v42 = vld [vmem:[%s10866_s11 + $0x588] ss:$12 sps:$4 sm:$0xff]  }
 0x52d   : > { %4189 = vmatprep.subr.bf16.mxu1 %v7587_v44  ;;  %4158 = vmatprep.subr.bf16.mxu0 %v7608_v14  ;;  %v7647_v44 = vld [vmem:[%s10866_s11 + $0x58c] ss:$12 sps:$4 sm:$0xff]   ;;  %v7653_v14 = vld [vmem:[%s10866_s11 + $0x574] ss:$12 sps:$4 sm:$0xff]  }
 0x530   : > { %4190 = vmatpush1.bf16.msra.mxu1 %v7585_v61  ;;  %4159 = vmatpush2.bf16.msra.mxu0 %v7606_v32  ;;  %v7651_v61 = vld [vmem:[%s10866_s11 + $0x570] ss:$12 sps:$4 sm:$0xff]   ;;  %v7657_v32 = vld [vmem:[%s10866_s11 + $0x558] ss:$12 sps:$4 sm:$0xff]  }
 0x531   : > { %4191 = vmatprep.subr.bf16.mxu1 %v7593_v10  ;;  %4160 = vmatprep.subr.bf16.mxu0 %v7614_v38  ;;  %v7659_v10 = vld [vmem:[%s10866_s11 + $0x55c] ss:$12 sps:$4 sm:$0xff]   ;;  %v7665_v38 = vld [vmem:[%s10866_s11 + $0x544] ss:$12 sps:$4 sm:$0xff]  }
 0x534   : > { %4192 = vmatpush1.bf16.msra.mxu1 %v7591_v11  ;;  %4161 = vmatpush2.bf16.msra.mxu0 %v7612_v62  ;;  %v7663_v11 = vld [vmem:[%s10866_s11 + $0x540] ss:$12 sps:$4 sm:$0xff]   ;;  %v7421_v62 = vpop.permute.xlu1 %7420 }
 0x535   : > { %4193 = vmatprep.subr.bf16.mxu1 %v7599_v55  ;;  %4162 = vmatprep.subr.bf16.mxu0 %v7620_v13  ;;  %v7669_v55 = vld [vmem:[%s10866_s11 + $0x2f0] ss:$12 sps:$4 sm:$0xff]   ;;  %v7426_v13 = vpop.permute.xlu0 %7425 }
 0x538   : > { %4194 = vmatpush1.bf16.msra.mxu1 %v7597_v17  ;;  %4163 = vmatpush2.bf16.msra.mxu0 %v7618_v57  ;;  %v7423_v17 = vunpack.i.h.bf16 %v7421_v62  ;;  %v7428_v57 = vunpack.i.h.bf16 %v7426_v13 }
 0x539   : > { %4195 = vmatprep.subr.bf16.mxu1 %v7605_v60  ;;  %4164 = vmatprep.subr.bf16.mxu0 %v7626_v46  ;;  %v7422_v60 = vunpack.i.l.bf16 %v7421_v62  ;;  %v7427_v46 = vunpack.i.l.bf16 %v7426_v13  ;;  %v7668_v62 = vld [vmem:[%s10866_s11 + $0x61c] ss:$12 sps:$4 sm:$0xff]  }
 0x53c   : > { %4196 = vmatpush1.bf16.msra.mxu1 %v7603_v49  ;;  %4165 = vmatpush2.bf16.msra.mxu0 %v7624_v25 }
 0x53d   : > { %4197 = vmatprep.subr.bf16.mxu1 %v7611_v39  ;;  %4166 = vmatprep.subr.bf16.mxu0 %v7632_v45  ;;  %v2421_v45 = vsel %vm937_vm5, %v7403_v53, %v7422_v60 }
 0x53e   : > { %v2455_v53 = vmax.f32 %v8889_v54, %v2421_v45  ;;  %v7654_v54 = vld [vmem:[%s10866_s11 + $0x648] ss:$12 sps:$4 sm:$0xff]  }
 0x540   : > { %4198 = vmatpush1.bf16.msra.mxu1 %v7609_v26  ;;  %4167 = vmatpush2.bf16.msra.mxu0 %v7630_v47  ;;  %v2422_v26 = vsel %vm937_vm5, %v7422_v60, %v7423_v17  ;;  %v2430_v47 = vsel %vm937_vm5, %v7427_v46, %v7428_v57 }
 0x541   : > { %4199 = vmatprep.subr.bf16.mxu1 %v7617_v18  ;;  %4168 = vmatprep.subr.bf16.mxu0 %v7638_v33  ;;  %v2429_v18 = vsel %vm937_vm5, %v7408_v1, %v7427_v46  ;;  %v2456_v3 = vmax.f32 %v8892_v9, %v2422_v26  ;;  %v2465_v1 = vmax.f32 %v8901_v63, %v2430_v47 }
 0x544   : > { %4200 = vmatpush1.bf16.msra.mxu1 %v7615_v50  ;;  %4169 = vmatpush2.bf16.msra.mxu0 %v7636_v4 }
 0x545   : > { %4201 = vmatprep.subr.bf16.mxu1 %v7623_v6  ;;  %4170 = vmatprep.subr.bf16.mxu0 %v7644_v28 }
 0x548   : > { %4202 = vmatpush2.bf16.msra.mxu1 %v7621_v56  ;;  %4171 = vmatpush2.bf16.msra.mxu0 %v7642_v36  ;;  %v2464_v56 = vmax.f32 %v8897_v48, %v2429_v18  ;;  %v7662_v48 = vld [vmem:[%s10866_s11 + $0x634] ss:$12 sps:$4 sm:$0xff]  }
 0x549   : > { %4203 = vmatprep.subr.bf16.mxu1 %v7629_v27  ;;  %4172 = vmatprep.subr.bf16.mxu0 %v7650_v24 }
 0x54c   : > { %4204 = vmatpush2.bf16.msra.mxu1 %v7627_v41  ;;  %4173 = vmatpush2.bf16.msra.mxu0 %v7648_v30 }
 0x54d   : > { %4205 = vmatprep.subr.bf16.mxu1 %v7635_v37  ;;  %4236 = vmatprep.subr.bf16.mxu0 %v7656_v8 }
 0x550   : > { %4206 = vmatpush2.bf16.msra.mxu1 %v7633_v0 }
 0x551   : > { %4207 = vmatprep.subr.bf16.mxu1 %v7641_v5 }
 0x554   : > { %4208 = vmatpush2.bf16.msra.mxu1 %v7639_v7 }
 0x555   : > { %4209 = vmatprep.subr.bf16.mxu1 %v7647_v44 }
 0x558   : > { %4210 = vmatpush2.bf16.msra.mxu1 %v7645_v42 }
 0x559   : > { %4211 = vmatprep.subr.bf16.mxu1 %v7653_v14 }
 0x55c   : > { %4212 = vmatpush2.bf16.msra.mxu1 %v7651_v61 }
 0x55d   : > { %4213 = vmatprep.subr.bf16.mxu1 %v7659_v10  ;;  %v7660_v10 = vld [vmem:[%s10866_s11 + $0x630] ss:$12 sps:$4 sm:$0xff]  }
 0x560   : > { %4214 = vmatpush2.bf16.msra.mxu1 %v7657_v32 }
 0x561   : > { %4215 = vmatprep.subr.bf16.mxu1 %v7665_v38 }
 0x564   : > { %4216 = vmatpush2.bf16.msra.mxu1 %v7663_v11 }
 0x565   : > { %6915 = vmatprep.subr.bf16.mxu1 %v7669_v55 }
 0x580   : > { %v7431_v49 = vpop.permute.xlu1 %7430 }
 0x581   : > { %v7433_v39 = vunpack.i.h.bf16 %v7431_v49  ;;  %v7432_v25 = vunpack.i.l.bf16 %v7431_v49 }
 0x583   : > { %v2633_v6 = vsel %vm1015_vm2, %v7413_v31, %v7432_v25  ;;  %v2634_v40 = vsel %vm1015_vm2, %v7432_v25, %v7433_v39 }
 0x584   : > { %v9645_v33 = vpop.permute.xlu1 %7440  ;;  %v7436_v50 = vpop.permute.xlu0 %7435  ;;  %v2669_v36 = vmax.f32 %v2455_v53, %v2633_v6  ;;  %v2670_v37 = vmax.f32 %v2456_v3, %v2634_v40  ;;  %v7670_v53 = vld [vmem:[%s10866_s11 + $0x230] ss:$12 sps:$4 sm:$0xff]   ;;  %v7674_v3 = vld [vmem:[%s10866_s11 + $0x2d8] ss:$12 sps:$4 sm:$0xff]  }
 0x585   : > { %v7438_v4 = vunpack.i.h.bf16 %v7436_v50  ;;  %v7437_v28 = vunpack.i.l.bf16 %v7436_v50  ;;  %v7442_v44 = vunpack.i.l.bf16 %v9645_v33 }
 0x587   : > { %v2642_v27 = vsel %vm1015_vm2, %v7418_v52, %v7437_v28  ;;  %v2643_v29 = vsel %vm1015_vm2, %v7437_v28, %v7438_v4  ;;  %v7443_v52 = vunpack.i.h.bf16 %v9645_v33 }
 0x588   : > { %v2678_v31 = vmax.f32 %v2464_v56, %v2642_v27  ;;  %v7451_v24 = vpop.permute.xlu1 %7450  ;;  %v7446_v41 = vpop.permute.xlu0 %7445  ;;  %v2679_v30 = vmax.f32 %v2465_v1, %v2643_v29  ;;  %v7671_v56 = vld [vmem:[%s10866_s11 + $0x600] ss:$12 sps:$4 sm:$0xff]   ;;  %v7675_v27 = vld [vmem:[%s10866_s11 + $0x218] ss:$12 sps:$4 sm:$0xff]   ;;  %v7677_v29 = vld [vmem:[%s10866_s11 + $0xb0] ss:$12 sps:$4 sm:$0xff]  }
 0x589   : > { %v7453_v42 = vunpack.i.h.bf16 %v7451_v24  ;;  %v7452_v14 = vunpack.i.l.bf16 %v7451_v24  ;;  %v7448_v32 = vunpack.i.h.bf16 %v7446_v41  ;;  %v7447_v38 = vunpack.i.l.bf16 %v7446_v41  ;;  %v7679_v24 = vld [vmem:[%s10866_s11 + $0x200] ss:$12 sps:$4 sm:$0xff]   ;;  %v7681_v41 = vld [vmem:[%s10866_s11 + $0x98] ss:$12 sps:$4 sm:$0xff]  }
 0x58a   : > { %v9659_v8 = vpack.c.bf16 %v2679_v30, %v2670_v37  ;;  %v9664_v9 = vpack.c.bf16 %v2678_v31, %v2669_v36  ;;  %v2468_v6 = vmax.f32 %v8976_v59, %v7443_v52  ;;  %v7678_v31 = vld [vmem:[%s10866_s11 + $0x2c0] ss:$12 sps:$4 sm:$0xff]   ;;  %v7682_v37 = vld [vmem:[%s10866_s11 + $0x2a8] ss:$12 sps:$4 sm:$0xff]  }
 0x58b   : > { %v7684_v30 = vld [vmem:[%s10866_s11 + $0x140] ss:$12 sps:$4 sm:$0xff]  }
 0x58c   : > { %v7461_v63 = vpop.permute.xlu1 %7460  ;;  %v7456_v15 = vpop.permute.xlu0 %7455  ;;  %4174 = vmatprep.mubr.bf16.mxu0 %v9659_v8 }
 0x58d   : > { %v7463_v0 = vunpack.i.h.bf16 %v7461_v63  ;;  %v7458_v5 = vunpack.i.h.bf16 %v7456_v15  ;;  %v7457_v7 = vunpack.i.l.bf16 %v7456_v15  ;;  %4175 = vmatmul.mubr.bf16.vlgmr.msra.gmra.mxu0 %v9664_v9  ;;  %v7462_v61 = vunpack.i.l.bf16 %v7461_v63  ;;  %v7688_v63 = vld [vmem:[%s10866_s11 + $0x128] ss:$12 sps:$4 sm:$0xff]   ;;  %v7687_v15 = vld [vmem:[%s10866_s11 + $0x1d0] ss:$12 sps:$4 sm:$0xff]  }
 0x58e   : > { %4237 = vmatpush1.bf16.msra.mxu0 %v7654_v54  ;;  %4260 = vmatprep.mubr.bf16.mxu0 %v7871_v12  ;;  %v7683_v54 = vld [vmem:[%s10866_s11 + $0x1e8] ss:$12 sps:$4 sm:$0xff]  }
 0x58f   : > { %v2431_v11 = vsel %vm937_vm5, %v7428_v57, %v7458_v5  ;;  %v2432_v55 = vsel %vm937_vm5, %v7458_v5, %v7443_v52  ;;  %4238 = vmatprep.subr.bf16.mxu0 %v7662_v48  ;;  %v2423_v60 = vsel %vm937_vm5, %v7423_v17, %v7457_v7  ;;  %v2424_v46 = vsel %vm937_vm5, %v7457_v7, %v7442_v44  ;;  %v7686_v48 = vld [vmem:[%s10866_s11 + $0x290] ss:$12 sps:$4 sm:$0xff]   ;;  %v7689_v52 = vld [vmem:[%s10866_s11 + $0x68] ss:$12 sps:$4 sm:$0xff]   ;;  %v7691_v7 = vld [vmem:[%s10866_s11 + $0x1b8] ss:$12 sps:$4 sm:$0xff]  }
 0x590   : > { %v2466_v13 = vmax.f32 %v8923_v23, %v2431_v11  ;;  %v2467_v49 = vmax.f32 %v8927_v19, %v2432_v55  ;;  %v2644_v25 = vsel %vm1015_vm2, %v7438_v4, %v7463_v0  ;;  %v2457_v45 = vmax.f32 %v8915_v16, %v2423_v60  ;;  %v7666_v23 = vld [vmem:[%s10866_s11 + $0x618] ss:$12 sps:$4 sm:$0xff]   ;;  %v7692_v5 = vld [vmem:[%s10866_s11 + $0x110] ss:$12 sps:$4 sm:$0xff]   ;;  %v7699_v11 = vld [vmem:[%s10866_s11 + $0x188] ss:$12 sps:$4 sm:$0xff]  }
 0x591   : > { %v2458_v57 = vmax.f32 %v8918_v20, %v2424_v46  ;;  %v2645_v26 = vsel %vm1015_vm2, %v7463_v0, %v7452_v14  ;;  %v2635_v18 = vsel %vm1015_vm2, %v7433_v39, %v7462_v61  ;;  %v2636_v17 = vsel %vm1015_vm2, %v7462_v61, %v7447_v38  ;;  %v7673_v16 = vld [vmem:[%s10866_s11 + $0x604] ss:$12 sps:$4 sm:$0xff]   ;;  %v7695_v61 = vld [vmem:[%s10866_s11 + $0x1a0] ss:$12 sps:$4 sm:$0xff]   ;;  %v7705_v46 = vld [vmem:[%s10866_s11 + $0x8] ss:$12 sps:$4 sm:$0xff]  }
 0x592   : > { %4239 = vmatpush1.bf16.msra.mxu0 %v7660_v10  ;;  %v2681_v47 = vmax.f32 %v2467_v49, %v2645_v26  ;;  %v2680_v33 = vmax.f32 %v2466_v13, %v2644_v25  ;;  %v2671_v50 = vmax.f32 %v2457_v45, %v2635_v18  ;;  %v2646_v20 = vsel %vm1015_vm2, %v7452_v14, %v7453_v42  ;;  %v7690_v0 = vld [vmem:[%s10866_s11 + $0x278] ss:$12 sps:$4 sm:$0xff]   ;;  %v7694_v42 = vld [vmem:[%s10866_s11 + $0x260] ss:$12 sps:$4 sm:$0xff]   ;;  %v7704_v13 = vld [vmem:[%s10866_s11 + $0xc8] ss:$12 sps:$4 sm:$0xff]  }
 0x593   : > { %4240 = vmatprep.subr.bf16.mxu0 %v7668_v62  ;;  %v2672_v19 = vmax.f32 %v2458_v57, %v2636_v17  ;;  %v2637_v39 = vsel %vm1015_vm2, %v7447_v38, %v7448_v32  ;;  %v2459_v4 = vmax.f32 %v8974_v2, %v7442_v44  ;;  %v2682_v59 = vmax.f32 %v2468_v6, %v2646_v20  ;;  %v7676_v2 = vld [vmem:[%s10866_s11 + $0x170] ss:$12 sps:$4 sm:$0xff]   ;;  %v7696_v14 = vld [vmem:[%s10866_s11 + $0xf8] ss:$12 sps:$4 sm:$0xff]   ;;  %v7698_v32 = vld [vmem:[%s10866_s11 + $0x248] ss:$12 sps:$4 sm:$0xff]  }
 0x594   : > { %v9704_v40 = vpack.c.bf16 %v2680_v33, %v2671_v50  ;;  %v7693_v44 = vld [vmem:[%s10866_s11 + $0x50] ss:$12 sps:$4 sm:$0xff]   ;;  %v7697_v10 = vld [vmem:[%s10866_s11 + $0x38] ss:$12 sps:$4 sm:$0xff]   ;;  %v7700_v38 = vld [vmem:[%s10866_s11 + $0xe0] ss:$12 sps:$4 sm:$0xff]  }
 0x595   : > { %v9702_v28 = vpack.c.bf16 %v2681_v47, %v2672_v19  ;;  %v2673_v1 = vmax.f32 %v2459_v4, %v2637_v39  ;;  %v7701_v55 = vld [vmem:[%s10866_s11 + $0x20] ss:$12 sps:$4 sm:$0xff]   ;;  %v7702_v62 = vld [vmem:[%s10866_s11 + $0x5f0] ss:$12 sps:$4 sm:$0xff]   ;;  %v7706_v49 = vld [vmem:[%s10866_s11 + $0x5d8] ss:$12 sps:$4 sm:$0xff]  }
 0x596   : > { %4241 = vmatpush1.bf16.msra.mxu0 %v7666_v23  ;;  %v7703_v60 = vld [vmem:[%s10866_s11 + $0x530] ss:$12 sps:$4 sm:$0xff]   ;;  %v7707_v45 = vld [vmem:[%s10866_s11 + $0x518] ss:$12 sps:$4 sm:$0xff]   ;;  %v7710_v26 = vld [vmem:[%s10866_s11 + $0x5c0] ss:$12 sps:$4 sm:$0xff]  }
 0x597   : > { %4217 = vmatprep.mubr.bf16.mxu1 %v9702_v28  ;;  %4242 = vmatprep.subr.bf16.mxu0 %v7673_v16  ;;  %v9727_v36 = vpack.c.bf16 %v2682_v59, %v2673_v1  ;;  %v7708_v25 = vld [vmem:[%s10866_s11 + $0x470] ss:$12 sps:$4 sm:$0xff]   ;;  %v7711_v18 = vld [vmem:[%s10866_s11 + $0x500] ss:$12 sps:$4 sm:$0xff]   ;;  %v7713_v23 = vld [vmem:[%s10866_s11 + $0x398] ss:$12 sps:$4 sm:$0xff]  }
 0x598   : > { %4218 = vmatmul.mubr.bf16.vlgmr.msra.gmra.mxu1 %v9704_v40  ;;  %v7709_v57 = vld [vmem:[%s10866_s11 + $0x3b0] ss:$12 sps:$4 sm:$0xff]   ;;  %v7714_v17 = vld [vmem:[%s10866_s11 + $0x5a8] ss:$12 sps:$4 sm:$0xff]   ;;  %v7722_v20 = vld [vmem:[%s10866_s11 + $0x578] ss:$12 sps:$4 sm:$0xff]  }
 0x599   : > { %6916 = vmatpush3.bf16.msra.mxu1 %v7670_v53  ;;  %4344 = vmatprep.mubr.bf16.mxu1 %v9475_v43  ;;  %v7680_v43 = vld [vmem:[%s10866_s11 + $0x158] ss:$12 sps:$4 sm:$0xff]   ;;  %v7715_v47 = vld [vmem:[%s10866_s11 + $0x4e8] ss:$12 sps:$4 sm:$0xff]   ;;  %v7718_v33 = vld [vmem:[%s10866_s11 + $0x590] ss:$12 sps:$4 sm:$0xff]  }
 0x59a   : > { %4243 = vmatpush1.bf16.msra.mxu0 %v7671_v56  ;;  %6917 = vmatprep.subr.bf16.mxu1 %v7674_v3  ;;  %v7720_v19 = vld [vmem:[%s10866_s11 + $0x428] ss:$12 sps:$4 sm:$0xff]   ;;  %v7719_v50 = vld [vmem:[%s10866_s11 + $0x4d0] ss:$12 sps:$4 sm:$0xff]   ;;  %v7723_v6 = vld [vmem:[%s10866_s11 + $0x4b8] ss:$12 sps:$4 sm:$0xff]  }
 0x59b   : > { %6893 = vmatprep.subr.bf16.mxu0 %v7676_v2  ;;  %v7721_v16 = vld [vmem:[%s10866_s11 + $0x368] ss:$12 sps:$4 sm:$0xff]   ;;  %v7724_v39 = vld [vmem:[%s10866_s11 + $0x410] ss:$12 sps:$4 sm:$0xff]   ;;  %v7728_v53 = vld [vmem:[%s10866_s11 + $0x3f8] ss:$12 sps:$4 sm:$0xff]  }
 0x59c   : > { %v7725_v4 = vld [vmem:[%s10866_s11 + $0x350] ss:$12 sps:$4 sm:$0xff]   ;;  %v7727_v56 = vld [vmem:[%s10866_s11 + $0x4a0] ss:$12 sps:$4 sm:$0xff]   ;;  %v7729_v3 = vld [vmem:[%s10866_s11 + $0x338] ss:$12 sps:$4 sm:$0xff]  }
 0x59d   : > { %6918 = vmatpush3.bf16.msra.mxu1 %v7675_v27  ;;  %6783 = vmatmul.mubr.msk.bf16.vlgmr.msra.gmra.mxu0 %vm4052_vm0, %v9727_v36  ;;  %v7730_v59 = vld [vmem:[%s10866_s11 + $0x548] ss:$12 sps:$4 sm:$0xff]   ;;  %v7732_v1 = vld [vmem:[%s10866_s11 + $0x3e0] ss:$12 sps:$4 sm:$0xff]   ;;  %vm751_vm2 = vcmask 572824  }
 0x59e   : > { %6894 = vmatpush3.bf16.msra.mxu0 %v7677_v29  ;;  %4303 = vmatprep.mubr.bf16.mxu0 %v9362_v58  ;;  %v7685_v58 = vld [vmem:[%s10866_s11 + $0x80] ss:$12 sps:$4 sm:$0xff]   ;;  %v7731_v2 = vld [vmem:[%s10866_s11 + $0x488] ss:$12 sps:$4 sm:$0xff]  }
 0x59f   : > { %6919 = vmatprep.subr.bf16.mxu1 %v7678_v31  ;;  %6895 = vmatprep.subr.bf16.mxu0 %v7680_v43  ;;  %v7733_v27 = vld [vmem:[%s10866_s11 + $0x320] ss:$12 sps:$4 sm:$0xff]   ;;  %v7734_v29 = vld [vmem:[%s10866_s11 + $0x3c8] ss:$12 sps:$4 sm:$0xff]   ;;  %v7736_v43 = vld [vmem:[%s10866_s11 + $0x650] ss:$12 sps:$4 sm:$0xff]  }
 0x5a0   : > { %v7735_v31 = vld [vmem:[%s10866_s11 + $0x308] ss:$12 sps:$4 sm:$0xff]  }
 0x5a1   : > { %6920 = vmatpush3.bf16.msra.mxu1 %v7679_v24  ;;  %v10925_v24 = vmov 0.0  }
 0x5a2   : > { %6896 = vmatpush3.bf16.msra.mxu0 %v7681_v41  ;;  %6921 = vmatprep.subr.bf16.mxu1 %v7682_v37  ;;  %v7737_v41 = vld [vmem:[%s10866_s11 + $0x638] ss:$12 sps:$4 sm:$0xff]   ;;  %747 = vst.msk [vmem:[#allocation3] sm:$0xff] %vm746_vm1, %v10925_v24  ;;  %748 = vst.msk [vmem:[#allocation3 + $0x18] sm:$0xff] %vm746_vm1, %v10925_v24 }
 0x5a3   : > { %6897 = vmatprep.subr.bf16.mxu0 %v7684_v30  ;;  %749 = vst.msk [vmem:[#allocation3 + $0x30] sm:$0xff] %vm746_vm1, %v10925_v24  ;;  %750 = vst.msk [vmem:[#allocation3 + $0x48] sm:$0xff] %vm746_vm1, %v10925_v24 }
 0x5a4   : > { %752 = vst.msk [vmem:[#allocation3 + $0x10] sm:$0xff] %vm751_vm2, %v10925_v24  ;;  %753 = vst.msk [vmem:[#allocation3 + $0x28] sm:$0xff] %vm751_vm2, %v10925_v24 }
 0x5a5   : > { %6922 = vmatpush3.bf16.msra.mxu1 %v7683_v54  ;;  %754 = vst.msk [vmem:[#allocation3 + $0x40] sm:$0xff] %vm751_vm2, %v10925_v24  ;;  %755 = vst.msk [vmem:[#allocation3 + $0x58] sm:$0xff] %vm751_vm2, %v10925_v24 }
 0x5a6   : > { %6898 = vmatpush3.bf16.msra.mxu0 %v7685_v58  ;;  %6923 = vmatprep.subr.bf16.mxu1 %v7686_v48 }
 0x5a7   : > { %6899 = vmatprep.subr.bf16.mxu0 %v7688_v63 }
 0x5a9   : > { %6924 = vmatpush3.bf16.msra.mxu1 %v7687_v15 }
 0x5aa   : > { %6900 = vmatpush3.bf16.msra.mxu0 %v7689_v52  ;;  %6925 = vmatprep.subr.bf16.mxu1 %v7690_v0 }
 0x5ab   : > { %6901 = vmatprep.subr.bf16.mxu0 %v7692_v5 }
 0x5ad   : > { %6926 = vmatpush3.bf16.msra.mxu1 %v7691_v7 }
 0x5ae   : > { %6902 = vmatpush3.bf16.msra.mxu0 %v7693_v44  ;;  %6927 = vmatprep.subr.bf16.mxu1 %v7694_v42 }
 0x5af   : > { %6903 = vmatprep.subr.bf16.mxu0 %v7696_v14 }
 0x5b1   : > { %6928 = vmatpush3.bf16.msra.mxu1 %v7695_v61 }
 0x5b2   : > { %6904 = vmatpush3.bf16.msra.mxu0 %v7697_v10  ;;  %6929 = vmatprep.subr.bf16.mxu1 %v7698_v32 }
 0x5b3   : > { %6905 = vmatprep.subr.bf16.mxu0 %v7700_v38 }
 0x5b5   : > { %6930 = vmatpush3.bf16.msra.mxu1 %v7699_v11 }
 0x5b6   : > { %6906 = vmatpush3.bf16.msra.mxu0 %v7701_v55  ;;  %6959 = vmatprep.subr.bf16.mxu1 %v7702_v62 }
 0x5b7   : > { %6907 = vmatprep.subr.bf16.mxu0 %v7704_v13 }
 0x5b8   : > { %4345 = vmatmul.mubr.bf16.vlgmr.msra.gmra.mxu1 %v9477_v35  ;;  %v7712_v35 = vld [vmem:[%s10866_s11 + $0x458] ss:$12 sps:$4 sm:$0xff]  }
 0x5b9   : > { %6960 = vmatpush3.bf16.msra.mxu1 %v7703_v60  ;;  %4426 = vmatprep.mubr.bf16.mxu1 %v9702_v28  ;;  %v7726_v28 = vld [vmem:[%s10866_s11 + $0x560] ss:$12 sps:$4 sm:$0xff]  }
 0x5ba   : > { %6908 = vmatpush3.bf16.msra.mxu0 %v7705_v46  ;;  %6961 = vmatprep.subr.bf16.mxu1 %v7706_v49 }
 0x5bb   : > { %6937 = vmatprep.subr.bf16.mxu0 %v7708_v25 }
 0x5bd   : > { %6962 = vmatpush3.bf16.msra.mxu1 %v7707_v45  ;;  %4304 = vmatmul.mubr.bf16.vlgmr.msra.gmra.mxu0 %v9364_v21  ;;  %v7716_v21 = vld [vmem:[%s10866_s11 + $0x440] ss:$12 sps:$4 sm:$0xff]  }
 0x5be   : > { %6938 = vmatpush3.bf16.msra.mxu0 %v7709_v57  ;;  %4385 = vmatprep.mubr.bf16.mxu0 %v9659_v8  ;;  %v7717_v8 = vld [vmem:[%s10866_s11 + $0x380] ss:$12 sps:$4 sm:$0xff]  }
 0x5bf   : > { %6963 = vmatprep.subr.bf16.mxu1 %v7710_v26  ;;  %6939 = vmatprep.subr.bf16.mxu0 %v7712_v35 }
 0x5c1   : > { %6964 = vmatpush3.bf16.msra.mxu1 %v7711_v18 }
 0x5c2   : > { %6940 = vmatpush3.bf16.msra.mxu0 %v7713_v23  ;;  %6965 = vmatprep.subr.bf16.mxu1 %v7714_v17 }
 0x5c3   : > { %6941 = vmatprep.subr.bf16.mxu0 %v7716_v21 }
 0x5c5   : > { %6966 = vmatpush3.bf16.msra.mxu1 %v7715_v47 }
 0x5c6   : > { %6942 = vmatpush3.bf16.msra.mxu0 %v7717_v8  ;;  %6967 = vmatprep.subr.bf16.mxu1 %v7718_v33 }
 0x5c7   : > { %6943 = vmatprep.subr.bf16.mxu0 %v7720_v19 }
 0x5c9   : > { %6968 = vmatpush3.bf16.msra.mxu1 %v7719_v50 }
 0x5ca   : > { %6944 = vmatpush3.bf16.msra.mxu0 %v7721_v16  ;;  %6969 = vmatprep.subr.bf16.mxu1 %v7722_v20 }
 0x5cb   : > { %6945 = vmatprep.subr.bf16.mxu0 %v7724_v39 }
 0x5cd   : > { %6970 = vmatpush3.bf16.msra.mxu1 %v7723_v6 }
 0x5ce   : > { %6946 = vmatpush3.bf16.msra.mxu0 %v7725_v4  ;;  %6971 = vmatprep.subr.bf16.mxu1 %v7726_v28 }
 0x5cf   : > { %6947 = vmatprep.subr.bf16.mxu0 %v7728_v53  ;;  %v4090_v37 = vpop.f32.mrf.mxu0 }
 0x5d1   : > { %6972 = vmatpush3.bf16.msra.mxu1 %v7727_v56  ;;  %v4092_v30 = vpop.f32.mrf.mxu0 }
 0x5d2   : > { %6948 = vmatpush3.bf16.msra.mxu0 %v7729_v3  ;;  %6973 = vmatprep.subr.bf16.mxu1 %v7730_v59 }
 0x5d3   : > { %6949 = vmatprep.subr.bf16.mxu0 %v7732_v1  ;;  %v4094_v54 = vpop.f32.mrf.mxu0 }
 0x5d5   : > { %6974 = vmatpush3.bf16.msra.mxu1 %v7731_v2  ;;  %v9941_v48 = vpop.f32.mrf.mxu0 }
 0x5d6   : > { %6950 = vmatpush3.bf16.msra.mxu0 %v7733_v27 }
 0x5d7   : > { %6951 = vmatprep.subr.bf16.mxu0 %v7734_v29 }
 0x5d8   : > { %4427 = vmatmul.mubr.bf16.vlgmr.msra.gmra.mxu1 %v9704_v40  ;;  %v7738_v40 = vld [vmem:[%s10866_s11 + $0x620] ss:$12 sps:$4 sm:$0xff]  }
 0x5da   : > { %6952 = vmatpush3.bf16.msra.mxu0 %v7735_v31 }
 0x5db   : > { %7072 = vmatprep.subr.bf16.mxu0 %v10925_v24 }
 0x5dd   : > { %4386 = vmatmul.mubr.bf16.vlgmr.msra.gmra.mxu0 %v9664_v9  ;;  %v7739_v9 = vld [vmem:[%s10866_s11 + $0x608] ss:$12 sps:$4 sm:$0xff]  }
 0x5de   : > { %7073 = vmatpush3.bf16.msra.mxu0 %v7736_v43  ;;  %7080 = vmatprep.mubr.msk.bf16.mxu0 %vm7874_vm10, %v10925_v24 }
 0x5df   : > { %7074 = vmatprep.subr.bf16.mxu0 %v10925_v24 }
 0x5e2   : > { %7075 = vmatpush3.bf16.msra.mxu0 %v7737_v41 }
 0x5e3   : > { %7076 = vmatprep.subr.bf16.mxu0 %v10925_v24 }
 0x5e6   : > { %7077 = vmatpush3.bf16.msra.mxu0 %v7738_v40 }
 0x5e7   : > { %7078 = vmatprep.subr.bf16.mxu0 %v10925_v24  ;;  %v4133_v58 = vpop.f32.mrf.mxu1 }
 0x5e8   : > { %v4134_v7 = vadd.f32 %v4133_v58, %v4090_v37 }
 0x5ea   : > { %7079 = vmatpush3.bf16.msra.mxu0 %v7739_v9 }
 0x5eb   : > { %4722 = vmatprep.subr.bf16.mxu0 %v7871_v12 }
 0x5ed   : > { %7081 = vmatmul.mubr.msk.bf16.vlgmr.msra.gmra.mxu0 %vm4052_vm0, %v9727_v36  ;;  %v4135_v36 = vpop.f32.mrf.mxu1 }
 0x5ee   : > { %v4136_v42 = vadd.f32 %v4135_v36, %v4092_v30 }
 0x5ef   : > { %v4137_v15 = vpop.f32.mrf.mxu1 }
 0x5f0   : > { %v4138_v55 = vadd.f32 %v4137_v15, %v4094_v54 }
 0x5f1   : > { %v4139_v0 = vpop.f32.mrf.mxu1 }
 0x5f2   : > { %v4140_v9 = vadd.f32 %v4139_v0, %v9941_v48 }
 0x64d   : > { %v4176_v63 = vpop.f32.mrf.mxu0 }
 0x64e   : > { %v4177_v14 = vadd.f32 %v4176_v63, %v4134_v7 }
 0x64f   : > { %v4178_v52 = vpop.f32.mrf.mxu0 }
 0x650   : > { %v4179_v32 = vadd.f32 %v4178_v52, %v4136_v42 }
 0x651   : > { %v4180_v5 = vpop.f32.mrf.mxu0 }
 0x652   : > { %v4181_v49 = vadd.f32 %v4180_v5, %v4138_v55 }
 0x653   : > { %v4182_v61 = vpop.f32.mrf.mxu0 }
 0x654   : > { %v4183_v58 = vadd.f32 %v4182_v61, %v4140_v9 }
 0x658   : > { %v4219_v44 = vpop.f32.mrf.mxu1 }
 0x659   : > { %v4220_v38 = vadd.f32 %v4219_v44, %v4177_v14 }
 0x65a   : > { %v4221_v10 = vpop.f32.mrf.mxu1 }
 0x65b   : > { %v4222_v62 = vadd.f32 %v4221_v10, %v4179_v32 }
 0x65c   : > { %v4223_v60 = vpop.f32.mrf.mxu1 }
 0x65d   : > { %v4262_v11 = vpop.f32.mrf.mxu0  ;;  %v4224_v57 = vadd.f32 %v4223_v60, %v4181_v49 }
 0x65e   : > { %v4263_v13 = vadd.f32 %v4262_v11, %v4220_v38  ;;  %v4225_v18 = vpop.f32.mrf.mxu1 }
 0x65f   : > { %v4264_v46 = vpop.f32.mrf.mxu0  ;;  %v4226_v52 = vadd.f32 %v4225_v18, %v4183_v58  ;;  %v4623_v18 = vld [vmem:[%s10928_s30 + $0x10] sm:$0xff] }
 0x660   : > { %v4265_v25 = vadd.f32 %v4264_v46, %v4222_v62  ;;  %4482 = vrot.lane.b32.xlu0 %v4263_v13, %s10904_s8 }
 0x661   : > { %v4266_v45 = vpop.f32.mrf.mxu0 }
 0x662   : > { %4484 = vrot.lane.b32.xlu1 %v4265_v25, %s10904_s8  ;;  %v4267_v26 = vadd.f32 %v4266_v45, %v4224_v57 }
 0x663   : > { %v4268_v35 = vpop.f32.mrf.mxu0 }
 0x664   : > { %v4269_v44 = vadd.f32 %v4268_v35, %v4226_v52  ;;  %v7740_v35 = vld [vmem:[%s10927_s3 + $0x4] ss:$8 sps:$4 sm:$0xff]  }
 0x665   : > { %6791 = vmatprep.mubr.msk.bf16.mxu0 %vm1935_vm3, %v7740_v35  ;;  %6789 = vmatprep.mubr.msk.bf16.mxu1 %vm1935_vm3, %v7740_v35 }
 0x666   : > { %4488 = vrot.lane.b32.xlu1 %v4267_v26, %s10904_s8 }
 0x678   : > { %v6931_v17 = vpop.f32.mrf.mxu1 }
 0x67a   : > { %v6932_v47 = vpop.f32.mrf.mxu1 }
 0x67b   : > { %v6933_v53 = vadd.f32 %v6932_v47, %v6931_v17  ;;  %v4621_v17 = vld [vmem:[%s10928_s30] sm:$0xff] }
 0x67c   : > { %v6934_v33 = vpop.f32.mrf.mxu1 }
 0x67d   : > { %v6909_v23 = vpop.f32.mrf.mxu0 }
 0x67e   : > { %v6935_v50 = vpop.f32.mrf.mxu1 }
 0x67f   : > { %v6910_v21 = vpop.f32.mrf.mxu0  ;;  %v6936_v27 = vadd.f32 %v6935_v50, %v6934_v33 }
 0x680   : > { %v6911_v4 = vadd.f32 %v6910_v21, %v6909_v23  ;;  %v4624_v23 = vld [vmem:[%s10928_s30 + $0x18] sm:$0xff]  ;;  %v4622_v21 = vld [vmem:[%s10928_s30 + $0x8] sm:$0xff] }
 0x681   : > { %v6912_v8 = vpop.f32.mrf.mxu0 }
 0x682   : > { %v4347_v59 = vadd.f32 %v6933_v53, %v6911_v4 }
 0x683   : > { %v6913_v19 = vpop.f32.mrf.mxu0 }
 0x684   : > { %v6914_v1 = vadd.f32 %v6913_v19, %v6912_v8 }
 0x686   : > { %v4350_v43 = vadd.f32 %v6936_v27, %v6914_v1 }
 0x698   : > { %v6975_v20 = vpop.f32.mrf.mxu1 }
 0x69a   : > { %v6976_v28 = vpop.f32.mrf.mxu1 }
 0x69b   : > { %v6977_v41 = vadd.f32 %v6976_v28, %v6975_v20 }
 0x69c   : > { %v6978_v2 = vpop.f32.mrf.mxu1 }
 0x69d   : > { %v6953_v16 = vpop.f32.mrf.mxu0 }
 0x69e   : > { %v6979_v40 = vpop.f32.mrf.mxu1 }
 0x69f   : > { %v6954_v39 = vpop.f32.mrf.mxu0  ;;  %v6980_v36 = vadd.f32 %v6979_v40, %v6978_v2 }
 0x6a0   : > { %v6955_v56 = vadd.f32 %v6954_v39, %v6953_v16 }
 0x6a1   : > { %v6956_v6 = vpop.f32.mrf.mxu0 }
 0x6a2   : > { %v4388_v29 = vadd.f32 %v6955_v56, %v4347_v59 }
 0x6a3   : > { %v6957_v3 = vpop.f32.mrf.mxu0 }
 0x6a4   : > { %v6958_v31 = vadd.f32 %v6957_v3, %v6956_v6  ;;  %v4429_v30 = vadd.f32 %v6977_v41, %v4388_v29 }
 0x6a6   : > { %v4391_v37 = vadd.f32 %v6958_v31, %v4350_v43 }
 0x6a8   : > { %v4432_v5 = vadd.f32 %v6980_v36, %v4391_v37 }
 0x6ad   : > { %v4469_v54 = vpop.f32.mrf.mxu0 }
 0x6ae   : > { %v4470_v63 = vadd.f32 %v4469_v54, %v4429_v30 }
 0x6af   : > { %v7082_v15 = vpop.f32.mrf.mxu0 }
 0x6b0   : > { %4486 = vrot.lane.b32.xlu0 %v4470_v63, %s10904_s8 }
 0x6b1   : > { %v4472_v7 = vpop.f32.mrf.mxu0 }
 0x6b2   : > { %v4473_v42 = vadd.f32 %v4472_v7, %v4432_v5 }
 0x6b3   : > { %v7083_v14 = vpop.f32.mrf.mxu0 }
 0x6b4   : > { %4492 = vrot.lane.b32.xlu1 %v4473_v42, %s10904_s8  ;;  %4490 = vrot.lane.b32.xlu0 %v4269_v44, %s10904_s8  ;;  %s10931_s8 = smov 91  }
 0x6d2   : > { %v4483_v48 = vpop.permute.xlu0 %4482 }
 0x6d3   : > { %4505 = vst.msk [vmem:[#allocation3] sm:$0xff] %vm4504_vm4, %v4483_v48 }
 0x6d4   : > { %v4485_v0 = vpop.permute.xlu1 %4484 }
 0x6d5   : > { %v4494_v60 = vsel %vm746_vm1, %v4483_v48, %v4485_v0 }
 0x6d8   : > { %v4489_v61 = vpop.permute.xlu1 %4488 }
 0x6d9   : > { %4509 = vst.msk [vmem:[#allocation3 + $0x18] sm:$0xff] %vm4504_vm4, %v4489_v61 }
 0x6da   : > { %v4512_v10 = vld [vmem:[#allocation3] sm:$0xff] }
 0x6e0   : > { %v4515_v32 = vld [vmem:[#allocation3 + $0x18] sm:$0xff] }
 0x6e1   : > { %v9956_v38 = vpack.c.bf16 %v4515_v32, %v4512_v10  ;;  %v7743_v32 = vld [vmem:[%s10927_s3 + $0x14] ss:$8 sps:$4 sm:$0xff]  }
 0x6e3   : > { %4582 = vrot.lane.b32.xlu1 %v9956_v38, %s10924_s2  ;;  %4593 = vrot.lane.b32.xlu0 %v9956_v38, %s10900_s7 }
 0x6e7   : > { %4570 = vrot.lane.b32.xlu0 %v9956_v38, %s10898_s4 }
 0x722   : > { %v4487_v11 = vpop.permute.xlu0 %4486 }
 0x723   : > { %v4495_v55 = vsel %vm746_vm1, %v4485_v0, %v4487_v11 }
 0x724   : > { %4508 = vst.msk [vmem:[#allocation3 + $0x10] sm:$0xff] %vm4507_vm7, %v4495_v55  ;;  %v4783_v55 = vld [vmem:[%s10865_s10] sm:$0x7] }
 0x725   : > { %v4788_v35 = vrot.slane %v4783_v55, %v8396_v51 }
 0x726   : > { %v4493_v62 = vpop.permute.xlu1 %4492  ;;  %v4491_v13 = vpop.permute.xlu0 %4490 }
 0x727   : > { %v4496_v46 = vsel %vm746_vm1, %v4489_v61, %v4491_v13  ;;  %v4497_v49 = vsel %vm746_vm1, %v4491_v13, %v4493_v62  ;;  %v7742_v61 = vld [vmem:[%s10927_s3] ss:$8 sps:$4 sm:$0xff]  }
 0x728   : > { %4511 = vst.msk [vmem:[#allocation3 + $0x28] sm:$0xff] %vm4507_vm7, %v4497_v49  ;;  %v9970_v25 = vpack.c.bf16 %v4496_v46, %v4494_v60  ;;  %v10076_v49 = vrot.slane %v4783_v55, %v8420_v34 }
 0x72a   : > { %4584 = vrot.lane.b32.xlu1 %v9970_v25, %s10924_s2  ;;  %4595 = vrot.lane.b32.xlu0 %v9970_v25, %s10900_s7 }
 0x72b   : > { %v4514_v45 = vld [vmem:[#allocation3 + $0x10] sm:$0xff] }
 0x72e   : > { %4560 = vrot.lane.b32.xlu1 %v9970_v25, %s10896_s5  ;;  %4572 = vrot.lane.b32.xlu0 %v9970_v25, %s10898_s4 }
 0x72f   : > { %v4517_v57 = vld [vmem:[#allocation3 + $0x28] sm:$0xff] }
 0x730   : > { %v9980_v26 = vpack.c.bf16 %v4517_v57, %v4514_v45 }
 0x732   : > { %4597 = vrot.lane.b32.xlu1 %v9980_v26, %s10900_s7  ;;  %4586 = vrot.lane.b32.xlu0 %v9980_v26, %s10924_s2  ;;  %s10932_s7 = smov 108  }
 0x736   : > { %4558 = vrot.lane.b32.xlu1 %v9956_v38, %s10896_s5  ;;  %4548 = vrot.lane.b32.xlu0 %v9970_v25, %s10902_s1 }
 0x73a   : > { %4574 = vrot.lane.b32.xlu1 %v9980_v26, %s10898_s4  ;;  %4562 = vrot.lane.b32.xlu0 %v9980_v26, %s10896_s5  ;;  %s10934_s4 = sld [smem:[#allocation13_spill]]  ;;  %s735_s5 = scalar_lea.vmem %s10879_s24, %s10937_s28 }
 0x73e   : > { %4537 = vrot.lane.b32.xlu1 %v9970_v25, %s10926_s0  ;;  %4546 = vrot.lane.b32.xlu0 %v9956_v38, %s10902_s1 }
 0x742   : > { %4550 = vrot.lane.b32.xlu1 %v9980_v26, %s10902_s1  ;;  %4539 = vrot.lane.b32.xlu0 %v9980_v26, %s10926_s0 }
 0x746   : > { %4535 = vrot.lane.b32.xlu1 %v9956_v38, %s10926_s0  ;;  %4526 = vrot.lane.b32.xlu0 %v9970_v25, %s10923_s25 }
 0x74a   : > { %4528 = vrot.lane.b32.xlu1 %v9980_v26, %s10923_s25  ;;  %4524 = vrot.lane.b32.xlu0 %v9956_v38, %s10923_s25 }
 0x74e   : > { %4607 = vrot.lane.b32.xlu1 %v9970_v25, %s7881_s29  ;;  %4609 = vrot.lane.b32.xlu0 %v9980_v26, %s7881_s29 }
 0x752   : > { %4605 = vrot.lane.b32.xlu1 %v9956_v38, %s7881_s29  ;;  %4637 = vperm.xlu0 %7318, %v4623_v18  }
 0x755   : > { %v4594_v47 = vpop.permute.xlu0 %4593  ;;  %v4583_v8 = vpop.permute.xlu1 %4582 }
 0x756   : > { %4642 = vperm.xlu1 %7317, %v4624_v23   ;;  %4627 = vperm.xlu0 %7318, %v4621_v17  }
 0x759   : > { %v4571_v33 = vpop.permute.xlu0 %4570 }
 0x75a   : > { %4632 = vperm.xlu1 %7317, %v4622_v21  }
 0x79c   : > { %v4585_v19 = vpop.permute.xlu1 %4584  ;;  %v4596_v50 = vpop.permute.xlu0 %4595 }
 0x79d   : > { %v4600_v28 = vsel %vm4599_vm9, %v4594_v47, %v4596_v50  ;;  %v4588_v59 = vsel %vm937_vm5, %v4583_v8, %v4585_v19 }
 0x7a0   : > { %v4561_v16 = vpop.permute.xlu1 %4560  ;;  %v4573_v20 = vpop.permute.xlu0 %4572 }
 0x7a1   : > { %v4577_v29 = vsel %vm4576_vm11, %v4571_v33, %v4573_v20  ;;  %v4792_v33 = vrot.slane %v4783_v55, %v8409_v22 }
 0x7a4   : > { %v4598_v39 = vpop.permute.xlu1 %4597  ;;  %v4587_v6 = vpop.permute.xlu0 %4586 }
 0x7a5   : > { %4723 = vmatpush1.bf16.msra.mxu0 %v4598_v39  ;;  %v4601_v4 = vsel %vm4599_vm9, %v4596_v50, %v4598_v39  ;;  %v4589_v53 = vsel %vm937_vm5, %v4585_v19, %v4587_v6 }
 0x7a6   : > { %4669 = vmatprep.subr.bf16.mxu1 %v4601_v4  ;;  %4724 = vmatprep.subr.bf16.mxu0 %v7871_v12 }
 0x7a7   : > { %4670 = vmatpush1.bf16.msra.mxu1 %v4600_v28 }
 0x7a8   : > { %v4559_v56 = vpop.permute.xlu1 %4558  ;;  %4671 = vmatprep.subr.bf16.mxu1 %v4589_v53  ;;  %v4549_v3 = vpop.permute.xlu0 %4548 }
 0x7a9   : > { %4725 = vmatpush1.bf16.msra.mxu0 %v4587_v6  ;;  %v4565_v40 = vsel %vm4564_vm12, %v4559_v56, %v4561_v16 }
 0x7aa   : > { %4726 = vmatprep.subr.bf16.mxu0 %v7871_v12 }
 0x7ab   : > { %4672 = vmatpush1.bf16.msra.mxu1 %v4588_v59 }
 0x7ac   : > { %v4575_v1 = vpop.permute.xlu1 %4574  ;;  %v4563_v2 = vpop.permute.xlu0 %4562 }
 0x7ad   : > { %4727 = vmatpush1.bf16.msra.mxu0 %v4575_v1  ;;  %v4578_v27 = vsel %vm4576_vm11, %v4573_v20, %v4575_v1  ;;  %v4566_v31 = vsel %vm4564_vm12, %v4561_v16, %v4563_v2 }
 0x7ae   : > { %4673 = vmatprep.subr.bf16.mxu1 %v4578_v27  ;;  %4728 = vmatprep.subr.bf16.mxu0 %v7871_v12 }
 0x7af   : > { %4674 = vmatpush1.bf16.msra.mxu1 %v4577_v29 }
 0x7b0   : > { %v4538_v43 = vpop.permute.xlu1 %4537  ;;  %4675 = vmatprep.subr.bf16.mxu1 %v4566_v31  ;;  %v4547_v41 = vpop.permute.xlu0 %4546 }
 0x7b1   : > { %4729 = vmatpush1.bf16.msra.mxu0 %v4563_v2  ;;  %v4553_v54 = vsel %vm4552_vm13, %v4547_v41, %v4549_v3 }
 0x7b2   : > { %4730 = vmatprep.subr.bf16.mxu0 %v7871_v12 }
 0x7b3   : > { %4676 = vmatpush1.bf16.msra.mxu1 %v4565_v40 }
 0x7b4   : > { %v4551_v9 = vpop.permute.xlu1 %4550  ;;  %v4540_v37 = vpop.permute.xlu0 %4539 }
 0x7b5   : > { %4731 = vmatpush1.bf16.msra.mxu0 %v4551_v9  ;;  %v4554_v30 = vsel %vm4552_vm13, %v4549_v3, %v4551_v9  ;;  %v4542_v58 = vsel %vm829_vm6, %v4538_v43, %v4540_v37 }
 0x7b6   : > { %4677 = vmatprep.subr.bf16.mxu1 %v4554_v30  ;;  %4732 = vmatprep.subr.bf16.mxu0 %v7871_v12 }
 0x7b7   : > { %4678 = vmatpush1.bf16.msra.mxu1 %v4553_v54 }
 0x7b8   : > { %v4536_v36 = vpop.permute.xlu1 %4535  ;;  %4679 = vmatprep.subr.bf16.mxu1 %v4542_v58  ;;  %v4527_v63 = vpop.permute.xlu0 %4526 }
 0x7b9   : > { %v4541_v15 = vsel %vm829_vm6, %v4536_v36, %v4538_v43  ;;  %4733 = vmatpush1.bf16.msra.mxu0 %v4540_v37 }
 0x7ba   : > { %4734 = vmatprep.subr.bf16.mxu0 %v7871_v12 }
 0x7bb   : > { %4680 = vmatpush1.bf16.msra.mxu1 %v4541_v15 }
 0x7bc   : > { %v4529_v52 = vpop.permute.xlu1 %4528  ;;  %v4525_v5 = vpop.permute.xlu0 %4524 }
 0x7bd   : > { %v4530_v7 = vsel %vm793_vm8, %v4525_v5, %v4527_v63  ;;  %4735 = vmatpush1.bf16.msra.mxu0 %v4529_v52  ;;  %v4531_v44 = vsel %vm793_vm8, %v4527_v63, %v4529_v52 }
 0x7be   : > { %4681 = vmatprep.subr.bf16.mxu1 %v4531_v44  ;;  %4736 = vmatprep.subr.bf16.mxu0 %v7871_v12 }
 0x7bf   : > { %4682 = vmatpush1.bf16.msra.mxu1 %v4530_v7 }
 0x7c0   : > { %v4608_v42 = vpop.permute.xlu1 %4607  ;;  %4683 = vmatprep.subr.bf16.mxu1 %v9970_v25  ;;  %v4610_v14 = vpop.permute.xlu0 %4609 }
 0x7c1   : > { %4737 = vmatpush1.bf16.msra.mxu0 %v9980_v26  ;;  %v4613_v48 = vsel %vm4611_vm14, %v4608_v42, %v4610_v14 }
 0x7c2   : > { %4752 = vmatprep.subr.bf16.mxu0 %v7871_v12 }
 0x7c3   : > { %4684 = vmatpush1.bf16.msra.mxu1 %v9956_v38  ;;  %v7745_v38 = vld [vmem:[%s10927_s3 + $0x10] ss:$8 sps:$4 sm:$0xff]  }
 0x7c4   : > { %v4606_v0 = vpop.permute.xlu1 %4605  ;;  %4699 = vmatprep.subr.bf16.mxu1 %v4613_v48 }
 0x7c5   : > { %v4612_v10 = vsel %vm4611_vm14, %v4606_v0, %v4608_v42  ;;  %4753 = vmatpush2.bf16.msra.mxu0 %v4610_v14 }
 0x7c7   : > { %4700 = vmatpush2.bf16.msra.mxu1 %v4612_v10 }
 0x7c8   : > { %4755 = vmatmul.mubr.bf16.vlgmr.msra.gmra.mxu0 %v7742_v61 }
 0x7c9   : > { %6792 = vmatprep.mubr.msk.bf16.mxu0 %vm1935_vm3, %v7743_v32 }
 0x7ca   : > { %4702 = vmatmul.mubr.bf16.vlgmr.msra.gmra.mxu1 %v7742_v61 }
 0x7cb   : > { %6790 = vmatprep.mubr.msk.bf16.mxu1 %vm1935_vm3, %v7743_v32 }
 0x7cd   : > { %v4638_v11 = vpop.permute.xlu0 %4637 }
 0x7d0   : > { %4763 = vmatmul.mubr.bf16.gmra.mxu0 %v7745_v38 }
 0x7d1   : > { %5234 = vmatprep.mubr.bf16.mxu0 %v7871_v12  ;;  %v4643_v62 = vpop.permute.xlu1 %4642  ;;  %v4628_v13 = vpop.permute.xlu0 %4627 }
 0x7d2   : > { %4712 = vmatmul.mubr.bf16.gmra.mxu1 %v7745_v38 }
 0x7d5   : > { %v4633_v17 = vpop.permute.xlu1 %4632 }
 0x888   : > { %v4756_v60 = vpop.f32.mrf.mxu0 }
 0x889   : > { %v4757_v46 = vadd.f32 %v4756_v60, %v4628_v13 }
 0x88a   : > { %v4703_v25 = vpop.f32.mrf.mxu1  ;;  %v4758_v45 = vpop.f32.mrf.mxu0 }
 0x88b   : > { %v4773_v57 = vmax.f32 %v4757_v46, 0.0  ;;  %v4704_v26 = vadd.f32 %v4703_v25, %v4628_v13 }
 0x88c   : > { %v4705_v18 = vpop.f32.mrf.mxu1  ;;  %v4759_v23 = vpop.f32.mrf.mxu0 }
 0x88d   : > { %v4802_v21 = vmul.f32 %v10076_v49, %v4773_v57  ;;  %v4771_v47 = vmax.f32 %v4704_v26, 0.0  ;;  %v4706_v8 = vadd.f32 %v4705_v18, %v4628_v13  ;;  %v4760_v42 = vadd.f32 %v4759_v23, %v4633_v17 }
 0x88e   : > { %v4707_v19 = vpop.f32.mrf.mxu1  ;;  %v4761_v50 = vpop.f32.mrf.mxu0 }
 0x88f   : > { %v4772_v16 = vmax.f32 %v4706_v8, 0.0  ;;  %v4708_v20 = vadd.f32 %v4707_v19, %v4633_v17  ;;  %4828 = vrot.lane.b32.xlu0 %v4802_v21, %s10929_s9  ;;  %v4800_v4 = vmul.f32 %v4788_v35, %v4771_v47  ;;  %v4776_v10 = vmax.f32 %v4760_v42, 0.0 }
 0x890   : > { %v4709_v39 = vpop.f32.mrf.mxu1  ;;  %v4764_v6 = vpop.f32.mrf.mxu0 }
 0x891   : > { %v4801_v28 = vmul.f32 %v4792_v33, %v4772_v16  ;;  %v4774_v53 = vmax.f32 %v4708_v20, 0.0  ;;  %v4765_v56 = vadd.f32 %v4764_v6, %v4638_v11  ;;  %v4710_v5 = vadd.f32 %v4709_v39, %v4633_v17 }
 0x892   : > { %v4713_v3 = vpop.f32.mrf.mxu1  ;;  %v4766_v59 = vpop.f32.mrf.mxu0 }
 0x893   : > { %v4714_v1 = vadd.f32 %v4713_v3, %v4638_v11  ;;  %4826 = vrot.lane.b32.xlu1 %v4801_v28, %s10929_s9  ;;  %4824 = vrot.lane.b32.xlu0 %v4800_v4, %s10929_s9  ;;  %v4779_v2 = vmax.f32 %v4765_v56, 0.0  ;;  %v4803_v31 = vmul.f32 %v4788_v35, %v4774_v53  ;;  %v4775_v61 = vmax.f32 %v4710_v5, 0.0 }
 0x894   : > { %v4715_v27 = vpop.f32.mrf.mxu1  ;;  %v4767_v29 = vpop.f32.mrf.mxu0 }
 0x895   : > { %v4716_v43 = vadd.f32 %v4715_v27, %v4638_v11  ;;  %v4768_v41 = vadd.f32 %v4767_v29, %v4643_v62  ;;  %v4808_v40 = vmul.f32 %v10076_v49, %v4779_v2  ;;  %v4777_v9 = vmax.f32 %v4714_v1, 0.0 }
 0x896   : > { %v4717_v37 = vpop.f32.mrf.mxu1  ;;  %v4769_v30 = vpop.f32.mrf.mxu0  ;;  %v4804_v38 = vmul.f32 %v4792_v33, %v4775_v61  ;;  %v4805_v11 = vmul.f32 %v10076_v49, %v4776_v10 }
 0x897   : > { %v4778_v54 = vmax.f32 %v4716_v43, 0.0  ;;  %4830 = vrot.lane.b32.xlu1 %v4803_v31, %s10929_s9  ;;  %4840 = vrot.lane.b32.xlu0 %v4808_v40, %s10929_s9  ;;  %v4782_v63 = vmax.f32 %v4768_v41, 0.0  ;;  %v4718_v15 = vadd.f32 %v4717_v37, %v4643_v62  ;;  %v4806_v7 = vmul.f32 %v4788_v35, %v4777_v9  ;;  %v5090_v31 = vld [vmem:[%s10934_s4 + $0x10] sm:$0xff]  ;;  %v5088_v41 = vld [vmem:[%s10934_s4] sm:$0xff] }
 0x898   : > { %v4719_v58 = vpop.f32.mrf.mxu1  ;;  %v10218_v43 = vld [vmem:[%s10935_s26 + $0x4] ss:$12 sps:$4 sm:$0xff]   ;;  %v5091_v40 = vld [vmem:[%s10934_s4 + $0x18] sm:$0xff]  ;;  %v5089_v37 = vld [vmem:[%s10934_s4 + $0x8] sm:$0xff] }
 0x899   : > { %v4807_v36 = vmul.f32 %v4792_v33, %v4778_v54  ;;  %v4720_v52 = vadd.f32 %v4719_v58, %v4643_v62  ;;  %v4811_v14 = vmul.f32 %v10076_v49, %v4782_v63  ;;  %v4780_v48 = vmax.f32 %v4718_v15, 0.0  ;;  %5181 = vmatprep.mubr.bf16.mxu1 %v10218_v43 }
 0x89b   : > { %v4781_v44 = vmax.f32 %v4720_v52, 0.0  ;;  %4838 = vrot.lane.b32.xlu1 %v4807_v36, %s10929_s9  ;;  %4836 = vrot.lane.b32.xlu0 %v4806_v7, %s10929_s9  ;;  %v4809_v32 = vmul.f32 %v4788_v35, %v4780_v48 }
 0x89d   : > { %v4810_v0 = vmul.f32 %v4792_v33, %v4781_v44 }
 0x89f   : > { %4846 = vrot.lane.b32.xlu1 %v4811_v14, %s10929_s9  ;;  %4844 = vrot.lane.b32.xlu0 %v4810_v0, %s10929_s9 }
 0x8a3   : > { %4842 = vrot.lane.b32.xlu1 %v4809_v32, %s10929_s9  ;;  %4832 = vrot.lane.b32.xlu0 %v4804_v38, %s10929_s9 }
 0x8a7   : > { %4834 = vrot.lane.b32.xlu1 %v4805_v11, %s10929_s9 }
 0x901   : > { %v4829_v55 = vpop.permute.xlu0 %4828 }
 0x905   : > { %v4827_v62 = vpop.permute.xlu1 %4826  ;;  %v4825_v13 = vpop.permute.xlu0 %4824 }
 0x906   : > { %v4849_v60 = vsel %vm746_vm1, %v4827_v62, %v4829_v55  ;;  %v4848_v46 = vsel %vm746_vm1, %v4825_v13, %v4827_v62  ;;  %4868 = vst.msk [vmem:[#allocation3] sm:$0xff] %vm4504_vm4, %v4825_v13 }
 0x907   : > { %4870 = vst.msk [vmem:[#allocation3 + $0x10] sm:$0xff] %vm4507_vm7, %v4849_v60 }
 0x909   : > { %v4831_v25 = vpop.permute.xlu1 %4830  ;;  %v4841_v45 = vpop.permute.xlu0 %4840 }
 0x90a   : > { %4871 = vst.msk [vmem:[#allocation3 + $0x18] sm:$0xff] %vm4504_vm4, %v4831_v25 }
 0x90d   : > { %v4839_v57 = vpop.permute.xlu1 %4838  ;;  %v4837_v26 = vpop.permute.xlu0 %4836  ;;  %v4880_v18 = vld [vmem:[#allocation3] sm:$0xff] }
 0x90e   : > { %v4853_v49 = vsel %vm746_vm1, %v4839_v57, %v4841_v45  ;;  %v4852_v35 = vsel %vm746_vm1, %v4837_v26, %v4839_v57  ;;  %4874 = vst.msk [vmem:[#allocation3 + $0x30] sm:$0xff] %vm4504_vm4, %v4837_v26  ;;  %v4882_v4 = vld [vmem:[#allocation3 + $0x10] sm:$0xff] }
 0x90f   : > { %4876 = vst.msk [vmem:[#allocation3 + $0x40] sm:$0xff] %vm4507_vm7, %v4853_v49 }
 0x911   : > { %v4883_v23 = vld [vmem:[#allocation3 + $0x18] sm:$0xff]  ;;  %v4847_v17 = vpop.permute.xlu1 %4846  ;;  %v4845_v47 = vpop.permute.xlu0 %4844 }
 0x912   : > { %v10105_v21 = vpack.c.bf16 %v4883_v23, %v4880_v18  ;;  %v4855_v8 = vsel %vm746_vm1, %v4845_v47, %v4847_v17 }
 0x913   : > { %4879 = vst.msk [vmem:[#allocation3 + $0x58] sm:$0xff] %vm4507_vm7, %v4855_v8 }
 0x914   : > { %4948 = vrot.lane.b32.xlu1 %v10105_v21, %s10930_s6 }
 0x915   : > { %v4843_v33 = vpop.permute.xlu1 %4842  ;;  %v4833_v50 = vpop.permute.xlu0 %4832  ;;  %v4886_v2 = vld [vmem:[#allocation3 + $0x30] sm:$0xff] }
 0x916   : > { %v4854_v19 = vsel %vm746_vm1, %v4843_v33, %v4845_v47  ;;  %4877 = vst.msk [vmem:[#allocation3 + $0x48] sm:$0xff] %vm4504_vm4, %v4843_v33  ;;  %v4850_v16 = vsel %vm746_vm1, %v4831_v25, %v4833_v50  ;;  %v4888_v3 = vld [vmem:[#allocation3 + $0x40] sm:$0xff] }
 0x917   : > { %v10120_v6 = vpack.c.bf16 %v4850_v16, %v4848_v46  ;;  %v10162_v29 = vpack.c.bf16 %v4854_v19, %v4852_v35 }
 0x918   : > { %4926 = vrot.lane.b32.xlu1 %v10105_v21, %s10926_s0 }
 0x919   : > { %v4835_v20 = vpop.permute.xlu1 %4834 }
 0x91a   : > { %v4851_v39 = vsel %vm746_vm1, %v4833_v50, %v4835_v20  ;;  %v4891_v56 = vld [vmem:[#allocation3 + $0x58] sm:$0xff] }
 0x91b   : > { %4873 = vst.msk [vmem:[#allocation3 + $0x28] sm:$0xff] %vm4507_vm7, %v4851_v39  ;;  %v10138_v59 = vpack.c.bf16 %v4891_v56, %v4888_v3 }
 0x91c   : > { %4904 = vrot.lane.b32.xlu1 %v10105_v21, %s10923_s25 }
 0x91d   : > { %v4889_v1 = vld [vmem:[#allocation3 + $0x48] sm:$0xff] }
 0x91e   : > { %v10144_v27 = vpack.c.bf16 %v4889_v1, %v4886_v2 }
 0x920   : > { %4950 = vrot.lane.b32.xlu1 %v10120_v6, %s10930_s6 }
 0x922   : > { %v4885_v28 = vld [vmem:[#allocation3 + $0x28] sm:$0xff] }
 0x923   : > { %v10124_v53 = vpack.c.bf16 %v4885_v28, %v4882_v4 }
 0x924   : > { %4928 = vrot.lane.b32.xlu1 %v10120_v6, %s10926_s0 }
 0x925   : > { %4952 = vrot.lane.b32.xlu0 %v10124_v53, %s10930_s6 }
 0x928   : > { %4906 = vrot.lane.b32.xlu1 %v10120_v6, %s10923_s25 }
 0x929   : > { %4930 = vrot.lane.b32.xlu0 %v10124_v53, %s10926_s0 }
 0x92c   : > { %5060 = vrot.lane.b32.xlu1 %v10120_v6, %s7881_s29 }
 0x92d   : > { %4908 = vrot.lane.b32.xlu0 %v10124_v53, %s10923_s25 }
 0x930   : > { %4958 = vrot.lane.b32.xlu1 %v10138_v59, %s10930_s6 }
 0x931   : > { %5062 = vrot.lane.b32.xlu0 %v10124_v53, %s7881_s29 }
 0x934   : > { %5058 = vrot.lane.b32.xlu1 %v10105_v21, %s7881_s29 }
 0x935   : > { %4954 = vrot.lane.b32.xlu0 %v10144_v27, %s10930_s6 }
 0x938   : > { %4936 = vrot.lane.b32.xlu1 %v10138_v59, %s10926_s0 }
 0x939   : > { %4932 = vrot.lane.b32.xlu0 %v10144_v27, %s10926_s0 }
 0x93c   : > { %5040 = vrot.lane.b32.xlu1 %v10124_v53, %s10931_s8 }
 0x93d   : > { %4910 = vrot.lane.b32.xlu0 %v10144_v27, %s10923_s25 }
 0x940   : > { %4914 = vrot.lane.b32.xlu1 %v10138_v59, %s10923_s25 }
 0x941   : > { %5064 = vrot.lane.b32.xlu0 %v10144_v27, %s7881_s29 }
 0x944   : > { %5036 = vrot.lane.b32.xlu1 %v10105_v21, %s10931_s8 }
 0x945   : > { %4956 = vrot.lane.b32.xlu0 %v10162_v29, %s10930_s6 }
 0x948   : > { %5068 = vrot.lane.b32.xlu1 %v10138_v59, %s7881_s29 }
 0x949   : > { %5042 = vrot.lane.b32.xlu0 %v10144_v27, %s10931_s8 }
 0x94c   : > { %5018 = vrot.lane.b32.xlu1 %v10124_v53, %s10924_s2 }
 0x94d   : > { %4934 = vrot.lane.b32.xlu0 %v10162_v29, %s10926_s0 }
 0x950   : > { %5044 = vrot.lane.b32.xlu1 %v10162_v29, %s10931_s8 }
 0x951   : > { %5038 = vrot.lane.b32.xlu0 %v10120_v6, %s10931_s8 }
 0x954   : > { %5014 = vrot.lane.b32.xlu1 %v10105_v21, %s10924_s2 }
 0x955   : > { %4912 = vrot.lane.b32.xlu0 %v10162_v29, %s10923_s25  ;;  %s10933_s25 = smov 109  }
 0x958   : > { %5022 = vrot.lane.b32.xlu1 %v10162_v29, %s10924_s2 }
 0x959   : > { %5066 = vrot.lane.b32.xlu0 %v10162_v29, %s7881_s29 }
 0x95c   : > { %4996 = vrot.lane.b32.xlu1 %v10124_v53, %s10932_s7 }
 0x95d   : > { %5020 = vrot.lane.b32.xlu0 %v10144_v27, %s10924_s2 }
 0x960   : > { %5000 = vrot.lane.b32.xlu1 %v10162_v29, %s10932_s7 }
 0x961   : > { %5046 = vrot.lane.b32.xlu0 %v10138_v59, %s10931_s8 }
 0x964   : > { %4992 = vrot.lane.b32.xlu1 %v10105_v21, %s10932_s7 }
 0x965   : > { %5016 = vrot.lane.b32.xlu0 %v10120_v6, %s10924_s2 }
 0x968   : > { %4978 = vrot.lane.b32.xlu1 %v10162_v29, %s10933_s25 }
 0x969   : > { %5024 = vrot.lane.b32.xlu0 %v10138_v59, %s10924_s2 }
 0x96c   : > { %4974 = vrot.lane.b32.xlu1 %v10124_v53, %s10933_s25 }
 0x96d   : > { %4998 = vrot.lane.b32.xlu0 %v10144_v27, %s10932_s7 }
 0x970   : > { %4970 = vrot.lane.b32.xlu1 %v10105_v21, %s10933_s25 }
 0x971   : > { %5002 = vrot.lane.b32.xlu0 %v10138_v59, %s10932_s7 }
 0x974   : > { %5104 = vperm.xlu1 %7317, %v5090_v31  }
 0x975   : > { %4994 = vrot.lane.b32.xlu0 %v10120_v6, %s10932_s7 }
 0x978   : > { %5094 = vperm.xlu1 %7317, %v5088_v41   ;;  %v10288_v41 = vld [vmem:[%s10935_s26 + $0x8] ss:$12 sps:$4 sm:$0xff]  }
 0x979   : > { %4980 = vrot.lane.b32.xlu0 %v10138_v59, %s10933_s25 }
 0x97d   : > { %4976 = vrot.lane.b32.xlu0 %v10144_v27, %s10933_s25 }
 0x981   : > { %4972 = vrot.lane.b32.xlu0 %v10120_v6, %s10933_s25 }
 0x985   : > { %5109 = vperm.xlu0 %7318, %v5091_v40  }
 0x986   : > { %v4949_v9 = vpop.permute.xlu1 %4948 }
 0x989   : > { %5099 = vperm.xlu0 %7318, %v5089_v37  }
 0x98a   : > { %v4927_v30 = vpop.permute.xlu1 %4926 }
 0x98e   : > { %v4905_v54 = vpop.permute.xlu1 %4904 }
 0x992   : > { %v4951_v58 = vpop.permute.xlu1 %4950 }
 0x993   : > { %v4960_v57 = vsel %vm4552_vm13, %v4949_v9, %v4951_v58 }
 0x996   : > { %v4929_v36 = vpop.permute.xlu1 %4928 }
 0x997   : > { %v10238_v63 = vpop.permute.xlu0 %4952  ;;  %v4938_v8 = vsel %vm829_vm6, %v4927_v30, %v4929_v36 }
 0x998   : > { %v4961_v46 = vsel %vm4552_vm13, %v4951_v58, %v10238_v63 }
 0x99a   : > { %v4907_v15 = vpop.permute.xlu1 %4906 }
 0x99b   : > { %v10240_v52 = vpop.permute.xlu0 %4930  ;;  %v4916_v56 = vsel %vm793_vm8, %v4905_v54, %v4907_v15 }
 0x99c   : > { %v4939_v23 = vsel %vm829_vm6, %v4929_v36, %v10240_v52 }
 0x99e   : > { %v5061_v5 = vpop.permute.xlu1 %5060 }
 0x99f   : > { %v10242_v7 = vpop.permute.xlu0 %4908 }
 0x9a0   : > { %v4917_v20 = vsel %vm793_vm8, %v4907_v15, %v10242_v7 }
 0x9a2   : > { %v10244_v44 = vpop.permute.xlu1 %4958 }
 0x9a3   : > { %v10246_v42 = vpop.permute.xlu0 %5062 }
 0x9a4   : > { %v5071_v3 = vsel %vm4611_vm14, %v5061_v5, %v10246_v42 }
 0x9a6   : > { %v5059_v14 = vpop.permute.xlu1 %5058 }
 0x9a7   : > { %v4955_v48 = vpop.permute.xlu0 %4954  ;;  %v5070_v31 = vsel %vm4611_vm14, %v5059_v14, %v5061_v5 }
 0x9aa   : > { %v10248_v0 = vpop.permute.xlu1 %4936 }
 0x9ab   : > { %v4933_v61 = vpop.permute.xlu0 %4932 }
 0x9ae   : > { %v10250_v10 = vpop.permute.xlu1 %5040 }
 0x9af   : > { %v4911_v32 = vpop.permute.xlu0 %4910 }
 0x9b2   : > { %v10252_v38 = vpop.permute.xlu1 %4914 }
 0x9b3   : > { %v5065_v11 = vpop.permute.xlu0 %5064 }
 0x9b6   : > { %v10254_v55 = vpop.permute.xlu1 %5036 }
 0x9b7   : > { %v4957_v62 = vpop.permute.xlu0 %4956 }
 0x9b8   : > { %v4962_v13 = vsel %vm4552_vm13, %v4955_v48, %v4957_v62  ;;  %v4963_v60 = vsel %vm4552_vm13, %v4957_v62, %v10244_v44 }
 0x9b9   : > { %5149 = vmatprep.subr.bf16.mxu1 %v4963_v60 }
 0x9ba   : > { %5150 = vmatpush1.bf16.msra.mxu1 %v4962_v13  ;;  %v10261_v25 = vpop.permute.xlu1 %5068 }
 0x9bb   : > { %v5043_v45 = vpop.permute.xlu0 %5042  ;;  %5151 = vmatprep.subr.bf16.mxu1 %v4961_v46 }
 0x9be   : > { %5152 = vmatpush1.bf16.msra.mxu1 %v4960_v57  ;;  %v10264_v49 = vpop.permute.xlu1 %5018 }
 0x9bf   : > { %v4935_v26 = vpop.permute.xlu0 %4934 }
 0x9c0   : > { %v4940_v35 = vsel %vm829_vm6, %v4933_v61, %v4935_v26  ;;  %v4941_v18 = vsel %vm829_vm6, %v4935_v26, %v10248_v0  ;;  %vm5142_vm6 = vcmask 261120  }
 0x9c1   : > { %5153 = vmatprep.subr.bf16.mxu1 %v4941_v18 }
 0x9c2   : > { %5154 = vmatpush1.bf16.msra.mxu1 %v4940_v35  ;;  %v5045_v47 = vpop.permute.xlu1 %5044 }
 0x9c3   : > { %v5039_v17 = vpop.permute.xlu0 %5038  ;;  %5155 = vmatprep.subr.bf16.mxu1 %v4939_v23 }
 0x9c6   : > { %5156 = vmatpush1.bf16.msra.mxu1 %v4938_v8  ;;  %v5015_v16 = vpop.permute.xlu1 %5014 }
 0x9c7   : > { %v4913_v33 = vpop.permute.xlu0 %4912 }
 0x9c8   : > { %v4918_v19 = vsel %vm793_vm8, %v4911_v32, %v4913_v33  ;;  %v4919_v50 = vsel %vm793_vm8, %v4913_v33, %v10252_v38 }
 0x9c9   : > { %5157 = vmatprep.subr.bf16.mxu1 %v4919_v50 }
 0x9ca   : > { %5158 = vmatpush1.bf16.msra.mxu1 %v4918_v19  ;;  %v5023_v1 = vpop.permute.xlu1 %5022 }
 0x9cb   : > { %v5067_v39 = vpop.permute.xlu0 %5066  ;;  %5159 = vmatprep.subr.bf16.mxu1 %v4917_v20 }
 0x9cc   : > { %v5072_v4 = vsel %vm4611_vm14, %v5065_v11, %v5067_v39  ;;  %v5073_v28 = vsel %vm4611_vm14, %v5067_v39, %v10261_v25 }
 0x9cd   : > { %5214 = vmatprep.subr.bf16.mxu0 %v5073_v28 }
 0x9ce   : > { %5160 = vmatpush1.bf16.msra.mxu1 %v4916_v56  ;;  %5215 = vmatpush1.bf16.msra.mxu0 %v5072_v4  ;;  %v4997_v9 = vpop.permute.xlu1 %4996 }
 0x9cf   : > { %v5021_v2 = vpop.permute.xlu0 %5020  ;;  %5161 = vmatprep.subr.bf16.mxu1 %v10162_v29  ;;  %5216 = vmatprep.subr.bf16.mxu0 %v5071_v3  ;;  %v5365_v3 = vld [vmem:[%s10865_s10] sm:$0x7] }
 0x9d2   : > { %5162 = vmatpush1.bf16.msra.mxu1 %v10144_v27  ;;  %5217 = vmatpush1.bf16.msra.mxu0 %v5070_v31  ;;  %v5050_v27 = vsel %vm4599_vm9, %v5043_v45, %v5045_v47  ;;  %v5001_v30 = vpop.permute.xlu1 %5000 }
 0x9d3   : > { %v5047_v40 = vpop.permute.xlu0 %5046  ;;  %5163 = vmatprep.subr.bf16.mxu1 %v10120_v6  ;;  %v10303_v6 = vld [vmem:[%s10935_s26 + $0x20] ss:$12 sps:$4 sm:$0xff]  }
 0x9d4   : > { %6986 = vmatprep.subr.bf16.mxu0 %v5047_v40  ;;  %v5051_v29 = vsel %vm4599_vm9, %v5045_v47, %v5047_v40 }
 0x9d5   : > { %6799 = vmatmul.mubr.msk.bf16.vlgmr.msra.gmra.mxu0 %vm5142_vm6, %v10288_v41 }
 0x9d6   : > { %5164 = vmatpush1.bf16.msra.mxu1 %v10105_v21  ;;  %6987 = vmatpush3.bf16.msra.mxu0 %v10244_v44  ;;  %v5049_v21 = vsel %vm4599_vm9, %v5039_v17, %v10250_v10  ;;  %v4993_v15 = vpop.permute.xlu1 %4992 }
 0x9d7   : > { %v5017_v37 = vpop.permute.xlu0 %5016  ;;  %5165 = vmatprep.subr.bf16.mxu1 %v5051_v29  ;;  %6988 = vmatprep.subr.bf16.mxu0 %v10250_v10 }
 0x9d8   : > { %5244 = vmatprep.mubr.bf16.mxu0 %v7871_v12  ;;  %v5048_v12 = vsel %vm4599_vm9, %v10254_v55, %v5039_v17  ;;  %v5027_v5 = vsel %vm937_vm5, %v5017_v37, %v10264_v49  ;;  %v5026_v14 = vsel %vm937_vm5, %v5015_v16, %v5017_v37 }
 0x9da   : > { %5166 = vmatpush2.bf16.msra.mxu1 %v5050_v27  ;;  %6989 = vmatpush3.bf16.msra.mxu0 %v10238_v63  ;;  %v5028_v63 = vsel %vm937_vm5, %v5021_v2, %v5023_v1 }
 0x9db   : > { %v5025_v54 = vpop.permute.xlu0 %5024  ;;  %5167 = vmatprep.subr.bf16.mxu1 %v5049_v21 }
 0x9dc   : > { %6990 = vmatprep.subr.bf16.mxu0 %v5025_v54  ;;  %v5029_v58 = vsel %vm937_vm5, %v5023_v1, %v5025_v54  ;;  %vm6505_vm5 = vcmask 0  }
 0x9dd   : > { %6800 = vmatmul.mubr.msk.bf16.gmra.mxu0 %vm5142_vm6, %v10303_v6 }
 0x9de   : > { %5168 = vmatpush2.bf16.msra.mxu1 %v5048_v12  ;;  %6991 = vmatpush3.bf16.msra.mxu0 %v10248_v0 }
 0x9df   : > { %v4999_v36 = vpop.permute.xlu0 %4998  ;;  %5169 = vmatprep.subr.bf16.mxu1 %v5029_v58  ;;  %6992 = vmatprep.subr.bf16.mxu0 %v10264_v49 }
 0x9e0   : > { %5287 = vmatprep.mubr.bf16.mxu0 %v10218_v43  ;;  %v4979_v43 = vpop.permute.xlu1 %4978  ;;  %v5006_v61 = vsel %vm4576_vm11, %v4999_v36, %v5001_v30 }
 0x9e2   : > { %5170 = vmatpush2.bf16.msra.mxu1 %v5028_v63  ;;  %6993 = vmatpush3.bf16.msra.mxu0 %v10240_v52 }
 0x9e3   : > { %v5003_v44 = vpop.permute.xlu0 %5002  ;;  %5171 = vmatprep.subr.bf16.mxu1 %v5027_v5 }
 0x9e4   : > { %6994 = vmatprep.subr.bf16.mxu0 %v5003_v44  ;;  %v5007_v48 = vsel %vm4576_vm11, %v5001_v30, %v5003_v44  ;;  %v4975_v32 = vpop.permute.xlu1 %4974  ;;  %v5374_v30 = vrot.slane %v5365_v3, %v8409_v22 }
 0x9e6   : > { %5172 = vmatpush2.bf16.msra.mxu1 %v5026_v14  ;;  %6995 = vmatpush3.bf16.msra.mxu0 %v10252_v38 }
 0x9e7   : > { %v4995_v0 = vpop.permute.xlu0 %4994  ;;  %5173 = vmatprep.subr.bf16.mxu1 %v5007_v48  ;;  %6996 = vmatprep.subr.bf16.mxu0 %v4997_v9 }
 0x9e8   : > { %v5005_v52 = vsel %vm4576_vm11, %v4995_v0, %v4997_v9  ;;  %v5004_v11 = vsel %vm4576_vm11, %v4993_v15, %v4995_v0  ;;  %v4971_v13 = vpop.permute.xlu1 %4970  ;;  %v10358_v9 = vrot.slane %v5365_v3, %v8396_v51  ;;  %v5378_v0 = vrot.slane %v5365_v3, %v8420_v34 }
 0x9ea   : > { %5174 = vmatpush2.bf16.msra.mxu1 %v5006_v61  ;;  %6997 = vmatpush3.bf16.msra.mxu0 %v10242_v7  ;;  %v7748_v7 = vld [vmem:[%s10935_s26] ss:$12 sps:$4 sm:$0xff]  }
 0x9eb   : > { %v4981_v10 = vpop.permute.xlu0 %4980  ;;  %5175 = vmatprep.subr.bf16.mxu1 %v5005_v52 }
 0x9ec   : > { %6998 = vmatprep.subr.bf16.mxu0 %v4981_v10  ;;  %v4985_v38 = vsel %vm4564_vm12, %v4979_v43, %v4981_v10 }
 0x9ee   : > { %5176 = vmatpush2.bf16.msra.mxu1 %v5004_v11  ;;  %6999 = vmatpush3.bf16.msra.mxu0 %v10138_v59  ;;  %v7751_v59 = vld [vmem:[%s10935_s26 + $0x1c] ss:$12 sps:$4 sm:$0xff]  }
 0x9ef   : > { %v4977_v55 = vpop.permute.xlu0 %4976  ;;  %5177 = vmatprep.subr.bf16.mxu1 %v4985_v38  ;;  %7000 = vmatprep.subr.bf16.mxu0 %v4975_v32  ;;  %v5105_v4 = vpop.permute.xlu1 %5104 }
 0x9f0   : > { %v4984_v62 = vsel %vm4564_vm12, %v4977_v55, %v4979_v43 }
 0x9f2   : > { %5178 = vmatpush2.bf16.msra.mxu1 %v4984_v62  ;;  %7001 = vmatpush3.bf16.msra.mxu0 %v10124_v53  ;;  %v7753_v53 = vld [vmem:[%s10935_s26 + $0x18] ss:$12 sps:$4 sm:$0xff]  }
 0x9f3   : > { %v4973_v60 = vpop.permute.xlu0 %4972  ;;  %7084 = vmatprep.subr.bf16.mxu0 %v10261_v25 }
 0x9f4   : > { %v4982_v46 = vsel %vm4564_vm12, %v4971_v13, %v4973_v60  ;;  %v4983_v45 = vsel %vm4564_vm12, %v4973_v60, %v4975_v32 }
 0x9f5   : > { %5179 = vmatprep.subr.bf16.mxu1 %v4983_v45  ;;  %5288 = vmatmul.mubr.bf16.vlgmr.msra.gmra.mxu0 %v7748_v7 }
 0x9f6   : > { %5180 = vmatpush2.bf16.msra.mxu1 %v4982_v46  ;;  %7085 = vmatpush3.bf16.msra.mxu0 %v10261_v25 }
 0x9f7   : > { %7086 = vmatprep.subr.bf16.mxu0 %v10246_v42  ;;  %5295 = vmatprep.mubr.bf16.mxu0 %v7751_v59 }
 0x9f9   : > { %5182 = vmatmul.mubr.bf16.vlgmr.msra.gmra.mxu1 %v7748_v7 }
 0x9fa   : > { %7087 = vmatpush3.bf16.msra.mxu0 %v10246_v42  ;;  %5191 = vmatprep.mubr.bf16.mxu1 %v7751_v59 }
 0x9fd   : > { %5296 = vmatmul.mubr.bf16.gmra.mxu0 %v7753_v53 }
 0x9fe   : > { %7088 = vmatprep.mubr.msk.bf16.mxu0 %vm5142_vm6, %v10288_v41 }
 0xa00   : > { %v5110_v16 = vpop.permute.xlu0 %5109 }
 0xa01   : > { %5192 = vmatmul.mubr.bf16.gmra.mxu1 %v7753_v53 }
 0xa04   : > { %v5100_v41 = vpop.permute.xlu0 %5099 }
 0xa05   : > { %7089 = vmatmul.mubr.msk.bf16.vlgmr.msra.gmra.mxu0 %vm5142_vm6, %v10303_v6  ;;  %v5095_v6 = vpop.permute.xlu1 %5094 }
 0xa95   : > { %v10350_v25 = vpop.f32.mrf.mxu0 }
 0xa97   : > { %v10352_v57 = vpop.f32.mrf.mxu0 }
 0xa99   : > { %v5240_v49 = vpop.f32.mrf.mxu0 }
 0xa9b   : > { %v5242_v26 = vpop.f32.mrf.mxu0 }
 0xa9d   : > { %v5246_v35 = vpop.f32.mrf.mxu0 }
 0xa9f   : > { %v5248_v18 = vpop.f32.mrf.mxu0 }
 0xaa1   : > { %v5250_v23 = vpop.f32.mrf.mxu0 }
 0xaa3   : > { %v5252_v17 = vpop.f32.mrf.mxu0 }
 0xab5   : > { %v7002_v42 = vpop.f32.mrf.mxu0 }
 0xab7   : > { %v7003_v47 = vpop.f32.mrf.mxu0 }
 0xab8   : > { %v7004_v21 = vadd.f32 %v7003_v47, %v7002_v42 }
 0xab9   : > { %v5183_v8 = vpop.f32.mrf.mxu1  ;;  %v7005_v33 = vpop.f32.mrf.mxu0 }
 0xaba   : > { %v5184_v14 = vadd.f32 %v5183_v8, %v5095_v6  ;;  %v5290_v46 = vadd.f32 %v7004_v21, %v5095_v6 }
 0xabb   : > { %v5185_v19 = vpop.f32.mrf.mxu1  ;;  %v7006_v50 = vpop.f32.mrf.mxu0 }
 0xabc   : > { %v7007_v58 = vadd.f32 %v7006_v50, %v7005_v33  ;;  %v5186_v61 = vadd.f32 %v5185_v19, %v5095_v6 }
 0xabd   : > { %v5187_v20 = vpop.f32.mrf.mxu1  ;;  %v7008_v39 = vpop.f32.mrf.mxu0 }
 0xabe   : > { %v5188_v36 = vadd.f32 %v5187_v20, %v5100_v41  ;;  %v5293_v53 = vadd.f32 %v7007_v58, %v5100_v41 }
 0xabf   : > { %v5189_v28 = vpop.f32.mrf.mxu1  ;;  %v7009_v56 = vpop.f32.mrf.mxu0 }
 0xac0   : > { %v7010_v1 = vadd.f32 %v7009_v56, %v7008_v39  ;;  %v5190_v29 = vadd.f32 %v5189_v28, %v5100_v41  ;;  %v5241_v60 = vadd.f32 %v5240_v49, %v5188_v36  ;;  %v5237_v39 = vadd.f32 %v10350_v25, %v5184_v14 }
 0xac1   : > { %v5193_v2 = vpop.f32.mrf.mxu1  ;;  %v7011_v31 = vpop.f32.mrf.mxu0 }
 0xac2   : > { %v5194_v40 = vadd.f32 %v5193_v2, %v5105_v4  ;;  %v5298_v5 = vadd.f32 %v7010_v1, %v5105_v4  ;;  %v5243_v52 = vadd.f32 %v5242_v26, %v5190_v29  ;;  %v5239_v26 = vadd.f32 %v10352_v57, %v5186_v61 }
 0xac3   : > { %v5195_v37 = vpop.f32.mrf.mxu1  ;;  %v7012_v27 = vpop.f32.mrf.mxu0 }
 0xac4   : > { %v5247_v54 = vadd.f32 %v5246_v35, %v5194_v40  ;;  %v5196_v12 = vadd.f32 %v5195_v37, %v5105_v4  ;;  %v7013_v63 = vadd.f32 %v7012_v27, %v7011_v31  ;;  %v5357_v50 = vmax.f32 %v5243_v52, 0.0 }
 0xac5   : > { %v5197_v15 = vpop.f32.mrf.mxu1  ;;  %v7090_v44 = vpop.f32.mrf.mxu0  ;;  %v5356_v4 = vmax.f32 %v5241_v60, 0.0  ;;  %v5354_v2 = vmax.f32 %v5239_v26, 0.0  ;;  %v5353_v27 = vmax.f32 %v5237_v39, 0.0 }
 0xac6   : > { %v5249_v48 = vadd.f32 %v5248_v18, %v5196_v12  ;;  %v5198_v43 = vadd.f32 %v5197_v15, %v5110_v16  ;;  %v5359_v10 = vmax.f32 %v5247_v54, 0.0  ;;  %v5347_v32 = vadd.f32 %v7090_v44, %v5298_v5 }
 0xac7   : > { %v5199_v11 = vpop.f32.mrf.mxu1  ;;  %v5338_v38 = vpop.f32.mrf.mxu0  ;;  %v5301_v13 = vadd.f32 %v7013_v63, %v5110_v16  ;;  %v10382_v40 = vmul.f32 %v5374_v30, %v5357_v50  ;;  %v10391_v6 = vmul.f32 %v10358_v9, %v5356_v4  ;;  %v10397_v58 = vmul.f32 %v5374_v30, %v5354_v2  ;;  %v7757_v2 = vld [vmem:[%s10871_s16 + $0x60] ss:$8 sps:$4 sm:$0xff]  }
 0xac8   : > { %v5360_v55 = vmax.f32 %v5249_v48, 0.0  ;;  %v5251_v62 = vadd.f32 %v5250_v23, %v5198_v43  ;;  %v5200_v7 = vadd.f32 %v5199_v11, %v5110_v16  ;;  %v5361_v59 = vmax.f32 %v5347_v32, 0.0  ;;  %v5419_v11 = vld [vmem:[%s10867_s12 + $0x8] sm:$0xff] }
 0xac9   : > { %v7091_v45 = vpop.f32.mrf.mxu0  ;;  %v10366_v8 = vmul.f32 %v10358_v9, %v5359_v10  ;;  %v5339_v23 = vadd.f32 %v5338_v38, %v5290_v46  ;;  %v5399_v36 = vadd.f32 %v10382_v40, %v10391_v6  ;;  %v10402_v63 = vmul.f32 %v10358_v9, %v5353_v27  ;;  %v5420_v38 = vld [vmem:[%s10867_s12 + $0x10] sm:$0xff] }
 0xaca   : > { %v10362_v35 = vmul.f32 %v5374_v30, %v5360_v55  ;;  %v5362_v18 = vmax.f32 %v5251_v62, 0.0  ;;  %v5253_v42 = vadd.f32 %v5252_v17, %v5200_v7  ;;  %v5350_v47 = vadd.f32 %v7091_v45, %v5301_v13  ;;  %v5421_v55 = vld [vmem:[%s10867_s12 + $0x18] sm:$0xff] }
 0xacb   : > { %v10368_v33 = vmul.f32 %v5378_v0, %v5361_v59  ;;  %v5341_v19 = vpop.f32.mrf.mxu0  ;;  %v5355_v31 = vmax.f32 %v5339_v23, 0.0  ;;  %v5394_v44 = vadd.f32 %v10397_v58, %v10402_v63 }
 0xacc   : > { %v5363_v49 = vmax.f32 %v5253_v42, 0.0  ;;  %v5364_v16 = vmax.f32 %v5350_v47, 0.0  ;;  %v5342_v20 = vadd.f32 %v5341_v19, %v5293_v53  ;;  %v5404_v17 = vadd.f32 %v10362_v35, %v10366_v8 }
 0xacd   : > { %v5405_v57 = vsel %vm5142_vm6, %v10368_v33, 0.0  ;;  %v10376_v28 = vmul.f32 %v10358_v9, %v5362_v18  ;;  %v10393_v54 = vmul.f32 %v5378_v0, %v5355_v31  ;;  %v6811_v31 = vld [vmem:[%s10868_s13 + $0x1] ss:$4 sm:$0x7] }
 0xace   : > { %v10378_v56 = vmul.f32 %v5374_v30, %v5363_v49  ;;  %v10380_v3 = vmul.f32 %v5378_v0, %v5364_v16  ;;  %v5358_v1 = vmax.f32 %v5342_v20, 0.0  ;;  %v5406_v41 = vadd.f32 %v5405_v57, %v5404_v17  ;;  %v5418_v30 = vld [vmem:[%s10867_s12] sm:$0xff]  ;;  %v7754_v17 = vld [vmem:[%s10871_s16 + $0x70] ss:$8 sps:$4 sm:$0xff]   ;;  %v7756_v57 = vld [vmem:[%s10871_s16 + $0x74] ss:$8 sps:$4 sm:$0xff]  }
 0xacf   : > { %v5395_v5 = vsel %vm5142_vm6, %v10393_v54, 0.0  ;;  %7100 = vmatprep.mubr.msk.f32.mxu1 %vm5142_vm6, %v5418_v30  ;;  %6129 = vmatprep.subr.bf16.mxu0 %v7756_v57  ;;  %v10449_v27 = vrot.slane %v6811_v31, %v8409_v22 }
 0xad0   : > { %v10384_v25 = vmul.f32 %v5378_v0, %v5358_v1  ;;  %v5409_v29 = vadd.f32 %v10378_v56, %v10376_v28  ;;  %v5410_v37 = vsel %vm5142_vm6, %v10380_v3, 0.0  ;;  %5407 = vadd.xlane.f32.xlu1 %v5406_v41  ;;  %v5396_v14 = vadd.f32 %v5395_v5, %v5394_v44  ;;  %v7759_v1 = vld [vmem:[%s10871_s16 + $0x64] ss:$8 sps:$4 sm:$0xff]   ;;  %6130 = vmatpush1.bf16.msra.mxu0 %v7754_v17 }
 0xad1   : > { %6131 = vmatprep.subr.bf16.mxu0 %v7759_v1  ;;  %v5575_v41 = vld [vmem:[%s10868_s13] ss:$4 sm:$0x7] }
 0xad2   : > { %v5411_v21 = vadd.f32 %v5410_v37, %v5409_v29  ;;  %v5400_v12 = vsel %vm5142_vm6, %v10384_v25, 0.0  ;;  %v6816_v29 = vld [vmem:[%s10868_s13 + $0x2] ss:$4 sm:$0x7]  ;;  %v10446_v37 = vrot.slane %v6811_v31, %v8396_v51  ;;  %v10461_v5 = vrot.slane %v5575_v41, %v8409_v22 }
 0xad3   : > { %v5401_v15 = vadd.f32 %v5400_v12, %v5399_v36  ;;  %v10455_v12 = vrot.slane %v5575_v41, %v8396_v51  ;;  %v6821_v36 = vld [vmem:[%s10868_s13 + $0x3] ss:$4 sm:$0x7]  ;;  %v10464_v44 = vrot.slane %v5575_v41, %v8420_v34  ;;  %v10470_v30 = vrot.slane %v6816_v29, %v8409_v22 }
 0xad4   : > { %5412 = vadd.xlane.f32.xlu0 %v5411_v21  ;;  %6132 = vmatpush1.bf16.msra.mxu0 %v7757_v2  ;;  %v10452_v21 = vrot.slane %v6811_v31, %v8420_v34 }
 0xad8   : > { %5402 = vadd.xlane.f32.xlu0 %v5401_v15 }
 0xadc   : > { %5397 = vadd.xlane.f32.xlu0 %v5396_v14  ;;  %v10467_v14 = vrot.slane %v6816_v29, %v8396_v51 }
 0xb59   : > { %v5408_v48 = vpop.xlane.xlu1 %5407 }
 0xb5a   : > { %v5416_v0 = vmul.f32 0.00390625, %v5408_v48 }
 0xb5d   : > { %v5413_v43 = vpop.xlane.xlu0 %5412 }
 0xb5e   : > { %v5417_v9 = vmul.f32 0.00390625, %v5413_v43 }
 0xb60   : > { %7092 = vmatprep.subr.mxu1 %v5417_v9 }
 0xb61   : > { %7093 = vmatpush3.msra.mxu1 %v5417_v9  ;;  %v5403_v61 = vpop.xlane.xlu0 %5402 }
 0xb62   : > { %v5415_v52 = vmul.f32 0.00390625, %v5403_v61  ;;  %7094 = vmatprep.subr.mxu1 %v5416_v0 }
 0xb63   : > { %7095 = vmatpush3.msra.mxu1 %v5416_v0  ;;  %v10476_v0 = vrot.slane %v6816_v29, %v8420_v34 }
 0xb64   : > { %7096 = vmatprep.subr.mxu1 %v5415_v52 }
 0xb65   : > { %v5398_v10 = vpop.xlane.xlu0 %5397  ;;  %7097 = vmatpush3.msra.mxu1 %v5415_v52  ;;  %v10479_v52 = vrot.slane %v6821_v36, %v8396_v51 }
 0xb66   : > { %v5414_v32 = vmul.f32 0.00390625, %v5398_v10  ;;  %v10482_v10 = vrot.slane %v6821_v36, %v8409_v22 }
 0xb68   : > { %7098 = vmatprep.subr.mxu1 %v5414_v32 }
 0xb69   : > { %7099 = vmatpush3.msra.mxu1 %v5414_v32 }
 0xb6a   : > { %7101 = vmatmul.mubr.msk.f32.vlgmr.msra.gmra.mxu1 %vm5142_vm6, %v5419_v11 }
 0xb6b   : > { %7103 = vmatprep.mubr.msk.f32.mxu1 %vm5142_vm6, %v5420_v38 }
 0xb6e   : > { %7104 = vmatmul.mubr.msk.f32.gmra.mxu1 %vm5142_vm6, %v5421_v55 }
 0xc2a   : > { %v7102_v62 = vpop.f32.mrf.mxu1 }
 0xc2b   : > { %v6808_v7 = vmul.f32 -1.442695, %v7102_v62 }
 0xc2c   : > { %v5500_v13 = vpop.f32.mrf.mxu1 }
 0xc2d   : > { %7826 = vpow2.f32 %v6808_v7  ;;  %v6807_v60 = vmul.f32 -1.442695, %v5500_v13 }
 0xc2e   : > { %v7105_v59 = vpop.f32.mrf.mxu1 }
 0xc2f   : > { %7828 = vpow2.f32 %v6807_v60  ;;  %v6810_v46 = vmul.f32 -1.442695, %v7105_v59 }
 0xc30   : > { %v5510_v45 = vpop.f32.mrf.mxu1 }
 0xc31   : > { %7830 = vpow2.f32 %v6810_v46  ;;  %v6809_v53 = vmul.f32 -1.442695, %v5510_v45 }
 0xc33   : > { %7832 = vpow2.f32 %v6809_v53 }
 0xc3a   : > { %v7827_v18 = vpop.eup %7826 }
 0xc3b   : > { %v5532_v42 = vadd.f32 1.0, %v7827_v18 }
 0xc3c   : > { %v7829_v47 = vpop.eup %7828 }
 0xc3d   : > { %7834 = vrcp.f32 %v5532_v42  ;;  %v5531_v26 = vadd.f32 1.0, %v7829_v47 }
 0xc3e   : > { %v7831_v23 = vpop.eup %7830 }
 0xc3f   : > { %7836 = vrcp.f32 %v5531_v26  ;;  %v5534_v50 = vadd.f32 1.0, %v7831_v23 }
 0xc40   : > { %v7833_v19 = vpop.eup %7832 }
 0xc41   : > { %v5533_v49 = vadd.f32 1.0, %v7833_v19 }
 0xc43   : > { %7838 = vrcp.f32 %v5533_v49 }
 0xc44   : > { %7840 = vrcp.f32 %v5534_v50 }
 0xc4a   : > { %v7835_v16 = vpop.eup %7834 }
 0xc4b   : > { %5550 = vperm.xlu0 %7318, %v7835_v16  }
 0xc4c   : > { %v7837_v20 = vpop.eup %7836 }
 0xc4d   : > { %5545 = vperm.xlu1 %7317, %v7837_v20  }
 0xc50   : > { %v7839_v39 = vpop.eup %7838 }
 0xc51   : > { %5555 = vperm.xlu1 %7317, %v7839_v39   ;;  %v7841_v4 = vpop.eup %7840 }
 0xc55   : > { %5560 = vperm.xlu1 %7317, %v7841_v4  }
 0xcc6   : > { %v5551_v15 = vpop.permute.xlu0 %5550 }
 0xcc7   : > { %v5566_v48 = vmul.f32 %v5551_v15, %v10391_v6  ;;  %v5567_v43 = vmul.f32 %v5551_v15, %v10382_v40  ;;  %v5568_v9 = vmul.f32 %v5551_v15, %v10384_v25  ;;  %v10488_v40 = vrot.slane %v6821_v36, %v8420_v34 }
 0xcc8   : > { %v5546_v61 = vpop.permute.xlu1 %5545 }
 0xcc9   : > { %v5563_v32 = vmul.f32 %v5546_v61, %v10402_v63  ;;  %v5564_v11 = vmul.f32 %v5546_v61, %v10397_v58  ;;  %v5673_v6 = vmul.f32 %v10446_v37, %v5566_v48  ;;  %v5674_v25 = vmul.f32 %v10449_v27, %v5567_v43 }
 0xcca   : > { %v5675_v38 = vmul.f32 %v10452_v21, %v5568_v9  ;;  %v5595_v55 = vmul.f32 %v10455_v12, %v5566_v48  ;;  %v5596_v62 = vmul.f32 %v10461_v5, %v5567_v43  ;;  %v5597_v7 = vmul.f32 %v10464_v44, %v5568_v9 }
 0xccb   : > { %v5752_v13 = vmul.f32 %v10467_v14, %v5566_v48  ;;  %v5753_v63 = vmul.f32 %v10470_v30, %v5567_v43  ;;  %v5754_v58 = vmul.f32 %v10476_v0, %v5568_v9  ;;  %v5565_v60 = vmul.f32 %v5546_v61, %v10393_v54 }
 0xccc   : > { %v5556_v34 = vpop.permute.xlu1 %5555  ;;  %v5687_v59 = vmax.f32 %v5673_v6, %v5674_v25  ;;  %v5688_v46 = vsel %vm5142_vm6, %v5675_v38, -inf  ;;  %v5609_v45 = vmax.f32 %v5595_v55, %v5596_v62  ;;  %v5610_v42 = vsel %vm5142_vm6, %v5597_v7, -inf }
 0xccd   : > { %v10501_v53 = vmul.f32 %v5556_v34, %v10366_v8  ;;  %v10504_v18 = vmul.f32 %v5556_v34, %v10362_v35  ;;  %v5831_v47 = vmul.f32 %v10479_v52, %v5566_v48  ;;  %v5766_v19 = vmax.f32 %v5752_v13, %v5753_v63 }
 0xcce   : > { %v5689_v26 = vmax.f32 %v5687_v59, %v5688_v46  ;;  %v5611_v23 = vmax.f32 %v5609_v45, %v5610_v42  ;;  %v5767_v54 = vsel %vm5142_vm6, %v5754_v58, -inf  ;;  %v5832_v50 = vmul.f32 %v10482_v10, %v5567_v43 }
 0xccf   : > { %v5833_v49 = vmul.f32 %v10488_v40, %v5568_v9  ;;  %v5592_v16 = vmul.f32 %v10455_v12, %v5563_v32  ;;  %v5593_v8 = vmul.f32 %v10461_v5, %v5564_v11  ;;  %v5768_v20 = vmax.f32 %v5766_v19, %v5767_v54 }
 0xcd0   : > { %5690 = vmax.xlane.f32.xlu0 %v5689_v26  ;;  %5612 = vmax.xlane.f32.xlu1 %v5611_v23  ;;  %v5561_v35 = vpop.permute.xlu1 %5560  ;;  %v5594_v39 = vmul.f32 %v10464_v44, %v5565_v60  ;;  %v5749_v4 = vmul.f32 %v10467_v14, %v5563_v32  ;;  %v5845_v2 = vmax.f32 %v5831_v47, %v5832_v50 }
 0xcd1   : > { %v10516_v17 = vmul.f32 %v5561_v35, %v10376_v28  ;;  %v10519_v57 = vmul.f32 %v5561_v35, %v10378_v56  ;;  %v10522_v1 = vmul.f32 %v5561_v35, %v10380_v3  ;;  %v5846_v31 = vsel %vm5142_vm6, %v5833_v49, -inf  ;;  %v7760_v49 = vld [vmem:[%s10871_s16 + $0x50] ss:$8 sps:$4 sm:$0xff]  }
 0xcd2   : > { %v5604_v41 = vmax.f32 %v5592_v16, %v5593_v8  ;;  %v5605_v29 = vsel %vm5142_vm6, %v5594_v39, -inf  ;;  %v5750_v36 = vmul.f32 %v10470_v30, %v5564_v11  ;;  %v5847_v15 = vmax.f32 %v5845_v2, %v5846_v31  ;;  %v7762_v16 = vld [vmem:[%s10871_s16 + $0x54] ss:$8 sps:$4 sm:$0xff]  }
 0xcd3   : > { %v5751_v48 = vmul.f32 %v10476_v0, %v5565_v60  ;;  %v5670_v28 = vmul.f32 %v10446_v37, %v5563_v32  ;;  %v5671_v43 = vmul.f32 %v10449_v27, %v5564_v11  ;;  %v5571_v56 = vmul.f32 %v5556_v34, %v10368_v33  ;;  %6133 = vmatprep.subr.bf16.mxu0 %v7762_v16  ;;  %v7801_v16 = vld [vmem:[%s10871_s16 + $0x84] ss:$8 sps:$4 sm:$0xff]  }
 0xcd4   : > { %5769 = vmax.xlane.f32.xlu0 %v5768_v20  ;;  %v5761_v3 = vmax.f32 %v5749_v4, %v5750_v36  ;;  %v5672_v9 = vmul.f32 %v10452_v21, %v5565_v60  ;;  %v5601_v61 = vmul.f32 %v10455_v12, %v10516_v17  ;;  %5848 = vmax.xlane.f32.xlu1 %v5847_v15 }
 0xcd5   : > { %v5762_v6 = vsel %vm5142_vm6, %v5751_v48, -inf  ;;  %v5602_v25 = vmul.f32 %v10461_v5, %v10519_v57  ;;  %v5603_v38 = vmul.f32 %v10464_v44, %v10522_v1  ;;  %v5606_v55 = vmax.f32 %v5604_v41, %v5605_v29  ;;  %6134 = vmatpush1.bf16.msra.mxu0 %v7760_v49  ;;  %v7805_v49 = vld [vmem:[%s10873_s18 + $0x30] sm:$0xff]  }
 0xcd6   : > { %v5682_v62 = vmax.f32 %v5670_v28, %v5671_v43  ;;  %v5828_v33 = vmul.f32 %v10479_v52, %v5563_v32  ;;  %v5829_v7 = vmul.f32 %v10482_v10, %v5564_v11  ;;  %v5763_v13 = vmax.f32 %v5761_v3, %v5762_v6 }
 0xcd7   : > { %v5683_v63 = vsel %vm5142_vm6, %v5672_v9, -inf  ;;  %v5619_v58 = vmax.f32 %v5601_v61, %v5602_v25  ;;  %v5830_v34 = vmul.f32 %v10488_v40, %v5565_v60  ;;  %v5620_v59 = vsel %vm5142_vm6, %v5603_v38, -inf  ;;  %v7766_v61 = vld [vmem:[%s10871_s16 + $0x30] ss:$8 sps:$4 sm:$0xff]  }
 0xcd8   : > { %5607 = vmax.xlane.f32.xlu0 %v5606_v55  ;;  %v5598_v46 = vmul.f32 %v10455_v12, %v10501_v53  ;;  %v5599_v45 = vmul.f32 %v10461_v5, %v10504_v18  ;;  %v5600_v42 = vmul.f32 %v10464_v44, %v5571_v56  ;;  %5764 = vmax.xlane.f32.xlu1 %v5763_v13 }
 0xcd9   : > { %v5840_v32 = vmax.f32 %v5828_v33, %v5829_v7  ;;  %v5679_v11 = vmul.f32 %v10446_v37, %v10516_v17  ;;  %v5680_v47 = vmul.f32 %v10449_v27, %v10519_v57  ;;  %v5684_v60 = vmax.f32 %v5682_v62, %v5683_v63  ;;  %v7771_v7 = vld [vmem:[%s10871_s16 + $0x24] ss:$8 sps:$4 sm:$0xff]  }
 0xcda   : > { %v5841_v26 = vsel %vm5142_vm6, %v5830_v34, -inf  ;;  %v5614_v23 = vmax.f32 %v5598_v46, %v5599_v45  ;;  %v5681_v12 = vmul.f32 %v10452_v21, %v10522_v1  ;;  %v5621_v19 = vmax.f32 %v5619_v58, %v5620_v59  ;;  %v7777_v63 = vld [vmem:[%s10871_s16 + $0x4] ss:$8 sps:$4 sm:$0xff]   ;;  %v7775_v58 = vld [vmem:[%s10871_s16] ss:$8 sps:$4 sm:$0xff]  }
 0xcdb   : > { %v5615_v5 = vsel %vm5142_vm6, %v5600_v42, -inf  ;;  %v5755_v44 = vmul.f32 %v10467_v14, %v10501_v53  ;;  %v5756_v54 = vmul.f32 %v10470_v30, %v10504_v18  ;;  %v5757_v50 = vmul.f32 %v10476_v0, %v5571_v56  ;;  %v7778_v34 = vld [vmem:[%s10871_s16 + $0xf0] ss:$8 sps:$4 sm:$0xff]   ;;  %v7780_v59 = vld [vmem:[%s10871_s16 + $0xf4] ss:$8 sps:$4 sm:$0xff]  }
 0xcdc   : > { %5685 = vmax.xlane.f32.xlu0 %v5684_v60  ;;  %5622 = vmax.xlane.f32.xlu1 %v5621_v19  ;;  %v5842_v8 = vmax.f32 %v5840_v32, %v5841_v26  ;;  %v5697_v35 = vmax.f32 %v5679_v11, %v5680_v47  ;;  %v5616_v20 = vmax.f32 %v5614_v23, %v5615_v5  ;;  %v5698_v39 = vsel %vm5142_vm6, %v5681_v12, -inf  ;;  %v7783_v46 = vld [vmem:[%s10871_s16 + $0xe4] ss:$8 sps:$4 sm:$0xff]   ;;  %v7781_v45 = vld [vmem:[%s10871_s16 + $0xe0] ss:$8 sps:$4 sm:$0xff]   ;;  %v7802_v5 = vld [vmem:[%s10873_s18 + $0x78] sm:$0xff]  }
 0xcdd   : > { %v5676_v4 = vmul.f32 %v10446_v37, %v10501_v53  ;;  %v5677_v2 = vmul.f32 %v10449_v27, %v10504_v18  ;;  %v5771_v31 = vmax.f32 %v5755_v44, %v5756_v54  ;;  %v5678_v41 = vmul.f32 %v10452_v21, %v5571_v56  ;;  %v7786_v42 = vld [vmem:[%s10871_s16 + $0xd4] ss:$8 sps:$4 sm:$0xff]   ;;  %v7784_v32 = vld [vmem:[%s10871_s16 + $0xd0] ss:$8 sps:$4 sm:$0xff]   ;;  %v7789_v11 = vld [vmem:[%s10871_s16 + $0xc4] ss:$8 sps:$4 sm:$0xff]   ;;  %7026 = vmatprep.subr.bf16.mxu1 %v7802_v5 }
 0xcde   : > { %v5834_v29 = vmul.f32 %v10479_v52, %v10501_v53  ;;  %v5835_v36 = vmul.f32 %v10482_v10, %v10504_v18  ;;  %v5772_v15 = vsel %vm5142_vm6, %v5757_v50, -inf  ;;  %v5836_v48 = vmul.f32 %v10488_v40, %v5571_v56  ;;  %v7763_v53 = vld [vmem:[%s10871_s16 + $0x40] ss:$8 sps:$4 sm:$0xff]   ;;  %v7765_v18 = vld [vmem:[%s10871_s16 + $0x44] ss:$8 sps:$4 sm:$0xff]   ;;  %v7803_v44 = vld [vmem:[%s10873_s18 + $0x38] sm:$0xff]  }
 0xcdf   : > { %v5699_v37 = vmax.f32 %v5697_v35, %v5698_v39  ;;  %v5692_v28 = vmax.f32 %v5676_v4, %v5677_v2  ;;  %v5758_v27 = vmul.f32 %v10467_v14, %v10516_v17  ;;  %v5759_v21 = vmul.f32 %v10470_v30, %v10519_v57  ;;  %v7768_v14 = vld [vmem:[%s10871_s16 + $0x34] ss:$8 sps:$4 sm:$0xff]   ;;  %6135 = vmatprep.subr.bf16.mxu0 %v7765_v18  ;;  %v7787_v47 = vld [vmem:[%s10871_s16 + $0xc0] ss:$8 sps:$4 sm:$0xff]   ;;  %v7790_v26 = vld [vmem:[%s10871_s16 + $0xb0] ss:$8 sps:$4 sm:$0xff]  }
 0xce0   : > { %5843 = vmax.xlane.f32.xlu0 %v5842_v8  ;;  %5617 = vmax.xlane.f32.xlu1 %v5616_v20  ;;  %v5773_v43 = vmax.f32 %v5771_v31, %v5772_v15  ;;  %v5693_v56 = vsel %vm5142_vm6, %v5678_v41, -inf  ;;  %v5850_v3 = vmax.f32 %v5834_v29, %v5835_v36  ;;  %v5760_v9 = vmul.f32 %v10476_v0, %v10522_v1  ;;  %v7792_v60 = vld [vmem:[%s10871_s16 + $0xb4] ss:$8 sps:$4 sm:$0xff]   ;;  %v7795_v23 = vld [vmem:[%s10871_s16 + $0xa4] ss:$8 sps:$4 sm:$0xff]  }
 0xce1   : > { %v5851_v30 = vsel %vm5142_vm6, %v5836_v48, -inf  ;;  %6136 = vmatpush1.bf16.msra.mxu0 %v7763_v53  ;;  %v5694_v6 = vmax.f32 %v5692_v28, %v5693_v56  ;;  %v5776_v25 = vmax.f32 %v5758_v27, %v5759_v21  ;;  %v5837_v38 = vmul.f32 %v10479_v52, %v10516_v17  ;;  %v7769_v52 = vld [vmem:[%s10871_s16 + $0x20] ss:$8 sps:$4 sm:$0xff]   ;;  %v7798_v19 = vld [vmem:[%s10871_s16 + $0x94] ss:$8 sps:$4 sm:$0xff]   ;;  %7027 = vmatpush3.bf16.msra.mxu1 %v7803_v44 }
 0xce2   : > { %v5838_v0 = vmul.f32 %v10482_v10, %v10519_v57  ;;  %6137 = vmatprep.subr.bf16.mxu0 %v7768_v14  ;;  %v5852_v55 = vmax.f32 %v5850_v3, %v5851_v30  ;;  %v5777_v62 = vsel %vm5142_vm6, %v5760_v9, -inf  ;;  %v5839_v33 = vmul.f32 %v10488_v40, %v10522_v1  ;;  %v7772_v40 = vld [vmem:[%s10871_s16 + $0x10] ss:$8 sps:$4 sm:$0xff]   ;;  %v7774_v1 = vld [vmem:[%s10871_s16 + $0x14] ss:$8 sps:$4 sm:$0xff]   ;;  %v7806_v8 = vld [vmem:[%s10873_s18 + $0x68] sm:$0xff]  }
 0xce3   : > { %v5778_v17 = vmax.f32 %v5776_v25, %v5777_v62  ;;  %v7793_v12 = vld [vmem:[%s10871_s16 + $0xa0] ss:$8 sps:$4 sm:$0xff]   ;;  %v7804_v54 = vld [vmem:[%s10873_s18 + $0x70] sm:$0xff]   ;;  %v7810_v2 = vld [vmem:[%s10873_s18 + $0x58] sm:$0xff]  }
 0xce4   : > { %5700 = vmax.xlane.f32.xlu0 %v5699_v37  ;;  %5774 = vmax.xlane.f32.xlu1 %v5773_v43  ;;  %v5855_v10 = vmax.f32 %v5837_v38, %v5838_v0  ;;  %v5856_v57 = vsel %vm5142_vm6, %v5839_v33, -inf  ;;  %v7796_v50 = vld [vmem:[%s10871_s16 + $0x90] ss:$8 sps:$4 sm:$0xff]   ;;  %v7799_v35 = vld [vmem:[%s10871_s16 + $0x80] ss:$8 sps:$4 sm:$0xff]  }
 0xce5   : > { %6138 = vmatpush1.bf16.msra.mxu0 %v7766_v61  ;;  %7028 = vmatprep.subr.bf16.mxu1 %v7804_v54  ;;  %v7807_v20 = vld [vmem:[%s10873_s18 + $0x28] sm:$0xff]   ;;  %v7808_v39 = vld [vmem:[%s10873_s18 + $0x60] sm:$0xff]   ;;  %v7811_v31 = vld [vmem:[%s10873_s18 + $0x18] sm:$0xff]  }
 0xce6   : > { %6139 = vmatprep.subr.bf16.mxu0 %v7771_v7  ;;  %v5857_v13 = vmax.f32 %v5855_v10, %v5856_v57  ;;  %7029 = vmatpush3.bf16.msra.mxu1 %v7805_v49  ;;  %v7809_v4 = vld [vmem:[%s10873_s18 + $0x20] sm:$0xff]   ;;  %v7812_v41 = vld [vmem:[%s10873_s18 + $0x50] sm:$0xff]   ;;  %v6813_v28 = vld [vmem:[%s10869_s14 + $0x28] sm:$0xff] }
 0xce7   : > { %7030 = vmatprep.subr.bf16.mxu1 %v7806_v8  ;;  %v7813_v29 = vld [vmem:[%s10873_s18 + $0x10] sm:$0xff]   ;;  %v5625_v27 = vld [vmem:[%s10869_s14 + $0x8] sm:$0xff]  ;;  %v6812_v43 = vld [vmem:[%s10869_s14 + $0x20] sm:$0xff]  ;;  %v5709_v9 = vunpack.c.l.bf16 %v6813_v28  ;;  %v5710_v14 = vunpack.c.h.bf16 %v6813_v28 }
 0xce8   : > { %5695 = vmax.xlane.f32.xlu0 %v5694_v6  ;;  %5853 = vmax.xlane.f32.xlu1 %v5852_v55  ;;  %v6818_v53 = vld [vmem:[%s10869_s14 + $0x48] sm:$0xff]  ;;  %v5624_v3 = vld [vmem:[%s10869_s14] sm:$0xff]  ;;  %v5630_v30 = vunpack.c.l.bf16 %v5625_v27  ;;  %v5631_v61 = vunpack.c.h.bf16 %v5625_v27  ;;  %v10740_v25 = vld [vmem:[%s10869_s14 + $0x18] sm:$0xff]  ;;  %v5707_v55 = vunpack.c.l.bf16 %v6812_v43  ;;  %v5708_v62 = vunpack.c.h.bf16 %v6812_v43 }
 0xce9   : > { %6140 = vmatpush1.bf16.msra.mxu0 %v7769_v52  ;;  %v10729_v56 = vld [vmem:[%s10869_s14 + $0x68] sm:$0xff]  ;;  %v6817_v6 = vld [vmem:[%s10869_s14 + $0x40] sm:$0xff]  ;;  %v5788_v38 = vunpack.c.l.bf16 %v6818_v53  ;;  %v5789_v0 = vunpack.c.h.bf16 %v6818_v53  ;;  %v10748_v52 = vld [vmem:[%s10869_s14 + $0x10] sm:$0xff]  ;;  %v5628_v57 = vunpack.c.l.bf16 %v5624_v3 }
 0xcea   : > { %6141 = vmatprep.subr.bf16.mxu0 %v7774_v1  ;;  %7031 = vmatpush3.bf16.msra.mxu1 %v7807_v20  ;;  %v6822_v7 = vld [vmem:[%s10869_s14 + $0x60] sm:$0xff]  ;;  %v5868_v10 = vunpack.c.h.bf16 %v10729_v56  ;;  %v10755_v1 = vld [vmem:[%s10869_s14 + $0x38] sm:$0xff] }
 0xceb   : > { %7032 = vmatprep.subr.bf16.mxu1 %v7808_v39 }
 0xcec   : > { %5779 = vmax.xlane.f32.xlu0 %v5778_v17  ;;  %v5867_v17 = vunpack.c.l.bf16 %v10729_v56 }
 0xced   : > { %6142 = vmatpush1.bf16.msra.mxu0 %v7772_v40 }
 0xcee   : > { %6143 = vmatprep.subr.bf16.mxu0 %v7777_v63  ;;  %7033 = vmatpush3.bf16.msra.mxu1 %v7809_v4  ;;  %v5786_v63 = vunpack.c.l.bf16 %v6817_v6  ;;  %v6820_v4 = vld [vmem:[%s10869_s14 + $0x58] sm:$0xff] }
 0xcef   : > { %7034 = vmatprep.subr.bf16.mxu1 %v7810_v2 }
 0xcf0   : > { %5858 = vmax.xlane.f32.xlu0 %v5857_v13  ;;  %v5629_v13 = vunpack.c.h.bf16 %v5624_v3 }
 0xcf1   : > { %6144 = vmatpush1.bf16.msra.mxu0 %v7775_v58  ;;  %v5787_v58 = vunpack.c.h.bf16 %v6817_v6 }
 0xcf2   : > { %6145 = vmatprep.subr.bf16.mxu0 %v7780_v59  ;;  %7035 = vmatpush3.bf16.msra.mxu1 %v7811_v31  ;;  %v5635_v59 = vunpack.c.h.bf16 %v10740_v25 }
 0xcf3   : > { %7036 = vmatprep.subr.bf16.mxu1 %v7812_v41 }
 0xcf5   : > { %6146 = vmatpush2.bf16.msra.mxu0 %v7778_v34  ;;  %v5634_v34 = vunpack.c.l.bf16 %v10740_v25 }
 0xcf6   : > { %6147 = vmatprep.subr.bf16.mxu0 %v7783_v46  ;;  %7037 = vmatpush3.bf16.msra.mxu1 %v7813_v29  ;;  %v5865_v46 = vunpack.c.l.bf16 %v6822_v7 }
 0xcf9   : > { %6148 = vmatpush2.bf16.msra.mxu0 %v7781_v45  ;;  %v5866_v45 = vunpack.c.h.bf16 %v6822_v7 }
 0xcfa   : > { %6149 = vmatprep.subr.bf16.mxu0 %v7786_v42  ;;  %v5632_v42 = vunpack.c.l.bf16 %v10748_v52 }
 0xcfd   : > { %6150 = vmatpush2.bf16.msra.mxu0 %v7784_v32  ;;  %v5633_v32 = vunpack.c.h.bf16 %v10748_v52 }
 0xcfe   : > { %6151 = vmatprep.subr.bf16.mxu0 %v7789_v11  ;;  %v6819_v11 = vld [vmem:[%s10869_s14 + $0x50] sm:$0xff] }
 0xcff   : > { %v5790_v20 = vunpack.c.l.bf16 %v6819_v11  ;;  %v5791_v39 = vunpack.c.h.bf16 %v6819_v11 }
 0xd01   : > { %6152 = vmatpush2.bf16.msra.mxu0 %v7787_v47 }
 0xd02   : > { %6153 = vmatprep.subr.bf16.mxu0 %v7792_v60 }
 0xd05   : > { %6154 = vmatpush2.bf16.msra.mxu0 %v7790_v26 }
 0xd06   : > { %6155 = vmatprep.subr.bf16.mxu0 %v7795_v23  ;;  %v5713_v23 = vunpack.c.l.bf16 %v10755_v1 }
 0xd09   : > { %6156 = vmatpush2.bf16.msra.mxu0 %v7793_v12  ;;  %v5714_v12 = vunpack.c.h.bf16 %v10755_v1 }
 0xd0a   : > { %6157 = vmatprep.subr.bf16.mxu0 %v7798_v19  ;;  %v6814_v19 = vld [vmem:[%s10869_s14 + $0x30] sm:$0xff] }
 0xd0b   : > { %v5711_v41 = vunpack.c.l.bf16 %v6814_v19  ;;  %v5712_v29 = vunpack.c.h.bf16 %v6814_v19 }
 0xd0d   : > { %6158 = vmatpush2.bf16.msra.mxu0 %v7796_v50 }
 0xd0e   : > { %6159 = vmatprep.subr.bf16.mxu0 %v7801_v16  ;;  %v6824_v16 = vld [vmem:[%s10869_s14 + $0x70] sm:$0xff] }
 0xd0f   : > { %v5869_v53 = vunpack.c.l.bf16 %v6824_v16  ;;  %v5870_v43 = vunpack.c.h.bf16 %v6824_v16 }
 0xd11   : > { %6160 = vmatpush2.bf16.msra.mxu0 %v7799_v35 }
 0xd59   : > { %v5691_v36 = vpop.xlane.xlu0 %5690  ;;  %v5613_v15 = vpop.xlane.xlu1 %5612 }
 0xd5a   : > { %v5717_v5 = vmul.f32 %v5709_v9, %v5691_v36  ;;  %v5718_v44 = vmul.f32 %v5710_v14, %v5691_v36  ;;  %v5638_v54 = vmul.f32 %v5630_v30, %v5613_v15  ;;  %v5639_v50 = vmul.f32 %v5631_v61, %v5613_v15  ;;  %v6825_v36 = vld [vmem:[%s10869_s14 + $0x78] sm:$0xff] }
 0xd5b   : > { %v5792_v9 = vunpack.c.l.bf16 %v6820_v4  ;;  %v5793_v14 = vunpack.c.h.bf16 %v6820_v4  ;;  %v5871_v61 = vunpack.c.l.bf16 %v6825_v36  ;;  %v5872_v6 = vunpack.c.h.bf16 %v6825_v36 }
 0xd5c   : > { %v5726_v56 = vadd.f32 %v5718_v44, %v5639_v50 }
 0xd5d   : > { %v5770_v48 = vpop.xlane.xlu0 %5769  ;;  %v10710_v37 = vpop.xlane.xlu1 %5848 }
 0xd5e   : > { %v5796_v2 = vmul.f32 %v5788_v38, %v5770_v48  ;;  %v5797_v31 = vmul.f32 %v5789_v0, %v5770_v48  ;;  %v5875_v0 = vmul.f32 %v5867_v17, %v10710_v37 }
 0xd60   : > { %v5805_v38 = vadd.f32 %v5797_v31, %v5726_v56 }
 0xd61   : > { %v5608_v21 = vpop.xlane.xlu0 %5607  ;;  %v10721_v18 = vpop.xlane.xlu1 %5764 }
 0xd62   : > { %v5636_v8 = vmul.f32 %v5628_v57, %v5608_v21  ;;  %v5637_v35 = vmul.f32 %v5629_v13, %v5608_v21  ;;  %v5725_v21 = vadd.f32 %v5717_v5, %v5638_v54  ;;  %v5794_v30 = vmul.f32 %v5786_v63, %v10721_v18 }
 0xd63   : > { %v5795_v48 = vmul.f32 %v5787_v58, %v10721_v18 }
 0xd64   : > { %v5804_v25 = vadd.f32 %v5796_v2, %v5725_v21 }
 0xd65   : > { %v5686_v33 = vpop.xlane.xlu0 %5685  ;;  %v5623_v40 = vpop.xlane.xlu1 %5622 }
 0xd66   : > { %v5715_v47 = vmul.f32 %v5707_v55, %v5686_v33  ;;  %v5716_v60 = vmul.f32 %v5708_v62, %v5686_v33  ;;  %v5876_v55 = vmul.f32 %v5868_v10, %v10710_v37  ;;  %v5643_v18 = vmul.f32 %v5635_v59, %v5623_v40 }
 0xd68   : > { %v5723_v15 = vadd.f32 %v5715_v47, %v5636_v8  ;;  %v5724_v28 = vadd.f32 %v5716_v60, %v5637_v35  ;;  %v5642_v60 = vmul.f32 %v5634_v34, %v5623_v40  ;;  %v5884_v8 = vadd.f32 %v5876_v55, %v5805_v38 }
 0xd69   : > { %v5844_v26 = vpop.xlane.xlu0 %5843  ;;  %v5618_v49 = vpop.xlane.xlu1 %5617 }
 0xd6a   : > { %v5802_v62 = vadd.f32 %v5794_v30, %v5723_v15  ;;  %v5803_v33 = vadd.f32 %v5795_v48, %v5724_v28  ;;  %v5873_v7 = vmul.f32 %v5865_v46, %v5844_v26  ;;  %v5874_v52 = vmul.f32 %v5866_v45, %v5844_v26 }
 0xd6b   : > { %v5640_v13 = vmul.f32 %v5632_v42, %v5618_v49  ;;  %v5641_v1 = vmul.f32 %v5633_v32, %v5618_v49  ;;  %v5883_v49 = vadd.f32 %v5875_v0, %v5804_v25 }
 0xd6c   : > { %v5881_v50 = vadd.f32 %v5873_v7, %v5802_v62  ;;  %v5882_v37 = vadd.f32 %v5874_v52, %v5803_v33 }
 0xd6d   : > { %v5701_v27 = vpop.xlane.xlu0 %5700  ;;  %v5775_v3 = vpop.xlane.xlu1 %5774 }
 0xd6e   : > { %v5721_v58 = vmul.f32 %v5713_v23, %v5701_v27  ;;  %v5722_v19 = vmul.f32 %v5714_v12, %v5701_v27  ;;  %v5798_v5 = vmul.f32 %v5790_v20, %v5775_v3  ;;  %v5799_v44 = vmul.f32 %v5791_v39, %v5775_v3 }
 0xd6f   : > { %v5889_v23 = vadd.f32 %v5883_v49, %v5881_v50  ;;  %v5898_v12 = vadd.f32 %v5884_v8, %v5882_v37 }
 0xd70   : > { %v5729_v35 = vadd.f32 %v5721_v58, %v5642_v60  ;;  %v5730_v34 = vadd.f32 %v5722_v19, %v5643_v18  ;;  %v5957_v60 = vld [vmem:[%s10872_s17] sm:$0x3] }
 0xd71   : > { %v5696_v57 = vpop.xlane.xlu0 %5695  ;;  %v5854_v63 = vpop.xlane.xlu1 %5853  ;;  %v6122_v18 = vrot.slane %v5957_v60, %v8396_v51  ;;  %v6126_v58 = vrot.slane %v5957_v60, %v8409_v22 }
 0xd72   : > { %v5719_v11 = vmul.f32 %v5711_v41, %v5696_v57  ;;  %v5720_v47 = vmul.f32 %v5712_v29, %v5696_v57  ;;  %v5877_v10 = vmul.f32 %v5869_v53, %v5854_v63  ;;  %v5878_v16 = vmul.f32 %v5870_v43, %v5854_v63  ;;  %v7817_v63 = vld [vmem:[%s10873_s18] sm:$0xff]  }
 0xd74   : > { %v5727_v54 = vadd.f32 %v5719_v11, %v5640_v13  ;;  %v5728_v17 = vadd.f32 %v5720_v47, %v5641_v1  ;;  %v7814_v1 = vld [vmem:[%s10873_s18 + $0x48] sm:$0xff]   ;;  %v7816_v47 = vld [vmem:[%s10873_s18 + $0x40] sm:$0xff]  }
 0xd75   : > { %v5780_v46 = vpop.xlane.xlu0 %5779  ;;  %v7815_v11 = vld [vmem:[%s10873_s18 + $0x8] sm:$0xff]   ;;  %7038 = vmatprep.subr.bf16.mxu1 %v7814_v1 }
 0xd76   : > { %v5806_v45 = vadd.f32 %v5798_v5, %v5727_v54  ;;  %v5807_v26 = vadd.f32 %v5799_v44, %v5728_v17  ;;  %v5800_v42 = vmul.f32 %v5792_v9, %v5780_v46  ;;  %v5801_v32 = vmul.f32 %v5793_v14, %v5780_v46  ;;  %v5907_v14 = vld [vmem:[%s10870_s15] sm:$0x3]  ;;  %7039 = vmatpush3.bf16.msra.mxu1 %v7815_v11  ;;  %v7818_v46 = vld [vmem:[%s10875_s20 + $0x18] sm:$0xff]  }
 0xd77   : > { %v5912_v25 = vrot.slane %v5907_v14, %v8396_v51  ;;  %v5916_v38 = vrot.slane %v5907_v14, %v8409_v22  ;;  %7040 = vmatprep.subr.bf16.mxu1 %v7816_v47  ;;  %v7819_v51 = vld [vmem:[%s10875_s20 + $0x10] sm:$0xff]   ;;  %v7820_v22 = vld [vmem:[%s10875_s20 + $0x8] sm:$0xff]  }
 0xd78   : > { %v5885_v40 = vadd.f32 %v5877_v10, %v5806_v45  ;;  %v5886_v59 = vadd.f32 %v5878_v16, %v5807_v26  ;;  %v5808_v39 = vadd.f32 %v5800_v42, %v5729_v35  ;;  %v5809_v4 = vadd.f32 %v5801_v32, %v5730_v34  ;;  %v7821_v26 = vld [vmem:[%s10875_s20] sm:$0xff]  }
 0xd79   : > { %v5859_v20 = vpop.xlane.xlu0 %5858  ;;  %v6206_v32 = vld [vmem:[%s10874_s19] sm:$0x1] }
 0xd7a   : > { %v5879_v2 = vmul.f32 %v5871_v61, %v5859_v20  ;;  %v5880_v31 = vmul.f32 %v5872_v6, %v5859_v20  ;;  %v5890_v41 = vadd.f32 %v5889_v23, %v5885_v40  ;;  %v5899_v29 = vadd.f32 %v5898_v12, %v5886_v59  ;;  %7041 = vmatpush3.bf16.msra.mxu1 %v7817_v63  ;;  %v7822_v23 = vld [vmem:[%s10877_s22 + $0x18] sm:$0xff]   ;;  %v7823_v20 = vld [vmem:[%s10877_s22 + $0x10] sm:$0xff]  }
 0xd7b   : > { %7106 = vmatprep.subr.bf16.mxu1 %v10925_v24 }
 0xd7c   : > { %v5887_v36 = vadd.f32 %v5879_v2, %v5808_v39  ;;  %v5888_v15 = vadd.f32 %v5880_v31, %v5809_v4  ;;  %v7824_v39 = vld [vmem:[%s10877_s22 + $0x8] sm:$0xff]   ;;  %v7825_v4 = vld [vmem:[%s10877_s22] sm:$0xff]  }
 0xd7d   : > { %v6353_v2 = vld [vmem:[%s10876_s21] sm:$0x1] }
 0xd7e   : > { %v5891_v28 = vadd.f32 %v5890_v41, %v5887_v36  ;;  %v5900_v27 = vadd.f32 %v5899_v29, %v5888_v15 }
 0xd80   : > { %v5892_v53 = vrot.slane %v5891_v28, 4  ;;  %v5901_v43 = vrot.slane %v5900_v27, 4 }
 0xd82   : > { %v5893_v21 = vadd.f32 %v5892_v53, %v5891_v28  ;;  %v5902_v56 = vadd.f32 %v5901_v43, %v5900_v27  ;;  %v6431_v53 = vld [vmem:[#allocation4] sm:$0x1] }
 0xd84   : > { %v5894_v3 = vrot.slane %v5893_v21, 2  ;;  %v5903_v9 = vrot.slane %v5902_v56, 2 }
 0xd86   : > { %v5895_v30 = vadd.f32 %v5894_v3, %v5893_v21  ;;  %v5904_v48 = vadd.f32 %v5903_v9, %v5902_v56 }
 0xd88   : > { %v5896_v61 = vrot.slane %v5895_v30, 1  ;;  %v5905_v6 = vrot.slane %v5904_v48, 1 }
 0xd8a   : > { %v5906_v0 = vadd.f32 %v5905_v6, %v5904_v48  ;;  %v5897_v55 = vadd.f32 %v5896_v61, %v5895_v30 }
 0xd8c   : > { %v5920_v62 = vadd.f32 %v5916_v38, %v5906_v0  ;;  %v5919_v33 = vadd.f32 %v5912_v25, %v5897_v55 }
 0xd8e   : > { %v5922_v7 = vmax.f32 %v5920_v62, 0.0  ;;  %v5921_v52 = vmax.f32 %v5919_v33, 0.0 }
 0xd90   : > { %v5924_v57 = vpack.c.bf16 %v5922_v7, %v5922_v7  ;;  %v5923_v13 = vpack.c.bf16 %v5921_v52, %v5921_v52 }
 0xd92   : > { %6161 = vmatprep.mubr.bf16.mxu0 %v5924_v57 }
 0xd93   : > { %6162 = vmatmul.mubr.bf16.vlgmr.msra.gmra.mxu0 %v5923_v13 }
 0xe53   : > { %v6163_v19 = vpop.f32.mrf.mxu0 }
 0xe54   : > { %v6164_v5 = vadd.f32 %v6163_v19, %v6122_v18 }
 0xe55   : > { %v6165_v44 = vpop.f32.mrf.mxu0 }
 0xe56   : > { %v6166_v54 = vadd.f32 %v6165_v44, %v6126_v58  ;;  %v6170_v17 = vmax.f32 %v6164_v5, 0.0 }
 0xe57   : > { %v6167_v50 = vpop.f32.mrf.mxu0 }
 0xe58   : > { %v6171_v37 = vmax.f32 %v6166_v54, 0.0  ;;  %v6172_v45 = vpack.c.bf16 %v6170_v17, %v6170_v17 }
 0xe59   : > { %v6168_v10 = vpop.f32.mrf.mxu0 }
 0xe5a   : > { %v6173_v16 = vpack.c.bf16 %v6171_v37, %v6171_v37 }
 0xe5c   : > { %6335 = vmatprep.mubr.bf16.mxu1 %v6173_v16 }
 0xe5d   : > { %6336 = vmatmul.mubr.bf16.vlgmr.msra.gmra.mxu1 %v6172_v45 }
 0xe5e   : > { %7107 = vmatpush3.bf16.msra.mxu1 %v7818_v46  ;;  %7114 = vmatprep.mubr.msk.bf16.mxu1 %vm7874_vm10, %v10925_v24 }
 0xe5f   : > { %7108 = vmatprep.subr.bf16.mxu1 %v10925_v24 }
 0xe62   : > { %7109 = vmatpush3.bf16.msra.mxu1 %v7819_v51 }
 0xe63   : > { %7110 = vmatprep.subr.bf16.mxu1 %v10925_v24 }
 0xe66   : > { %7111 = vmatpush3.bf16.msra.mxu1 %v7820_v22 }
 0xe67   : > { %7112 = vmatprep.subr.bf16.mxu1 %v10925_v24 }
 0xe6a   : > { %7113 = vmatpush3.bf16.msra.mxu1 %v7821_v26 }
 0xe6b   : > { %7118 = vmatprep.subr.bf16.mxu1 %v10925_v24 }
 0xf1d   : > { %v7042_v42 = vpop.f32.mrf.mxu1 }
 0xf1f   : > { %v7043_v49 = vpop.f32.mrf.mxu1 }
 0xf20   : > { %v7044_v8 = vadd.f32 %v7043_v49, %v7042_v42 }
 0xf21   : > { %v7045_v35 = vpop.f32.mrf.mxu1 }
 0xf22   : > { %v6338_v34 = vadd.f32 %v7044_v8, %v6206_v32 }
 0xf23   : > { %v7046_v40 = vpop.f32.mrf.mxu1 }
 0xf24   : > { %v6343_v59 = vmax.f32 %v6338_v34, 0.0 }
 0xf26   : > { %v6344_v12 = vpack.c.bf16 %v6343_v59, %v6343_v59 }
 0xf28   : > { %7115 = vmatmul.mubr.msk.bf16.vlgmr.msra.gmra.mxu1 %vm4052_vm0, %v6344_v12 }
 0xf29   : > { %7119 = vmatpush3.bf16.msra.mxu1 %v7822_v23  ;;  %7126 = vmatprep.mubr.msk.bf16.mxu1 %vm7874_vm10, %v10925_v24 }
 0xf2a   : > { %7120 = vmatprep.subr.bf16.mxu1 %v10925_v24 }
 0xf2d   : > { %7121 = vmatpush3.bf16.msra.mxu1 %v7823_v20 }
 0xf2e   : > { %7122 = vmatprep.subr.bf16.mxu1 %v10925_v24 }
 0xf31   : > { %7123 = vmatpush3.bf16.msra.mxu1 %v7824_v39 }
 0xf32   : > { %7124 = vmatprep.subr.bf16.mxu1 %v10925_v24 }
 0xf35   : > { %7125 = vmatpush3.bf16.msra.mxu1 %v7825_v4 }
 0xfe8   : > { %v6415_v31 = vpop.f32.mrf.mxu1 }
 0xfe9   : > { %v6416_v41 = vadd.f32 %v6415_v31, %v6353_v2 }
 0xfea   : > { %v7116_v29 = vpop.f32.mrf.mxu1 }
 0xfeb   : > { %v6421_v36 = vmax.f32 %v6416_v41, 0.0 }
 0xfec   : > { %v6418_v15 = vpop.f32.mrf.mxu1 }
 0xfed   : > { %v6422_v28 = vpack.c.bf16 %v6421_v36, %v6421_v36 }
 0xfee   : > { %v7117_v27 = vpop.f32.mrf.mxu1 }
 0xfef   : > { %7127 = vmatmul.mubr.msk.bf16.vlgmr.msra.gmra.mxu1 %vm4052_vm0, %v6422_v28 }
0x10af   : > { %v6493_v43 = vpop.f32.mrf.mxu1 }
0x10b0   : > { %v6494_v21 = vadd.f32 %v6493_v43, %v6431_v53 }
0x10b1   : > { %v7128_v56 = vpop.f32.mrf.mxu1 }
0x10b2   : > { %v6884_v24 = vmul.f32 -1.442695, %v6494_v21 }
0x10b3   : > { %v6496_v3 = vpop.f32.mrf.mxu1 }
0x10b4   : > { %7842 = vpow2.f32 %v6884_v24 }
0x10b5   : > { %v7129_v9 = vpop.f32.mrf.mxu1 }
0x10c1   : > { %v7843_v14 = vpop.eup %7842 }
0x10c2   : > { %v6502_v30 = vadd.f32 1.0, %v7843_v14 }
0x10c4   : > { %7844 = vrcp.f32 %v6502_v30 }
0x10d1   : > { %v7845_v48 = vpop.eup %7844 }
0x10d2   : > { %6506 = vst.msk [vmem:[%s735_s5] sm:$0x1] %vm6505_vm5, %v7845_v48 }
0x10d3 PF: > { %s36_s27 = sadd.s32 1, %s7862_s27  }
0x10d4   : > { %p33_p4 = scmp.ge.s32.totalorder %s36_s27, 4  }
0x10d6   :  { %35 = sbr.rel (!%p33_p4) target bundleno = 11 (0xb), region = 152 }

</bundles_post_ra>
